<compile_context>
chip_gen: v7x
topology: tpu7x:2x2x1
jax: 0.10.0
libtpu: 0.0.40
codegen_flags: <defaults>
</compile_context>

<pallas_src>
import functools

import numpy as np

import jax
import jax.numpy as jnp
from jax.experimental import pallas as pl
from jax.experimental.pallas import tpu as pltpu


# Static network configuration (matches the PyTorch module instance used here).
N_BATCH = 2
H0 = W0 = 16                       # input spatial size
FC_IN, FC_OUT = 32 * 4 * 4, 10     # fc_2: 512 -> 10
# TODO(synk): max_pool_3 exists in the PyTorch module but is never used in
# forward(), so it is intentionally not implemented.


def _dims(n, h, w):
    """Padded-flat dims for a conv layer with spatial (h, w) and batch n."""
    hp, wp = h + 2, w + 2          # zero-padding of 1 on each side
    pp = n * hp * wp               # padded, flattened spatial length
    g = wp + 1                     # guard columns needed for shifted slices
    return hp, wp, pp, g


# ----------------------------------------------------------------------------
# The fused kernel
# ----------------------------------------------------------------------------
def _fused_cnn_kernel(x1_ref, w1_ref, b1_ref, sel1_ref,
                      w2_ref, b2_ref, sel2_ref,
                      w3_ref, b3_ref,
                      wfc_ref, cmask_ref, imgsum_ref, bfc_ref,
                      out_ref,
                      ybuf1, xbuf2, ybuf2, xbuf3,
                      *, n):
    f32 = jnp.float32
    _, wp1, pp1, g1 = _dims(n, 16, 16)
    _, wp2, pp2, g2 = _dims(n, 8, 8)
    _, wp3, pp3, g3 = _dims(n, 4, 4)

    def conv3x3_relu(xref, start, w_ref, b_ref, cin, cout, wp, pp):
        """3x3/stride1/pad1 conv as 9 shifted-slice matmuls, + bias + ReLU.

        xref holds the padded-flat input (zeros at halo & guard columns), with
        the data starting at column `start`.  Output: (cout, pp) f32, correct at
        every interior position (halo positions hold finite don't-care values
        that are filtered out by the following selection matmul / FC masks).
        """
        acc = jnp.zeros((cout, pp), f32)
        for ky in range(3):
            for kx in range(3):
                off = (ky - 1) * wp + (kx - 1)
                xs = xref[:, pl.ds(start + off, pp)]        # (cin, pp) bf16
                wk = w_ref[ky * 3 + kx]                     # (cout, cin) bf16
                if cin == 1:
                    # Degenerate K=1 matmul -> cheap VPU broadcast-multiply.
                    acc = acc + wk.astype(f32) * xs.astype(f32)
                else:
                    acc = acc + jnp.dot(wk, xs, preferred_element_type=f32)
        return jnp.maximum(acc + b_ref[...], 0.0)

    def pool2x2(y, ybuf, sel_ref, wp, pp):
        """Fused 2x2 max-pool: max of 4 shifted slices, then one 0/1 selection
        matmul that subsamples and re-packs into the next layer's padded-flat
        layout (halo columns of the result are exactly zero)."""
        ybuf[...] = jnp.zeros_like(ybuf)                    # keep guard NaN-free
        ybuf[:, pl.ds(0, pp)] = y
        m = jnp.maximum(
            jnp.maximum(ybuf[:, pl.ds(0, pp)], ybuf[:, pl.ds(1, pp)]),
            jnp.maximum(ybuf[:, pl.ds(wp, pp)], ybuf[:, pl.ds(wp + 1, pp)]))
        return jnp.dot(m, sel_ref[...], preferred_element_type=f32)

    # ---- layer 1: conv(1 -> 8) + relu + maxpool ----------------------------
    y1 = conv3x3_relu(x1_ref, g1, w1_ref, b1_ref, 1, 8, wp1, pp1)   # (8, pp1)
    x2 = pool2x2(y1, ybuf1, sel1_ref, wp1, pp1)                     # (8, pp2)
    xbuf2[...] = jnp.zeros_like(xbuf2)
    xbuf2[:, pl.ds(g2, pp2)] = x2.astype(xbuf2.dtype)

    # ---- layer 2: conv(8 -> 16) + relu + maxpool ---------------------------
    y2 = conv3x3_relu(xbuf2, g2, w2_ref, b2_ref, 8, 16, wp2, pp2)   # (16, pp2)
    x3 = pool2x2(y2, ybuf2, sel2_ref, wp2, pp2)                     # (16, pp3)
    xbuf3[...] = jnp.zeros_like(xbuf3)
    xbuf3[:, pl.ds(g3, pp3)] = x3.astype(xbuf3.dtype)

    # ---- layer 3: conv(16 -> 32) + relu (no pool) --------------------------
    y3 = conv3x3_relu(xbuf3, g3, w3_ref, b3_ref, 16, 32, wp3, pp3)  # (32, pp3)

    # ---- flatten (torch NCHW order) + fc_2, folded into masked matmuls -----
    # u[o, q] = sum_c Wfc[o, c*16 + s(q)] * y3[c, q]  for interior q, else 0.
    y3b = y3.astype(jnp.bfloat16)
    u = jnp.zeros((FC_OUT, pp3), f32)
    for s in range(16):                       # s = y*4 + x over the 4x4 map
        u = u + jnp.dot(wfc_ref[s], y3b,
                        preferred_element_type=f32) * cmask_ref[s]
    # Sum each image's columns -> (10, N); bias is (10, 1) broadcast.
    out_t = jnp.dot(u, imgsum_ref[...], preferred_element_type=f32)
    out_ref[...] = out_t + bfc_ref[...]


# ----------------------------------------------------------------------------
# One-time parameter re-layout (done once, outside the jitted forward)
# ----------------------------------------------------------------------------
def prepare_params(params, n=N_BATCH):
    def conv_w(w):                           # torch (Cout, Cin, 3, 3) -> (9, Cout, Cin)
        co, ci = w.shape[0], w.shape[1]
        return jnp.transpose(w, (2, 3, 0, 1)).reshape(9, co, ci).astype(jnp.bfloat16)

    def conv_b(b):
        return b.reshape(-1, 1).astype(jnp.float32)

    def pool_sel(h, w):
        """0/1 matrix routing the max-of-4 map into the next padded-flat layout."""
        hp, wp = h + 2, w + 2
        ho, wo = h // 2, w // 2
        hq, wq = ho + 2, wo + 2
        s = np.zeros((n * hp * wp, n * hq * wq), np.float32)
        for b in range(n):
            for yo in range(ho):
                for xo in range(wo):
                    q_in = (b * hp + 2 * yo + 1) * wp + (2 * xo + 1)
                    q_out = (b * hq + yo + 1) * wq + (xo + 1)
                    s[q_in, q_out] = 1.0
        return jnp.asarray(s)

    # fc_2 weight (10, 512), torch flatten order is (c, y, x) over (32, 4, 4).
    fc_w = params["fc2_w"]
    wfc = jnp.transpose(fc_w.reshape(FC_OUT, 32, 16), (2, 0, 1)).astype(jnp.bfloat16)

    pp3 = n * 6 * 6
    cmask = np.zeros((16, 1, pp3), np.float32)   # interior columns with s(q)==s
    imgsum = np.zeros((pp3, n), np.float32)      # per-image column-sum matrix
    for b in range(n):
        imgsum[b * 36:(b + 1) * 36, b] = 1.0
        for y in range(4):
            for x in range(4):
                q = (b * 6 + y + 1) * 6 + (x + 1)
                cmask[y * 4 + x, 0, q] = 1.0

    return {
        "w1": conv_w(params["conv1_w"]), "b1": conv_b(params["conv1_b"]),
        "w2": conv_w(params["conv2_w"]), "b2": conv_b(params["conv2_b"]),
        "w3": conv_w(params["conv3_w"]), "b3": conv_b(params["conv3_b"]),
        "sel1": pool_sel(16, 16), "sel2": pool_sel(8, 8),
        "wfc": wfc,
        "cmask": jnp.asarray(cmask),
        "imgsum": jnp.asarray(imgsum),
        "bfc": params["fc2_b"].reshape(FC_OUT, 1).astype(jnp.float32),
    }


# ----------------------------------------------------------------------------
# Forward pass (single pallas_call)
# ----------------------------------------------------------------------------
def _full_spec(a):
    nd = a.ndim
    return pl.BlockSpec(a.shape, lambda: (0,) * nd)


def cnn_mnist_1_forward(x, prep):
    n = x.shape[0]
    _, _, pp1, g1 = _dims(n, 16, 16)
    _, _, pp2, g2 = _dims(n, 8, 8)
    _, _, pp3, g3 = _dims(n, 4, 4)

    # Tiny host-side prep of the 2 KB input: NCHW -> (Cin=1, padded-flat) with
    # zero guard columns so the kernel can take statically shifted slices.
    xc = jnp.transpose(x, (1, 0, 2, 3))                        # (1, N, 16, 16)
    xc = jnp.pad(xc, ((0, 0), (0, 0), (1, 1), (1, 1)))         # (1, N, 18, 18)
    xflat = xc.reshape(1, pp1)
    xflat = jnp.pad(xflat, ((0, 0), (g1, g1))).astype(jnp.bfloat16)

    inputs = (xflat, prep["w1"], prep["b1"], prep["sel1"],
              prep["w2"], prep["b2"], prep["sel2"],
              prep["w3"], prep["b3"],
              prep["wfc"], prep["cmask"], prep["imgsum"], prep["bfc"])

    kernel = functools.partial(_fused_cnn_kernel, n=n)
    out_t = pl.pallas_call(
        kernel,
        out_shape=jax.ShapeDtypeStruct((FC_OUT, n), jnp.float32),
        in_specs=[_full_spec(a) for a in inputs],
        out_specs=pl.BlockSpec((FC_OUT, n), lambda: (0, 0)),
        scratch_shapes=[
            pltpu.VMEM((8, pp1 + g1), jnp.float32),         # ybuf1 (pool1 input)
            pltpu.VMEM((8, pp2 + 2 * g2), jnp.bfloat16),    # xbuf2 (layer-2 input)
            pltpu.VMEM((16, pp2 + g2), jnp.float32),        # ybuf2 (pool2 input)
            pltpu.VMEM((16, pp3 + 2 * g3), jnp.bfloat16),   # xbuf3 (layer-3 input)
        ],
    )(*inputs)
    return out_t.T   # (N, 10), matching torch's output layout (80-byte transpose)


# ----------------------------------------------------------------------------
# Plain-JAX reference (for a correctness self-check) and init
# ----------------------------------------------------------------------------
def reference_forward(x, params):
    def conv(z, w, b):
        y = jax.lax.conv_general_dilated(
            z, w, window_strides=(1, 1), padding=((1, 1), (1, 1)),
            dimension_numbers=("NCHW", "OIHW", "NCHW"))
        return jax.nn.relu(y + b.reshape(1, -1, 1, 1))

    def pool(z):
        return jax.lax.reduce_window(z, -jnp.inf, jax.lax.max,
                                     (1, 1, 2, 2), (1, 1, 2, 2), "VALID")

    z = pool(conv(x, params["conv1_w"], params["conv1_b"]))
    z = pool(conv(z, params["conv2_w"], params["conv2_b"]))
    z = conv(z, params["conv3_w"], params["conv3_b"])
    z = z.reshape(z.shape[0], -1)
    return z @ params["fc2_w"].T + params["fc2_b"]


def init_params(key):
    ks = jax.random.split(key, 8)
    return {
        "conv1_w": 0.1 * jax.random.normal(ks[0], (8, 1, 3, 3), jnp.float32),
        "conv1_b": 0.1 * jax.random.normal(ks[1], (8,), jnp.float32),
        "conv2_w": 0.1 * jax.random.normal(ks[2], (16, 8, 3, 3), jnp.float32),
        "conv2_b": 0.1 * jax.random.normal(ks[3], (16,), jnp.float32),
        "conv3_w": 0.1 * jax.random.normal(ks[4], (32, 16, 3, 3), jnp.float32),
        "conv3_b": 0.1 * jax.random.normal(ks[5], (32,), jnp.float32),
        "fc2_w": 0.1 * jax.random.normal(ks[6], (FC_OUT, FC_IN), jnp.float32),
        "fc2_b": 0.1 * jax.random.normal(ks[7], (FC_OUT,), jnp.float32),
    }


if __name__ == "__main__":
    key = jax.random.PRNGKey(0)
    k_x, k_p = jax.random.split(key)
    x = jax.random.normal(k_x, (N_BATCH, 1, H0, W0), jnp.float32)   # NCHW input
    params = init_params(k_p)

    prep = prepare_params(params, n=N_BATCH)          # one-time weight re-layout
    fwd = jax.jit(cnn_mnist_1_forward)
    out = jax.block_until_ready(fwd(x, prep))
    assert out.shape == (N_BATCH, FC_OUT), out.shape

    # Correctness self-check against a plain-JAX reference (bf16 matmul operands
    # with f32 accumulation => loose tolerance).
    ref = jax.block_until_ready(reference_forward(x, params))
    np.testing.assert_allclose(np.asarray(out), np.asarray(ref),
                               rtol=5e-2, atol=5e-2)
    print("KERNEL_OK")
</pallas_src>

<mosaic_0001>
module attributes {stable_mosaic.version = 11 : i64} {
  func.func @_fused_cnn_kernel(%arg0: memref<1x686xbf16, #tpu.memory_space<vmem>>, %arg1: memref<9x8x1xbf16, #tpu.memory_space<vmem>>, %arg2: memref<8x1xf32, #tpu.memory_space<vmem>>, %arg3: memref<648x200xf32, #tpu.memory_space<vmem>>, %arg4: memref<9x16x8xbf16, #tpu.memory_space<vmem>>, %arg5: memref<16x1xf32, #tpu.memory_space<vmem>>, %arg6: memref<200x72xf32, #tpu.memory_space<vmem>>, %arg7: memref<9x32x16xbf16, #tpu.memory_space<vmem>>, %arg8: memref<32x1xf32, #tpu.memory_space<vmem>>, %arg9: memref<16x10x32xbf16, #tpu.memory_space<vmem>>, %arg10: memref<16x1x72xf32, #tpu.memory_space<vmem>>, %arg11: memref<72x2xf32, #tpu.memory_space<vmem>>, %arg12: memref<10x1xf32, #tpu.memory_space<vmem>>, %arg13: memref<10x2xf32, #tpu.memory_space<vmem>>, %arg14: memref<8x667xf32, #tpu.memory_space<vmem>>, %arg15: memref<8x222xbf16, #tpu.memory_space<vmem>>, %arg16: memref<16x211xf32, #tpu.memory_space<vmem>>, %arg17: memref<16x86xbf16, #tpu.memory_space<vmem>>) attributes {dimension_semantics = [], scalar_prefetch = 0 : i64, scratch_operands = 4 : i64, tpu.core_type = #tpu.core_type<tc>} {
    %cst = arith.constant 0.000000e+00 : f32
    %0 = vector.broadcast %cst : f32 to vector<8x648xf32>
    %c0 = arith.constant 0 : index
    %c0_0 = arith.constant 0 : index
    %1 = vector.load %arg0[%c0, %c0_0] : memref<1x686xbf16, #tpu.memory_space<vmem>>, vector<1x648xbf16>
    %c0_1 = arith.constant 0 : index
    %c0_2 = arith.constant 0 : index
    %c0_3 = arith.constant 0 : index
    %2 = vector.load %arg1[%c0_1, %c0_2, %c0_3] : memref<9x8x1xbf16, #tpu.memory_space<vmem>>, vector<1x8x1xbf16>
    %3 = vector.shape_cast %2 : vector<1x8x1xbf16> to vector<8x1xbf16>
    %4 = arith.extf %3 : vector<8x1xbf16> to vector<8x1xf32>
    %5 = arith.extf %1 : vector<1x648xbf16> to vector<1x648xf32>
    %6 = vector.broadcast %4 : vector<8x1xf32> to vector<8x648xf32>
    %7 = vector.broadcast %5 : vector<1x648xf32> to vector<8x648xf32>
    %8 = arith.mulf %6, %7 : vector<8x648xf32>
    %9 = arith.addf %0, %8 : vector<8x648xf32>
    %c0_4 = arith.constant 0 : index
    %c1 = arith.constant 1 : index
    %10 = vector.load %arg0[%c0_4, %c1] : memref<1x686xbf16, #tpu.memory_space<vmem>>, vector<1x648xbf16>
    %c1_5 = arith.constant 1 : index
    %c0_6 = arith.constant 0 : index
    %c0_7 = arith.constant 0 : index
    %11 = vector.load %arg1[%c1_5, %c0_6, %c0_7] : memref<9x8x1xbf16, #tpu.memory_space<vmem>>, vector<1x8x1xbf16>
    %12 = vector.shape_cast %11 : vector<1x8x1xbf16> to vector<8x1xbf16>
    %13 = arith.extf %12 : vector<8x1xbf16> to vector<8x1xf32>
    %14 = arith.extf %10 : vector<1x648xbf16> to vector<1x648xf32>
    %15 = vector.broadcast %13 : vector<8x1xf32> to vector<8x648xf32>
    %16 = vector.broadcast %14 : vector<1x648xf32> to vector<8x648xf32>
    %17 = arith.mulf %15, %16 : vector<8x648xf32>
    %18 = arith.addf %9, %17 : vector<8x648xf32>
    %c0_8 = arith.constant 0 : index
    %c2 = arith.constant 2 : index
    %19 = vector.load %arg0[%c0_8, %c2] : memref<1x686xbf16, #tpu.memory_space<vmem>>, vector<1x648xbf16>
    %c2_9 = arith.constant 2 : index
    %c0_10 = arith.constant 0 : index
    %c0_11 = arith.constant 0 : index
    %20 = vector.load %arg1[%c2_9, %c0_10, %c0_11] : memref<9x8x1xbf16, #tpu.memory_space<vmem>>, vector<1x8x1xbf16>
    %21 = vector.shape_cast %20 : vector<1x8x1xbf16> to vector<8x1xbf16>
    %22 = arith.extf %21 : vector<8x1xbf16> to vector<8x1xf32>
    %23 = arith.extf %19 : vector<1x648xbf16> to vector<1x648xf32>
    %24 = vector.broadcast %22 : vector<8x1xf32> to vector<8x648xf32>
    %25 = vector.broadcast %23 : vector<1x648xf32> to vector<8x648xf32>
    %26 = arith.mulf %24, %25 : vector<8x648xf32>
    %27 = arith.addf %18, %26 : vector<8x648xf32>
    %c0_12 = arith.constant 0 : index
    %c18 = arith.constant 18 : index
    %28 = vector.load %arg0[%c0_12, %c18] : memref<1x686xbf16, #tpu.memory_space<vmem>>, vector<1x648xbf16>
    %c3 = arith.constant 3 : index
    %c0_13 = arith.constant 0 : index
    %c0_14 = arith.constant 0 : index
    %29 = vector.load %arg1[%c3, %c0_13, %c0_14] : memref<9x8x1xbf16, #tpu.memory_space<vmem>>, vector<1x8x1xbf16>
    %30 = vector.shape_cast %29 : vector<1x8x1xbf16> to vector<8x1xbf16>
    %31 = arith.extf %30 : vector<8x1xbf16> to vector<8x1xf32>
    %32 = arith.extf %28 : vector<1x648xbf16> to vector<1x648xf32>
    %33 = vector.broadcast %31 : vector<8x1xf32> to vector<8x648xf32>
    %34 = vector.broadcast %32 : vector<1x648xf32> to vector<8x648xf32>
    %35 = arith.mulf %33, %34 : vector<8x648xf32>
    %36 = arith.addf %27, %35 : vector<8x648xf32>
    %c0_15 = arith.constant 0 : index
    %c19 = arith.constant 19 : index
    %37 = vector.load %arg0[%c0_15, %c19] : memref<1x686xbf16, #tpu.memory_space<vmem>>, vector<1x648xbf16>
    %c4 = arith.constant 4 : index
    %c0_16 = arith.constant 0 : index
    %c0_17 = arith.constant 0 : index
    %38 = vector.load %arg1[%c4, %c0_16, %c0_17] : memref<9x8x1xbf16, #tpu.memory_space<vmem>>, vector<1x8x1xbf16>
    %39 = vector.shape_cast %38 : vector<1x8x1xbf16> to vector<8x1xbf16>
    %40 = arith.extf %39 : vector<8x1xbf16> to vector<8x1xf32>
    %41 = arith.extf %37 : vector<1x648xbf16> to vector<1x648xf32>
    %42 = vector.broadcast %40 : vector<8x1xf32> to vector<8x648xf32>
    %43 = vector.broadcast %41 : vector<1x648xf32> to vector<8x648xf32>
    %44 = arith.mulf %42, %43 : vector<8x648xf32>
    %45 = arith.addf %36, %44 : vector<8x648xf32>
    %c0_18 = arith.constant 0 : index
    %c20 = arith.constant 20 : index
    %46 = vector.load %arg0[%c0_18, %c20] : memref<1x686xbf16, #tpu.memory_space<vmem>>, vector<1x648xbf16>
    %c5 = arith.constant 5 : index
    %c0_19 = arith.constant 0 : index
    %c0_20 = arith.constant 0 : index
    %47 = vector.load %arg1[%c5, %c0_19, %c0_20] : memref<9x8x1xbf16, #tpu.memory_space<vmem>>, vector<1x8x1xbf16>
    %48 = vector.shape_cast %47 : vector<1x8x1xbf16> to vector<8x1xbf16>
    %49 = arith.extf %48 : vector<8x1xbf16> to vector<8x1xf32>
    %50 = arith.extf %46 : vector<1x648xbf16> to vector<1x648xf32>
    %51 = vector.broadcast %49 : vector<8x1xf32> to vector<8x648xf32>
    %52 = vector.broadcast %50 : vector<1x648xf32> to vector<8x648xf32>
    %53 = arith.mulf %51, %52 : vector<8x648xf32>
    %54 = arith.addf %45, %53 : vector<8x648xf32>
    %c0_21 = arith.constant 0 : index
    %c36 = arith.constant 36 : index
    %55 = vector.load %arg0[%c0_21, %c36] : memref<1x686xbf16, #tpu.memory_space<vmem>>, vector<1x648xbf16>
    %c6 = arith.constant 6 : index
    %c0_22 = arith.constant 0 : index
    %c0_23 = arith.constant 0 : index
    %56 = vector.load %arg1[%c6, %c0_22, %c0_23] : memref<9x8x1xbf16, #tpu.memory_space<vmem>>, vector<1x8x1xbf16>
    %57 = vector.shape_cast %56 : vector<1x8x1xbf16> to vector<8x1xbf16>
    %58 = arith.extf %57 : vector<8x1xbf16> to vector<8x1xf32>
    %59 = arith.extf %55 : vector<1x648xbf16> to vector<1x648xf32>
    %60 = vector.broadcast %58 : vector<8x1xf32> to vector<8x648xf32>
    %61 = vector.broadcast %59 : vector<1x648xf32> to vector<8x648xf32>
    %62 = arith.mulf %60, %61 : vector<8x648xf32>
    %63 = arith.addf %54, %62 : vector<8x648xf32>
    %c0_24 = arith.constant 0 : index
    %c37 = arith.constant 37 : index
    %64 = vector.load %arg0[%c0_24, %c37] : memref<1x686xbf16, #tpu.memory_space<vmem>>, vector<1x648xbf16>
    %c7 = arith.constant 7 : index
    %c0_25 = arith.constant 0 : index
    %c0_26 = arith.constant 0 : index
    %65 = vector.load %arg1[%c7, %c0_25, %c0_26] : memref<9x8x1xbf16, #tpu.memory_space<vmem>>, vector<1x8x1xbf16>
    %66 = vector.shape_cast %65 : vector<1x8x1xbf16> to vector<8x1xbf16>
    %67 = arith.extf %66 : vector<8x1xbf16> to vector<8x1xf32>
    %68 = arith.extf %64 : vector<1x648xbf16> to vector<1x648xf32>
    %69 = vector.broadcast %67 : vector<8x1xf32> to vector<8x648xf32>
    %70 = vector.broadcast %68 : vector<1x648xf32> to vector<8x648xf32>
    %71 = arith.mulf %69, %70 : vector<8x648xf32>
    %72 = arith.addf %63, %71 : vector<8x648xf32>
    %c0_27 = arith.constant 0 : index
    %c38 = arith.constant 38 : index
    %73 = vector.load %arg0[%c0_27, %c38] : memref<1x686xbf16, #tpu.memory_space<vmem>>, vector<1x648xbf16>
    %c8 = arith.constant 8 : index
    %c0_28 = arith.constant 0 : index
    %c0_29 = arith.constant 0 : index
    %74 = vector.load %arg1[%c8, %c0_28, %c0_29] : memref<9x8x1xbf16, #tpu.memory_space<vmem>>, vector<1x8x1xbf16>
    %75 = vector.shape_cast %74 : vector<1x8x1xbf16> to vector<8x1xbf16>
    %76 = arith.extf %75 : vector<8x1xbf16> to vector<8x1xf32>
    %77 = arith.extf %73 : vector<1x648xbf16> to vector<1x648xf32>
    %78 = vector.broadcast %76 : vector<8x1xf32> to vector<8x648xf32>
    %79 = vector.broadcast %77 : vector<1x648xf32> to vector<8x648xf32>
    %80 = arith.mulf %78, %79 : vector<8x648xf32>
    %81 = arith.addf %72, %80 : vector<8x648xf32>
    %c0_30 = arith.constant 0 : index
    %c0_31 = arith.constant 0 : index
    %82 = vector.load %arg2[%c0_30, %c0_31] : memref<8x1xf32, #tpu.memory_space<vmem>>, vector<8x1xf32>
    %83 = vector.broadcast %82 : vector<8x1xf32> to vector<8x648xf32>
    %84 = arith.addf %81, %83 : vector<8x648xf32>
    %cst_32 = arith.constant 0.000000e+00 : f32
    %85 = vector.broadcast %cst_32 : f32 to vector<8x648xf32>
    %86 = arith.maximumf %84, %85 : vector<8x648xf32>
    %cst_33 = arith.constant 0.000000e+00 : f32
    %87 = vector.broadcast %cst_33 : f32 to vector<8x667xf32>
    %c0_34 = arith.constant 0 : index
    %c0_35 = arith.constant 0 : index
    %88 = vector.load %arg14[%c0_34, %c0_35] : memref<8x667xf32, #tpu.memory_space<vmem>>, vector<8x667xf32>
    tpu.vector_store %arg14[%c0_34, %c0_35], %87 {strides = array<i32>} : memref<8x667xf32, #tpu.memory_space<vmem>>, vector<8x667xf32>,
    %c0_36 = arith.constant 0 : index
    %c0_37 = arith.constant 0 : index
    %89 = vector.load %arg14[%c0_36, %c0_37] : memref<8x667xf32, #tpu.memory_space<vmem>>, vector<8x648xf32>
    tpu.vector_store %arg14[%c0_36, %c0_37], %86 {strides = array<i32>} : memref<8x667xf32, #tpu.memory_space<vmem>>, vector<8x648xf32>,
    %c0_38 = arith.constant 0 : index
    %c0_39 = arith.constant 0 : index
    %90 = vector.load %arg14[%c0_38, %c0_39] : memref<8x667xf32, #tpu.memory_space<vmem>>, vector<8x648xf32>
    %c0_40 = arith.constant 0 : index
    %c1_41 = arith.constant 1 : index
    %91 = vector.load %arg14[%c0_40, %c1_41] : memref<8x667xf32, #tpu.memory_space<vmem>>, vector<8x648xf32>
    %92 = arith.maximumf %90, %91 : vector<8x648xf32>
    %c0_42 = arith.constant 0 : index
    %c18_43 = arith.constant 18 : index
    %93 = vector.load %arg14[%c0_42, %c18_43] : memref<8x667xf32, #tpu.memory_space<vmem>>, vector<8x648xf32>
    %c0_44 = arith.constant 0 : index
    %c19_45 = arith.constant 19 : index
    %94 = vector.load %arg14[%c0_44, %c19_45] : memref<8x667xf32, #tpu.memory_space<vmem>>, vector<8x648xf32>
    %95 = arith.maximumf %93, %94 : vector<8x648xf32>
    %96 = arith.maximumf %92, %95 : vector<8x648xf32>
    %c0_46 = arith.constant 0 : index
    %c0_47 = arith.constant 0 : index
    %97 = vector.load %arg3[%c0_46, %c0_47] : memref<648x200xf32, #tpu.memory_space<vmem>>, vector<648x200xf32>
    %cst_48 = arith.constant dense<0.000000e+00> : vector<8x200xf32>
    %98 = tpu.matmul %96, %97, %cst_48 {dimension_numbers = #tpu.dot_dimension_numbers<[1], [0], [0], [1], [0, 0, 1, 1], [], []>} : vector<8x648xf32>, vector<648x200xf32>, vector<8x200xf32> -> vector<8x200xf32>
    %cst_49 = arith.constant 0.000000e+00 : bf16
    %99 = vector.broadcast %cst_49 : bf16 to vector<8x222xbf16>
    %c0_50 = arith.constant 0 : index
    %c0_51 = arith.constant 0 : index
    %100 = vector.load %arg15[%c0_50, %c0_51] : memref<8x222xbf16, #tpu.memory_space<vmem>>, vector<8x222xbf16>
    tpu.vector_store %arg15[%c0_50, %c0_51], %99 {strides = array<i32>} : memref<8x222xbf16, #tpu.memory_space<vmem>>, vector<8x222xbf16>,
    %101 = arith.truncf %98 : vector<8x200xf32> to vector<8x200xbf16>
    %c0_52 = arith.constant 0 : index
    %c11 = arith.constant 11 : index
    %102 = vector.load %arg15[%c0_52, %c11] : memref<8x222xbf16, #tpu.memory_space<vmem>>, vector<8x200xbf16>
    tpu.vector_store %arg15[%c0_52, %c11], %101 {strides = array<i32>} : memref<8x222xbf16, #tpu.memory_space<vmem>>, vector<8x200xbf16>,
    %cst_53 = arith.constant 0.000000e+00 : f32
    %103 = vector.broadcast %cst_53 : f32 to vector<16x200xf32>
    %c0_54 = arith.constant 0 : index
    %c0_55 = arith.constant 0 : index
    %104 = vector.load %arg15[%c0_54, %c0_55] : memref<8x222xbf16, #tpu.memory_space<vmem>>, vector<8x200xbf16>
    %c0_56 = arith.constant 0 : index
    %c0_57 = arith.constant 0 : index
    %c0_58 = arith.constant 0 : index
    %105 = vector.load %arg4[%c0_56, %c0_57, %c0_58] : memref<9x16x8xbf16, #tpu.memory_space<vmem>>, vector<1x16x8xbf16>
    %106 = vector.shape_cast %105 : vector<1x16x8xbf16> to vector<16x8xbf16>
    %cst_59 = arith.constant dense<0.000000e+00> : vector<16x200xf32>
    %107 = tpu.matmul %106, %104, %cst_59 {dimension_numbers = #tpu.dot_dimension_numbers<[1], [0], [0], [1], [0, 0, 1, 1], [], []>} : vector<16x8xbf16>, vector<8x200xbf16>, vector<16x200xf32> -> vector<16x200xf32>
    %108 = arith.addf %103, %107 : vector<16x200xf32>
    %c0_60 = arith.constant 0 : index
    %c1_61 = arith.constant 1 : index
    %109 = vector.load %arg15[%c0_60, %c1_61] : memref<8x222xbf16, #tpu.memory_space<vmem>>, vector<8x200xbf16>
    %c1_62 = arith.constant 1 : index
    %c0_63 = arith.constant 0 : index
    %c0_64 = arith.constant 0 : index
    %110 = vector.load %arg4[%c1_62, %c0_63, %c0_64] : memref<9x16x8xbf16, #tpu.memory_space<vmem>>, vector<1x16x8xbf16>
    %111 = vector.shape_cast %110 : vector<1x16x8xbf16> to vector<16x8xbf16>
    %cst_65 = arith.constant dense<0.000000e+00> : vector<16x200xf32>
    %112 = tpu.matmul %111, %109, %cst_65 {dimension_numbers = #tpu.dot_dimension_numbers<[1], [0], [0], [1], [0, 0, 1, 1], [], []>} : vector<16x8xbf16>, vector<8x200xbf16>, vector<16x200xf32> -> vector<16x200xf32>
    %113 = arith.addf %108, %112 : vector<16x200xf32>
    %c0_66 = arith.constant 0 : index
    %c2_67 = arith.constant 2 : index
    %114 = vector.load %arg15[%c0_66, %c2_67] : memref<8x222xbf16, #tpu.memory_space<vmem>>, vector<8x200xbf16>
    %c2_68 = arith.constant 2 : index
    %c0_69 = arith.constant 0 : index
    %c0_70 = arith.constant 0 : index
    %115 = vector.load %arg4[%c2_68, %c0_69, %c0_70] : memref<9x16x8xbf16, #tpu.memory_space<vmem>>, vector<1x16x8xbf16>
    %116 = vector.shape_cast %115 : vector<1x16x8xbf16> to vector<16x8xbf16>
    %cst_71 = arith.constant dense<0.000000e+00> : vector<16x200xf32>
    %117 = tpu.matmul %116, %114, %cst_71 {dimension_numbers = #tpu.dot_dimension_numbers<[1], [0], [0], [1], [0, 0, 1, 1], [], []>} : vector<16x8xbf16>, vector<8x200xbf16>, vector<16x200xf32> -> vector<16x200xf32>
    %118 = arith.addf %113, %117 : vector<16x200xf32>
    %c0_72 = arith.constant 0 : index
    %c10 = arith.constant 10 : index
    %119 = vector.load %arg15[%c0_72, %c10] : memref<8x222xbf16, #tpu.memory_space<vmem>>, vector<8x200xbf16>
    %c3_73 = arith.constant 3 : index
    %c0_74 = arith.constant 0 : index
    %c0_75 = arith.constant 0 : index
    %120 = vector.load %arg4[%c3_73, %c0_74, %c0_75] : memref<9x16x8xbf16, #tpu.memory_space<vmem>>, vector<1x16x8xbf16>
    %121 = vector.shape_cast %120 : vector<1x16x8xbf16> to vector<16x8xbf16>
    %cst_76 = arith.constant dense<0.000000e+00> : vector<16x200xf32>
    %122 = tpu.matmul %121, %119, %cst_76 {dimension_numbers = #tpu.dot_dimension_numbers<[1], [0], [0], [1], [0, 0, 1, 1], [], []>} : vector<16x8xbf16>, vector<8x200xbf16>, vector<16x200xf32> -> vector<16x200xf32>
    %123 = arith.addf %118, %122 : vector<16x200xf32>
    %c0_77 = arith.constant 0 : index
    %c11_78 = arith.constant 11 : index
    %124 = vector.load %arg15[%c0_77, %c11_78] : memref<8x222xbf16, #tpu.memory_space<vmem>>, vector<8x200xbf16>
    %c4_79 = arith.constant 4 : index
    %c0_80 = arith.constant 0 : index
    %c0_81 = arith.constant 0 : index
    %125 = vector.load %arg4[%c4_79, %c0_80, %c0_81] : memref<9x16x8xbf16, #tpu.memory_space<vmem>>, vector<1x16x8xbf16>
    %126 = vector.shape_cast %125 : vector<1x16x8xbf16> to vector<16x8xbf16>
    %cst_82 = arith.constant dense<0.000000e+00> : vector<16x200xf32>
    %127 = tpu.matmul %126, %124, %cst_82 {dimension_numbers = #tpu.dot_dimension_numbers<[1], [0], [0], [1], [0, 0, 1, 1], [], []>} : vector<16x8xbf16>, vector<8x200xbf16>, vector<16x200xf32> -> vector<16x200xf32>
    %128 = arith.addf %123, %127 : vector<16x200xf32>
    %c0_83 = arith.constant 0 : index
    %c12 = arith.constant 12 : index
    %129 = vector.load %arg15[%c0_83, %c12] : memref<8x222xbf16, #tpu.memory_space<vmem>>, vector<8x200xbf16>
    %c5_84 = arith.constant 5 : index
    %c0_85 = arith.constant 0 : index
    %c0_86 = arith.constant 0 : index
    %130 = vector.load %arg4[%c5_84, %c0_85, %c0_86] : memref<9x16x8xbf16, #tpu.memory_space<vmem>>, vector<1x16x8xbf16>
    %131 = vector.shape_cast %130 : vector<1x16x8xbf16> to vector<16x8xbf16>
    %cst_87 = arith.constant dense<0.000000e+00> : vector<16x200xf32>
    %132 = tpu.matmul %131, %129, %cst_87 {dimension_numbers = #tpu.dot_dimension_numbers<[1], [0], [0], [1], [0, 0, 1, 1], [], []>} : vector<16x8xbf16>, vector<8x200xbf16>, vector<16x200xf32> -> vector<16x200xf32>
    %133 = arith.addf %128, %132 : vector<16x200xf32>
    %c0_88 = arith.constant 0 : index
    %c20_89 = arith.constant 20 : index
    %134 = vector.load %arg15[%c0_88, %c20_89] : memref<8x222xbf16, #tpu.memory_space<vmem>>, vector<8x200xbf16>
    %c6_90 = arith.constant 6 : index
    %c0_91 = arith.constant 0 : index
    %c0_92 = arith.constant 0 : index
    %135 = vector.load %arg4[%c6_90, %c0_91, %c0_92] : memref<9x16x8xbf16, #tpu.memory_space<vmem>>, vector<1x16x8xbf16>
    %136 = vector.shape_cast %135 : vector<1x16x8xbf16> to vector<16x8xbf16>
    %cst_93 = arith.constant dense<0.000000e+00> : vector<16x200xf32>
    %137 = tpu.matmul %136, %134, %cst_93 {dimension_numbers = #tpu.dot_dimension_numbers<[1], [0], [0], [1], [0, 0, 1, 1], [], []>} : vector<16x8xbf16>, vector<8x200xbf16>, vector<16x200xf32> -> vector<16x200xf32>
    %138 = arith.addf %133, %137 : vector<16x200xf32>
    %c0_94 = arith.constant 0 : index
    %c21 = arith.constant 21 : index
    %139 = vector.load %arg15[%c0_94, %c21] : memref<8x222xbf16, #tpu.memory_space<vmem>>, vector<8x200xbf16>
    %c7_95 = arith.constant 7 : index
    %c0_96 = arith.constant 0 : index
    %c0_97 = arith.constant 0 : index
    %140 = vector.load %arg4[%c7_95, %c0_96, %c0_97] : memref<9x16x8xbf16, #tpu.memory_space<vmem>>, vector<1x16x8xbf16>
    %141 = vector.shape_cast %140 : vector<1x16x8xbf16> to vector<16x8xbf16>
    %cst_98 = arith.constant dense<0.000000e+00> : vector<16x200xf32>
    %142 = tpu.matmul %141, %139, %cst_98 {dimension_numbers = #tpu.dot_dimension_numbers<[1], [0], [0], [1], [0, 0, 1, 1], [], []>} : vector<16x8xbf16>, vector<8x200xbf16>, vector<16x200xf32> -> vector<16x200xf32>
    %143 = arith.addf %138, %142 : vector<16x200xf32>
    %c0_99 = arith.constant 0 : index
    %c22 = arith.constant 22 : index
    %144 = vector.load %arg15[%c0_99, %c22] : memref<8x222xbf16, #tpu.memory_space<vmem>>, vector<8x200xbf16>
    %c8_100 = arith.constant 8 : index
    %c0_101 = arith.constant 0 : index
    %c0_102 = arith.constant 0 : index
    %145 = vector.load %arg4[%c8_100, %c0_101, %c0_102] : memref<9x16x8xbf16, #tpu.memory_space<vmem>>, vector<1x16x8xbf16>
    %146 = vector.shape_cast %145 : vector<1x16x8xbf16> to vector<16x8xbf16>
    %cst_103 = arith.constant dense<0.000000e+00> : vector<16x200xf32>
    %147 = tpu.matmul %146, %144, %cst_103 {dimension_numbers = #tpu.dot_dimension_numbers<[1], [0], [0], [1], [0, 0, 1, 1], [], []>} : vector<16x8xbf16>, vector<8x200xbf16>, vector<16x200xf32> -> vector<16x200xf32>
    %148 = arith.addf %143, %147 : vector<16x200xf32>
    %c0_104 = arith.constant 0 : index
    %c0_105 = arith.constant 0 : index
    %149 = vector.load %arg5[%c0_104, %c0_105] : memref<16x1xf32, #tpu.memory_space<vmem>>, vector<16x1xf32>
    %150 = vector.broadcast %149 : vector<16x1xf32> to vector<16x200xf32>
    %151 = arith.addf %148, %150 : vector<16x200xf32>
    %cst_106 = arith.constant 0.000000e+00 : f32
    %152 = vector.broadcast %cst_106 : f32 to vector<16x200xf32>
    %153 = arith.maximumf %151, %152 : vector<16x200xf32>
    %cst_107 = arith.constant 0.000000e+00 : f32
    %154 = vector.broadcast %cst_107 : f32 to vector<16x211xf32>
    %c0_108 = arith.constant 0 : index
    %c0_109 = arith.constant 0 : index
    %155 = vector.load %arg16[%c0_108, %c0_109] : memref<16x211xf32, #tpu.memory_space<vmem>>, vector<16x211xf32>
    tpu.vector_store %arg16[%c0_108, %c0_109], %154 {strides = array<i32>} : memref<16x211xf32, #tpu.memory_space<vmem>>, vector<16x211xf32>,
    %c0_110 = arith.constant 0 : index
    %c0_111 = arith.constant 0 : index
    %156 = vector.load %arg16[%c0_110, %c0_111] : memref<16x211xf32, #tpu.memory_space<vmem>>, vector<16x200xf32>
    tpu.vector_store %arg16[%c0_110, %c0_111], %153 {strides = array<i32>} : memref<16x211xf32, #tpu.memory_space<vmem>>, vector<16x200xf32>,
    %c0_112 = arith.constant 0 : index
    %c0_113 = arith.constant 0 : index
    %157 = vector.load %arg16[%c0_112, %c0_113] : memref<16x211xf32, #tpu.memory_space<vmem>>, vector<16x200xf32>
    %c0_114 = arith.constant 0 : index
    %c1_115 = arith.constant 1 : index
    %158 = vector.load %arg16[%c0_114, %c1_115] : memref<16x211xf32, #tpu.memory_space<vmem>>, vector<16x200xf32>
    %159 = arith.maximumf %157, %158 : vector<16x200xf32>
    %c0_116 = arith.constant 0 : index
    %c10_117 = arith.constant 10 : index
    %160 = vector.load %arg16[%c0_116, %c10_117] : memref<16x211xf32, #tpu.memory_space<vmem>>, vector<16x200xf32>
    %c0_118 = arith.constant 0 : index
    %c11_119 = arith.constant 11 : index
    %161 = vector.load %arg16[%c0_118, %c11_119] : memref<16x211xf32, #tpu.memory_space<vmem>>, vector<16x200xf32>
    %162 = arith.maximumf %160, %161 : vector<16x200xf32>
    %163 = arith.maximumf %159, %162 : vector<16x200xf32>
    %c0_120 = arith.constant 0 : index
    %c0_121 = arith.constant 0 : index
    %164 = vector.load %arg6[%c0_120, %c0_121] : memref<200x72xf32, #tpu.memory_space<vmem>>, vector<200x72xf32>
    %cst_122 = arith.constant dense<0.000000e+00> : vector<16x72xf32>
    %165 = tpu.matmul %163, %164, %cst_122 {dimension_numbers = #tpu.dot_dimension_numbers<[1], [0], [0], [1], [0, 0, 1, 1], [], []>} : vector<16x200xf32>, vector<200x72xf32>, vector<16x72xf32> -> vector<16x72xf32>
    %cst_123 = arith.constant 0.000000e+00 : bf16
    %166 = vector.broadcast %cst_123 : bf16 to vector<16x86xbf16>
    %c0_124 = arith.constant 0 : index
    %c0_125 = arith.constant 0 : index
    %167 = vector.load %arg17[%c0_124, %c0_125] : memref<16x86xbf16, #tpu.memory_space<vmem>>, vector<16x86xbf16>
    tpu.vector_store %arg17[%c0_124, %c0_125], %166 {strides = array<i32>} : memref<16x86xbf16, #tpu.memory_space<vmem>>, vector<16x86xbf16>,
    %168 = arith.truncf %165 : vector<16x72xf32> to vector<16x72xbf16>
    %c0_126 = arith.constant 0 : index
    %c7_127 = arith.constant 7 : index
    %169 = vector.load %arg17[%c0_126, %c7_127] : memref<16x86xbf16, #tpu.memory_space<vmem>>, vector<16x72xbf16>
    tpu.vector_store %arg17[%c0_126, %c7_127], %168 {strides = array<i32>} : memref<16x86xbf16, #tpu.memory_space<vmem>>, vector<16x72xbf16>,
    %cst_128 = arith.constant 0.000000e+00 : f32
    %170 = vector.broadcast %cst_128 : f32 to vector<32x72xf32>
    %c0_129 = arith.constant 0 : index
    %c0_130 = arith.constant 0 : index
    %171 = vector.load %arg17[%c0_129, %c0_130] : memref<16x86xbf16, #tpu.memory_space<vmem>>, vector<16x72xbf16>
    %c0_131 = arith.constant 0 : index
    %c0_132 = arith.constant 0 : index
    %c0_133 = arith.constant 0 : index
    %172 = vector.load %arg7[%c0_131, %c0_132, %c0_133] : memref<9x32x16xbf16, #tpu.memory_space<vmem>>, vector<1x32x16xbf16>
    %173 = vector.shape_cast %172 : vector<1x32x16xbf16> to vector<32x16xbf16>
    %cst_134 = arith.constant dense<0.000000e+00> : vector<32x72xf32>
    %174 = tpu.matmul %173, %171, %cst_134 {dimension_numbers = #tpu.dot_dimension_numbers<[1], [0], [0], [1], [0, 0, 1, 1], [], []>} : vector<32x16xbf16>, vector<16x72xbf16>, vector<32x72xf32> -> vector<32x72xf32>
    %175 = arith.addf %170, %174 : vector<32x72xf32>
    %c0_135 = arith.constant 0 : index
    %c1_136 = arith.constant 1 : index
    %176 = vector.load %arg17[%c0_135, %c1_136] : memref<16x86xbf16, #tpu.memory_space<vmem>>, vector<16x72xbf16>
    %c1_137 = arith.constant 1 : index
    %c0_138 = arith.constant 0 : index
    %c0_139 = arith.constant 0 : index
    %177 = vector.load %arg7[%c1_137, %c0_138, %c0_139] : memref<9x32x16xbf16, #tpu.memory_space<vmem>>, vector<1x32x16xbf16>
    %178 = vector.shape_cast %177 : vector<1x32x16xbf16> to vector<32x16xbf16>
    %cst_140 = arith.constant dense<0.000000e+00> : vector<32x72xf32>
    %179 = tpu.matmul %178, %176, %cst_140 {dimension_numbers = #tpu.dot_dimension_numbers<[1], [0], [0], [1], [0, 0, 1, 1], [], []>} : vector<32x16xbf16>, vector<16x72xbf16>, vector<32x72xf32> -> vector<32x72xf32>
    %180 = arith.addf %175, %179 : vector<32x72xf32>
    %c0_141 = arith.constant 0 : index
    %c2_142 = arith.constant 2 : index
    %181 = vector.load %arg17[%c0_141, %c2_142] : memref<16x86xbf16, #tpu.memory_space<vmem>>, vector<16x72xbf16>
    %c2_143 = arith.constant 2 : index
    %c0_144 = arith.constant 0 : index
    %c0_145 = arith.constant 0 : index
    %182 = vector.load %arg7[%c2_143, %c0_144, %c0_145] : memref<9x32x16xbf16, #tpu.memory_space<vmem>>, vector<1x32x16xbf16>
    %183 = vector.shape_cast %182 : vector<1x32x16xbf16> to vector<32x16xbf16>
    %cst_146 = arith.constant dense<0.000000e+00> : vector<32x72xf32>
    %184 = tpu.matmul %183, %181, %cst_146 {dimension_numbers = #tpu.dot_dimension_numbers<[1], [0], [0], [1], [0, 0, 1, 1], [], []>} : vector<32x16xbf16>, vector<16x72xbf16>, vector<32x72xf32> -> vector<32x72xf32>
    %185 = arith.addf %180, %184 : vector<32x72xf32>
    %c0_147 = arith.constant 0 : index
    %c6_148 = arith.constant 6 : index
    %186 = vector.load %arg17[%c0_147, %c6_148] : memref<16x86xbf16, #tpu.memory_space<vmem>>, vector<16x72xbf16>
    %c3_149 = arith.constant 3 : index
    %c0_150 = arith.constant 0 : index
    %c0_151 = arith.constant 0 : index
    %187 = vector.load %arg7[%c3_149, %c0_150, %c0_151] : memref<9x32x16xbf16, #tpu.memory_space<vmem>>, vector<1x32x16xbf16>
    %188 = vector.shape_cast %187 : vector<1x32x16xbf16> to vector<32x16xbf16>
    %cst_152 = arith.constant dense<0.000000e+00> : vector<32x72xf32>
    %189 = tpu.matmul %188, %186, %cst_152 {dimension_numbers = #tpu.dot_dimension_numbers<[1], [0], [0], [1], [0, 0, 1, 1], [], []>} : vector<32x16xbf16>, vector<16x72xbf16>, vector<32x72xf32> -> vector<32x72xf32>
    %190 = arith.addf %185, %189 : vector<32x72xf32>
    %c0_153 = arith.constant 0 : index
    %c7_154 = arith.constant 7 : index
    %191 = vector.load %arg17[%c0_153, %c7_154] : memref<16x86xbf16, #tpu.memory_space<vmem>>, vector<16x72xbf16>
    %c4_155 = arith.constant 4 : index
    %c0_156 = arith.constant 0 : index
    %c0_157 = arith.constant 0 : index
    %192 = vector.load %arg7[%c4_155, %c0_156, %c0_157] : memref<9x32x16xbf16, #tpu.memory_space<vmem>>, vector<1x32x16xbf16>
    %193 = vector.shape_cast %192 : vector<1x32x16xbf16> to vector<32x16xbf16>
    %cst_158 = arith.constant dense<0.000000e+00> : vector<32x72xf32>
    %194 = tpu.matmul %193, %191, %cst_158 {dimension_numbers = #tpu.dot_dimension_numbers<[1], [0], [0], [1], [0, 0, 1, 1], [], []>} : vector<32x16xbf16>, vector<16x72xbf16>, vector<32x72xf32> -> vector<32x72xf32>
    %195 = arith.addf %190, %194 : vector<32x72xf32>
    %c0_159 = arith.constant 0 : index
    %c8_160 = arith.constant 8 : index
    %196 = vector.load %arg17[%c0_159, %c8_160] : memref<16x86xbf16, #tpu.memory_space<vmem>>, vector<16x72xbf16>
    %c5_161 = arith.constant 5 : index
    %c0_162 = arith.constant 0 : index
    %c0_163 = arith.constant 0 : index
    %197 = vector.load %arg7[%c5_161, %c0_162, %c0_163] : memref<9x32x16xbf16, #tpu.memory_space<vmem>>, vector<1x32x16xbf16>
    %198 = vector.shape_cast %197 : vector<1x32x16xbf16> to vector<32x16xbf16>
    %cst_164 = arith.constant dense<0.000000e+00> : vector<32x72xf32>
    %199 = tpu.matmul %198, %196, %cst_164 {dimension_numbers = #tpu.dot_dimension_numbers<[1], [0], [0], [1], [0, 0, 1, 1], [], []>} : vector<32x16xbf16>, vector<16x72xbf16>, vector<32x72xf32> -> vector<32x72xf32>
    %200 = arith.addf %195, %199 : vector<32x72xf32>
    %c0_165 = arith.constant 0 : index
    %c12_166 = arith.constant 12 : index
    %201 = vector.load %arg17[%c0_165, %c12_166] : memref<16x86xbf16, #tpu.memory_space<vmem>>, vector<16x72xbf16>
    %c6_167 = arith.constant 6 : index
    %c0_168 = arith.constant 0 : index
    %c0_169 = arith.constant 0 : index
    %202 = vector.load %arg7[%c6_167, %c0_168, %c0_169] : memref<9x32x16xbf16, #tpu.memory_space<vmem>>, vector<1x32x16xbf16>
    %203 = vector.shape_cast %202 : vector<1x32x16xbf16> to vector<32x16xbf16>
    %cst_170 = arith.constant dense<0.000000e+00> : vector<32x72xf32>
    %204 = tpu.matmul %203, %201, %cst_170 {dimension_numbers = #tpu.dot_dimension_numbers<[1], [0], [0], [1], [0, 0, 1, 1], [], []>} : vector<32x16xbf16>, vector<16x72xbf16>, vector<32x72xf32> -> vector<32x72xf32>
    %205 = arith.addf %200, %204 : vector<32x72xf32>
    %c0_171 = arith.constant 0 : index
    %c13 = arith.constant 13 : index
    %206 = vector.load %arg17[%c0_171, %c13] : memref<16x86xbf16, #tpu.memory_space<vmem>>, vector<16x72xbf16>
    %c7_172 = arith.constant 7 : index
    %c0_173 = arith.constant 0 : index
    %c0_174 = arith.constant 0 : index
    %207 = vector.load %arg7[%c7_172, %c0_173, %c0_174] : memref<9x32x16xbf16, #tpu.memory_space<vmem>>, vector<1x32x16xbf16>
    %208 = vector.shape_cast %207 : vector<1x32x16xbf16> to vector<32x16xbf16>
    %cst_175 = arith.constant dense<0.000000e+00> : vector<32x72xf32>
    %209 = tpu.matmul %208, %206, %cst_175 {dimension_numbers = #tpu.dot_dimension_numbers<[1], [0], [0], [1], [0, 0, 1, 1], [], []>} : vector<32x16xbf16>, vector<16x72xbf16>, vector<32x72xf32> -> vector<32x72xf32>
    %210 = arith.addf %205, %209 : vector<32x72xf32>
    %c0_176 = arith.constant 0 : index
    %c14 = arith.constant 14 : index
    %211 = vector.load %arg17[%c0_176, %c14] : memref<16x86xbf16, #tpu.memory_space<vmem>>, vector<16x72xbf16>
    %c8_177 = arith.constant 8 : index
    %c0_178 = arith.constant 0 : index
    %c0_179 = arith.constant 0 : index
    %212 = vector.load %arg7[%c8_177, %c0_178, %c0_179] : memref<9x32x16xbf16, #tpu.memory_space<vmem>>, vector<1x32x16xbf16>
    %213 = vector.shape_cast %212 : vector<1x32x16xbf16> to vector<32x16xbf16>
    %cst_180 = arith.constant dense<0.000000e+00> : vector<32x72xf32>
    %214 = tpu.matmul %213, %211, %cst_180 {dimension_numbers = #tpu.dot_dimension_numbers<[1], [0], [0], [1], [0, 0, 1, 1], [], []>} : vector<32x16xbf16>, vector<16x72xbf16>, vector<32x72xf32> -> vector<32x72xf32>
    %215 = arith.addf %210, %214 : vector<32x72xf32>
    %c0_181 = arith.constant 0 : index
    %c0_182 = arith.constant 0 : index
    %216 = vector.load %arg8[%c0_181, %c0_182] : memref<32x1xf32, #tpu.memory_space<vmem>>, vector<32x1xf32>
    %217 = vector.broadcast %216 : vector<32x1xf32> to vector<32x72xf32>
    %218 = arith.addf %215, %217 : vector<32x72xf32>
    %cst_183 = arith.constant 0.000000e+00 : f32
    %219 = vector.broadcast %cst_183 : f32 to vector<32x72xf32>
    %220 = arith.maximumf %218, %219 : vector<32x72xf32>
    %221 = arith.truncf %220 : vector<32x72xf32> to vector<32x72xbf16>
    %cst_184 = arith.constant 0.000000e+00 : f32
    %222 = vector.broadcast %cst_184 : f32 to vector<10x72xf32>
    %c0_185 = arith.constant 0 : index
    %c0_186 = arith.constant 0 : index
    %c0_187 = arith.constant 0 : index
    %223 = vector.load %arg9[%c0_185, %c0_186, %c0_187] : memref<16x10x32xbf16, #tpu.memory_space<vmem>>, vector<1x10x32xbf16>
    %224 = vector.shape_cast %223 : vector<1x10x32xbf16> to vector<10x32xbf16>
    %cst_188 = arith.constant dense<0.000000e+00> : vector<10x72xf32>
    %225 = tpu.matmul %224, %221, %cst_188 {dimension_numbers = #tpu.dot_dimension_numbers<[1], [0], [0], [1], [0, 0, 1, 1], [], []>} : vector<10x32xbf16>, vector<32x72xbf16>, vector<10x72xf32> -> vector<10x72xf32>
    %c0_189 = arith.constant 0 : index
    %c0_190 = arith.constant 0 : index
    %c0_191 = arith.constant 0 : index
    %226 = vector.load %arg10[%c0_189, %c0_190, %c0_191] : memref<16x1x72xf32, #tpu.memory_space<vmem>>, vector<1x1x72xf32>
    %227 = vector.shape_cast %226 : vector<1x1x72xf32> to vector<1x72xf32>
    %228 = vector.broadcast %227 : vector<1x72xf32> to vector<10x72xf32>
    %229 = arith.mulf %225, %228 : vector<10x72xf32>
    %230 = arith.addf %222, %229 : vector<10x72xf32>
    %c1_192 = arith.constant 1 : index
    %c0_193 = arith.constant 0 : index
    %c0_194 = arith.constant 0 : index
    %231 = vector.load %arg9[%c1_192, %c0_193, %c0_194] : memref<16x10x32xbf16, #tpu.memory_space<vmem>>, vector<1x10x32xbf16>
    %232 = vector.shape_cast %231 : vector<1x10x32xbf16> to vector<10x32xbf16>
    %cst_195 = arith.constant dense<0.000000e+00> : vector<10x72xf32>
    %233 = tpu.matmul %232, %221, %cst_195 {dimension_numbers = #tpu.dot_dimension_numbers<[1], [0], [0], [1], [0, 0, 1, 1], [], []>} : vector<10x32xbf16>, vector<32x72xbf16>, vector<10x72xf32> -> vector<10x72xf32>
    %c1_196 = arith.constant 1 : index
    %c0_197 = arith.constant 0 : index
    %c0_198 = arith.constant 0 : index
    %234 = vector.load %arg10[%c1_196, %c0_197, %c0_198] : memref<16x1x72xf32, #tpu.memory_space<vmem>>, vector<1x1x72xf32>
    %235 = vector.shape_cast %234 : vector<1x1x72xf32> to vector<1x72xf32>
    %236 = vector.broadcast %235 : vector<1x72xf32> to vector<10x72xf32>
    %237 = arith.mulf %233, %236 : vector<10x72xf32>
    %238 = arith.addf %230, %237 : vector<10x72xf32>
    %c2_199 = arith.constant 2 : index
    %c0_200 = arith.constant 0 : index
    %c0_201 = arith.constant 0 : index
    %239 = vector.load %arg9[%c2_199, %c0_200, %c0_201] : memref<16x10x32xbf16, #tpu.memory_space<vmem>>, vector<1x10x32xbf16>
    %240 = vector.shape_cast %239 : vector<1x10x32xbf16> to vector<10x32xbf16>
    %cst_202 = arith.constant dense<0.000000e+00> : vector<10x72xf32>
    %241 = tpu.matmul %240, %221, %cst_202 {dimension_numbers = #tpu.dot_dimension_numbers<[1], [0], [0], [1], [0, 0, 1, 1], [], []>} : vector<10x32xbf16>, vector<32x72xbf16>, vector<10x72xf32> -> vector<10x72xf32>
    %c2_203 = arith.constant 2 : index
    %c0_204 = arith.constant 0 : index
    %c0_205 = arith.constant 0 : index
    %242 = vector.load %arg10[%c2_203, %c0_204, %c0_205] : memref<16x1x72xf32, #tpu.memory_space<vmem>>, vector<1x1x72xf32>
    %243 = vector.shape_cast %242 : vector<1x1x72xf32> to vector<1x72xf32>
    %244 = vector.broadcast %243 : vector<1x72xf32> to vector<10x72xf32>
    %245 = arith.mulf %241, %244 : vector<10x72xf32>
    %246 = arith.addf %238, %245 : vector<10x72xf32>
    %c3_206 = arith.constant 3 : index
    %c0_207 = arith.constant 0 : index
    %c0_208 = arith.constant 0 : index
    %247 = vector.load %arg9[%c3_206, %c0_207, %c0_208] : memref<16x10x32xbf16, #tpu.memory_space<vmem>>, vector<1x10x32xbf16>
    %248 = vector.shape_cast %247 : vector<1x10x32xbf16> to vector<10x32xbf16>
    %cst_209 = arith.constant dense<0.000000e+00> : vector<10x72xf32>
    %249 = tpu.matmul %248, %221, %cst_209 {dimension_numbers = #tpu.dot_dimension_numbers<[1], [0], [0], [1], [0, 0, 1, 1], [], []>} : vector<10x32xbf16>, vector<32x72xbf16>, vector<10x72xf32> -> vector<10x72xf32>
    %c3_210 = arith.constant 3 : index
    %c0_211 = arith.constant 0 : index
    %c0_212 = arith.constant 0 : index
    %250 = vector.load %arg10[%c3_210, %c0_211, %c0_212] : memref<16x1x72xf32, #tpu.memory_space<vmem>>, vector<1x1x72xf32>
    %251 = vector.shape_cast %250 : vector<1x1x72xf32> to vector<1x72xf32>
    %252 = vector.broadcast %251 : vector<1x72xf32> to vector<10x72xf32>
    %253 = arith.mulf %249, %252 : vector<10x72xf32>
    %254 = arith.addf %246, %253 : vector<10x72xf32>
    %c4_213 = arith.constant 4 : index
    %c0_214 = arith.constant 0 : index
    %c0_215 = arith.constant 0 : index
    %255 = vector.load %arg9[%c4_213, %c0_214, %c0_215] : memref<16x10x32xbf16, #tpu.memory_space<vmem>>, vector<1x10x32xbf16>
    %256 = vector.shape_cast %255 : vector<1x10x32xbf16> to vector<10x32xbf16>
    %cst_216 = arith.constant dense<0.000000e+00> : vector<10x72xf32>
    %257 = tpu.matmul %256, %221, %cst_216 {dimension_numbers = #tpu.dot_dimension_numbers<[1], [0], [0], [1], [0, 0, 1, 1], [], []>} : vector<10x32xbf16>, vector<32x72xbf16>, vector<10x72xf32> -> vector<10x72xf32>
    %c4_217 = arith.constant 4 : index
    %c0_218 = arith.constant 0 : index
    %c0_219 = arith.constant 0 : index
    %258 = vector.load %arg10[%c4_217, %c0_218, %c0_219] : memref<16x1x72xf32, #tpu.memory_space<vmem>>, vector<1x1x72xf32>
    %259 = vector.shape_cast %258 : vector<1x1x72xf32> to vector<1x72xf32>
    %260 = vector.broadcast %259 : vector<1x72xf32> to vector<10x72xf32>
    %261 = arith.mulf %257, %260 : vector<10x72xf32>
    %262 = arith.addf %254, %261 : vector<10x72xf32>
    %c5_220 = arith.constant 5 : index
    %c0_221 = arith.constant 0 : index
    %c0_222 = arith.constant 0 : index
    %263 = vector.load %arg9[%c5_220, %c0_221, %c0_222] : memref<16x10x32xbf16, #tpu.memory_space<vmem>>, vector<1x10x32xbf16>
    %264 = vector.shape_cast %263 : vector<1x10x32xbf16> to vector<10x32xbf16>
    %cst_223 = arith.constant dense<0.000000e+00> : vector<10x72xf32>
    %265 = tpu.matmul %264, %221, %cst_223 {dimension_numbers = #tpu.dot_dimension_numbers<[1], [0], [0], [1], [0, 0, 1, 1], [], []>} : vector<10x32xbf16>, vector<32x72xbf16>, vector<10x72xf32> -> vector<10x72xf32>
    %c5_224 = arith.constant 5 : index
    %c0_225 = arith.constant 0 : index
    %c0_226 = arith.constant 0 : index
    %266 = vector.load %arg10[%c5_224, %c0_225, %c0_226] : memref<16x1x72xf32, #tpu.memory_space<vmem>>, vector<1x1x72xf32>
    %267 = vector.shape_cast %266 : vector<1x1x72xf32> to vector<1x72xf32>
    %268 = vector.broadcast %267 : vector<1x72xf32> to vector<10x72xf32>
    %269 = arith.mulf %265, %268 : vector<10x72xf32>
    %270 = arith.addf %262, %269 : vector<10x72xf32>
    %c6_227 = arith.constant 6 : index
    %c0_228 = arith.constant 0 : index
    %c0_229 = arith.constant 0 : index
    %271 = vector.load %arg9[%c6_227, %c0_228, %c0_229] : memref<16x10x32xbf16, #tpu.memory_space<vmem>>, vector<1x10x32xbf16>
    %272 = vector.shape_cast %271 : vector<1x10x32xbf16> to vector<10x32xbf16>
    %cst_230 = arith.constant dense<0.000000e+00> : vector<10x72xf32>
    %273 = tpu.matmul %272, %221, %cst_230 {dimension_numbers = #tpu.dot_dimension_numbers<[1], [0], [0], [1], [0, 0, 1, 1], [], []>} : vector<10x32xbf16>, vector<32x72xbf16>, vector<10x72xf32> -> vector<10x72xf32>
    %c6_231 = arith.constant 6 : index
    %c0_232 = arith.constant 0 : index
    %c0_233 = arith.constant 0 : index
    %274 = vector.load %arg10[%c6_231, %c0_232, %c0_233] : memref<16x1x72xf32, #tpu.memory_space<vmem>>, vector<1x1x72xf32>
    %275 = vector.shape_cast %274 : vector<1x1x72xf32> to vector<1x72xf32>
    %276 = vector.broadcast %275 : vector<1x72xf32> to vector<10x72xf32>
    %277 = arith.mulf %273, %276 : vector<10x72xf32>
    %278 = arith.addf %270, %277 : vector<10x72xf32>
    %c7_234 = arith.constant 7 : index
    %c0_235 = arith.constant 0 : index
    %c0_236 = arith.constant 0 : index
    %279 = vector.load %arg9[%c7_234, %c0_235, %c0_236] : memref<16x10x32xbf16, #tpu.memory_space<vmem>>, vector<1x10x32xbf16>
    %280 = vector.shape_cast %279 : vector<1x10x32xbf16> to vector<10x32xbf16>
    %cst_237 = arith.constant dense<0.000000e+00> : vector<10x72xf32>
    %281 = tpu.matmul %280, %221, %cst_237 {dimension_numbers = #tpu.dot_dimension_numbers<[1], [0], [0], [1], [0, 0, 1, 1], [], []>} : vector<10x32xbf16>, vector<32x72xbf16>, vector<10x72xf32> -> vector<10x72xf32>
    %c7_238 = arith.constant 7 : index
    %c0_239 = arith.constant 0 : index
    %c0_240 = arith.constant 0 : index
    %282 = vector.load %arg10[%c7_238, %c0_239, %c0_240] : memref<16x1x72xf32, #tpu.memory_space<vmem>>, vector<1x1x72xf32>
    %283 = vector.shape_cast %282 : vector<1x1x72xf32> to vector<1x72xf32>
    %284 = vector.broadcast %283 : vector<1x72xf32> to vector<10x72xf32>
    %285 = arith.mulf %281, %284 : vector<10x72xf32>
    %286 = arith.addf %278, %285 : vector<10x72xf32>
    %c8_241 = arith.constant 8 : index
    %c0_242 = arith.constant 0 : index
    %c0_243 = arith.constant 0 : index
    %287 = vector.load %arg9[%c8_241, %c0_242, %c0_243] : memref<16x10x32xbf16, #tpu.memory_space<vmem>>, vector<1x10x32xbf16>
    %288 = vector.shape_cast %287 : vector<1x10x32xbf16> to vector<10x32xbf16>
    %cst_244 = arith.constant dense<0.000000e+00> : vector<10x72xf32>
    %289 = tpu.matmul %288, %221, %cst_244 {dimension_numbers = #tpu.dot_dimension_numbers<[1], [0], [0], [1], [0, 0, 1, 1], [], []>} : vector<10x32xbf16>, vector<32x72xbf16>, vector<10x72xf32> -> vector<10x72xf32>
    %c8_245 = arith.constant 8 : index
    %c0_246 = arith.constant 0 : index
    %c0_247 = arith.constant 0 : index
    %290 = vector.load %arg10[%c8_245, %c0_246, %c0_247] : memref<16x1x72xf32, #tpu.memory_space<vmem>>, vector<1x1x72xf32>
    %291 = vector.shape_cast %290 : vector<1x1x72xf32> to vector<1x72xf32>
    %292 = vector.broadcast %291 : vector<1x72xf32> to vector<10x72xf32>
    %293 = arith.mulf %289, %292 : vector<10x72xf32>
    %294 = arith.addf %286, %293 : vector<10x72xf32>
    %c9 = arith.constant 9 : index
    %c0_248 = arith.constant 0 : index
    %c0_249 = arith.constant 0 : index
    %295 = vector.load %arg9[%c9, %c0_248, %c0_249] : memref<16x10x32xbf16, #tpu.memory_space<vmem>>, vector<1x10x32xbf16>
    %296 = vector.shape_cast %295 : vector<1x10x32xbf16> to vector<10x32xbf16>
    %cst_250 = arith.constant dense<0.000000e+00> : vector<10x72xf32>
    %297 = tpu.matmul %296, %221, %cst_250 {dimension_numbers = #tpu.dot_dimension_numbers<[1], [0], [0], [1], [0, 0, 1, 1], [], []>} : vector<10x32xbf16>, vector<32x72xbf16>, vector<10x72xf32> -> vector<10x72xf32>
    %c9_251 = arith.constant 9 : index
    %c0_252 = arith.constant 0 : index
    %c0_253 = arith.constant 0 : index
    %298 = vector.load %arg10[%c9_251, %c0_252, %c0_253] : memref<16x1x72xf32, #tpu.memory_space<vmem>>, vector<1x1x72xf32>
    %299 = vector.shape_cast %298 : vector<1x1x72xf32> to vector<1x72xf32>
    %300 = vector.broadcast %299 : vector<1x72xf32> to vector<10x72xf32>
    %301 = arith.mulf %297, %300 : vector<10x72xf32>
    %302 = arith.addf %294, %301 : vector<10x72xf32>
    %c10_254 = arith.constant 10 : index
    %c0_255 = arith.constant 0 : index
    %c0_256 = arith.constant 0 : index
    %303 = vector.load %arg9[%c10_254, %c0_255, %c0_256] : memref<16x10x32xbf16, #tpu.memory_space<vmem>>, vector<1x10x32xbf16>
    %304 = vector.shape_cast %303 : vector<1x10x32xbf16> to vector<10x32xbf16>
    %cst_257 = arith.constant dense<0.000000e+00> : vector<10x72xf32>
    %305 = tpu.matmul %304, %221, %cst_257 {dimension_numbers = #tpu.dot_dimension_numbers<[1], [0], [0], [1], [0, 0, 1, 1], [], []>} : vector<10x32xbf16>, vector<32x72xbf16>, vector<10x72xf32> -> vector<10x72xf32>
    %c10_258 = arith.constant 10 : index
    %c0_259 = arith.constant 0 : index
    %c0_260 = arith.constant 0 : index
    %306 = vector.load %arg10[%c10_258, %c0_259, %c0_260] : memref<16x1x72xf32, #tpu.memory_space<vmem>>, vector<1x1x72xf32>
    %307 = vector.shape_cast %306 : vector<1x1x72xf32> to vector<1x72xf32>
    %308 = vector.broadcast %307 : vector<1x72xf32> to vector<10x72xf32>
    %309 = arith.mulf %305, %308 : vector<10x72xf32>
    %310 = arith.addf %302, %309 : vector<10x72xf32>
    %c11_261 = arith.constant 11 : index
    %c0_262 = arith.constant 0 : index
    %c0_263 = arith.constant 0 : index
    %311 = vector.load %arg9[%c11_261, %c0_262, %c0_263] : memref<16x10x32xbf16, #tpu.memory_space<vmem>>, vector<1x10x32xbf16>
    %312 = vector.shape_cast %311 : vector<1x10x32xbf16> to vector<10x32xbf16>
    %cst_264 = arith.constant dense<0.000000e+00> : vector<10x72xf32>
    %313 = tpu.matmul %312, %221, %cst_264 {dimension_numbers = #tpu.dot_dimension_numbers<[1], [0], [0], [1], [0, 0, 1, 1], [], []>} : vector<10x32xbf16>, vector<32x72xbf16>, vector<10x72xf32> -> vector<10x72xf32>
    %c11_265 = arith.constant 11 : index
    %c0_266 = arith.constant 0 : index
    %c0_267 = arith.constant 0 : index
    %314 = vector.load %arg10[%c11_265, %c0_266, %c0_267] : memref<16x1x72xf32, #tpu.memory_space<vmem>>, vector<1x1x72xf32>
    %315 = vector.shape_cast %314 : vector<1x1x72xf32> to vector<1x72xf32>
    %316 = vector.broadcast %315 : vector<1x72xf32> to vector<10x72xf32>
    %317 = arith.mulf %313, %316 : vector<10x72xf32>
    %318 = arith.addf %310, %317 : vector<10x72xf32>
    %c12_268 = arith.constant 12 : index
    %c0_269 = arith.constant 0 : index
    %c0_270 = arith.constant 0 : index
    %319 = vector.load %arg9[%c12_268, %c0_269, %c0_270] : memref<16x10x32xbf16, #tpu.memory_space<vmem>>, vector<1x10x32xbf16>
    %320 = vector.shape_cast %319 : vector<1x10x32xbf16> to vector<10x32xbf16>
    %cst_271 = arith.constant dense<0.000000e+00> : vector<10x72xf32>
    %321 = tpu.matmul %320, %221, %cst_271 {dimension_numbers = #tpu.dot_dimension_numbers<[1], [0], [0], [1], [0, 0, 1, 1], [], []>} : vector<10x32xbf16>, vector<32x72xbf16>, vector<10x72xf32> -> vector<10x72xf32>
    %c12_272 = arith.constant 12 : index
    %c0_273 = arith.constant 0 : index
    %c0_274 = arith.constant 0 : index
    %322 = vector.load %arg10[%c12_272, %c0_273, %c0_274] : memref<16x1x72xf32, #tpu.memory_space<vmem>>, vector<1x1x72xf32>
    %323 = vector.shape_cast %322 : vector<1x1x72xf32> to vector<1x72xf32>
    %324 = vector.broadcast %323 : vector<1x72xf32> to vector<10x72xf32>
    %325 = arith.mulf %321, %324 : vector<10x72xf32>
    %326 = arith.addf %318, %325 : vector<10x72xf32>
    %c13_275 = arith.constant 13 : index
    %c0_276 = arith.constant 0 : index
    %c0_277 = arith.constant 0 : index
    %327 = vector.load %arg9[%c13_275, %c0_276, %c0_277] : memref<16x10x32xbf16, #tpu.memory_space<vmem>>, vector<1x10x32xbf16>
    %328 = vector.shape_cast %327 : vector<1x10x32xbf16> to vector<10x32xbf16>
    %cst_278 = arith.constant dense<0.000000e+00> : vector<10x72xf32>
    %329 = tpu.matmul %328, %221, %cst_278 {dimension_numbers = #tpu.dot_dimension_numbers<[1], [0], [0], [1], [0, 0, 1, 1], [], []>} : vector<10x32xbf16>, vector<32x72xbf16>, vector<10x72xf32> -> vector<10x72xf32>
    %c13_279 = arith.constant 13 : index
    %c0_280 = arith.constant 0 : index
    %c0_281 = arith.constant 0 : index
    %330 = vector.load %arg10[%c13_279, %c0_280, %c0_281] : memref<16x1x72xf32, #tpu.memory_space<vmem>>, vector<1x1x72xf32>
    %331 = vector.shape_cast %330 : vector<1x1x72xf32> to vector<1x72xf32>
    %332 = vector.broadcast %331 : vector<1x72xf32> to vector<10x72xf32>
    %333 = arith.mulf %329, %332 : vector<10x72xf32>
    %334 = arith.addf %326, %333 : vector<10x72xf32>
    %c14_282 = arith.constant 14 : index
    %c0_283 = arith.constant 0 : index
    %c0_284 = arith.constant 0 : index
    %335 = vector.load %arg9[%c14_282, %c0_283, %c0_284] : memref<16x10x32xbf16, #tpu.memory_space<vmem>>, vector<1x10x32xbf16>
    %336 = vector.shape_cast %335 : vector<1x10x32xbf16> to vector<10x32xbf16>
    %cst_285 = arith.constant dense<0.000000e+00> : vector<10x72xf32>
    %337 = tpu.matmul %336, %221, %cst_285 {dimension_numbers = #tpu.dot_dimension_numbers<[1], [0], [0], [1], [0, 0, 1, 1], [], []>} : vector<10x32xbf16>, vector<32x72xbf16>, vector<10x72xf32> -> vector<10x72xf32>
    %c14_286 = arith.constant 14 : index
    %c0_287 = arith.constant 0 : index
    %c0_288 = arith.constant 0 : index
    %338 = vector.load %arg10[%c14_286, %c0_287, %c0_288] : memref<16x1x72xf32, #tpu.memory_space<vmem>>, vector<1x1x72xf32>
    %339 = vector.shape_cast %338 : vector<1x1x72xf32> to vector<1x72xf32>
    %340 = vector.broadcast %339 : vector<1x72xf32> to vector<10x72xf32>
    %341 = arith.mulf %337, %340 : vector<10x72xf32>
    %342 = arith.addf %334, %341 : vector<10x72xf32>
    %c15 = arith.constant 15 : index
    %c0_289 = arith.constant 0 : index
    %c0_290 = arith.constant 0 : index
    %343 = vector.load %arg9[%c15, %c0_289, %c0_290] : memref<16x10x32xbf16, #tpu.memory_space<vmem>>, vector<1x10x32xbf16>
    %344 = vector.shape_cast %343 : vector<1x10x32xbf16> to vector<10x32xbf16>
    %cst_291 = arith.constant dense<0.000000e+00> : vector<10x72xf32>
    %345 = tpu.matmul %344, %221, %cst_291 {dimension_numbers = #tpu.dot_dimension_numbers<[1], [0], [0], [1], [0, 0, 1, 1], [], []>} : vector<10x32xbf16>, vector<32x72xbf16>, vector<10x72xf32> -> vector<10x72xf32>
    %c15_292 = arith.constant 15 : index
    %c0_293 = arith.constant 0 : index
    %c0_294 = arith.constant 0 : index
    %346 = vector.load %arg10[%c15_292, %c0_293, %c0_294] : memref<16x1x72xf32, #tpu.memory_space<vmem>>, vector<1x1x72xf32>
    %347 = vector.shape_cast %346 : vector<1x1x72xf32> to vector<1x72xf32>
    %348 = vector.broadcast %347 : vector<1x72xf32> to vector<10x72xf32>
    %349 = arith.mulf %345, %348 : vector<10x72xf32>
    %350 = arith.addf %342, %349 : vector<10x72xf32>
    %c0_295 = arith.constant 0 : index
    %c0_296 = arith.constant 0 : index
    %351 = vector.load %arg11[%c0_295, %c0_296] : memref<72x2xf32, #tpu.memory_space<vmem>>, vector<72x2xf32>
    %cst_297 = arith.constant dense<0.000000e+00> : vector<10x2xf32>
    %352 = tpu.matmul %350, %351, %cst_297 {dimension_numbers = #tpu.dot_dimension_numbers<[1], [0], [0], [1], [0, 0, 1, 1], [], []>} : vector<10x72xf32>, vector<72x2xf32>, vector<10x2xf32> -> vector<10x2xf32>
    %c0_298 = arith.constant 0 : index
    %c0_299 = arith.constant 0 : index
    %353 = vector.load %arg12[%c0_298, %c0_299] : memref<10x1xf32, #tpu.memory_space<vmem>>, vector<10x1xf32>
    %354 = vector.broadcast %353 : vector<10x1xf32> to vector<10x2xf32>
    %355 = arith.addf %352, %354 : vector<10x2xf32>
    %c0_300 = arith.constant 0 : index
    %c0_301 = arith.constant 0 : index
    %356 = vector.load %arg13[%c0_300, %c0_301] : memref<10x2xf32, #tpu.memory_space<vmem>>, vector<10x2xf32>
    tpu.vector_store %arg13[%c0_300, %c0_301], %355 {strides = array<i32>} : memref<10x2xf32, #tpu.memory_space<vmem>>, vector<10x2xf32>,
    return
  }
}

</mosaic_0001>

<bundles_post_ra>
// kernel: cnn_mnist_1_forward.1
= control target key start
LH: loop header
LB: loop body
LE: loop exit
PB: predicated region body
PF: predicated region fallthrough
CT: control target
= control target key end

     0   :  { %v4597_v0 = vmov 0   ;;  %v57_v3 = vlaneseq  ;;  %s4600_s21 = smov 110   ;;  %s4601_s22 = smov 109   ;;  %vm546_vm0 = vcmask 220160   ;;  %vm155_vm1 = vcmask 1039360   ;;  %s6097_s1 = inlined_call_operand.vmem [shape: bf16[9,8,1], index: 1, kind: input, shape index: {}]   ;;  %s6098_s0 = inlined_call_operand.vmem [shape: bf16[1,686], index: 0, kind: input, shape index: {}]   ;;  %s6099_s2 = inlined_call_operand.vmem [shape: f32[8,1], index: 2, kind: input, shape index: {}]   ;;  %s6100_s3 = inlined_call_operand.vmem [shape: f32[648,200], index: 3, kind: input, shape index: {}]   ;;  %s6101_s4 = inlined_call_operand.vmem [shape: bf16[9,16,8], index: 4, kind: input, shape index: {}]   ;;  %s6102_s5 = inlined_call_operand.vmem [shape: f32[16,1], index: 5, kind: input, shape index: {}]   ;;  %s6103_s6 = inlined_call_operand.vmem [shape: f32[200,72], index: 6, kind: input, shape index: {}]   ;;  %s6104_s7 = inlined_call_operand.vmem [shape: bf16[9,32,16], index: 7, kind: input, shape index: {}]   ;;  %s6105_s8 = inlined_call_operand.vmem [shape: f32[32,1], index: 8, kind: input, shape index: {}]   ;;  %s6106_s12 = inlined_call_operand.vmem [shape: f32[10,1], index: 12, kind: input, shape index: {}]   ;;  %s6107_s9 = inlined_call_operand.vmem [shape: bf16[16,10,32], index: 9, kind: input, shape index: {}]   ;;  %s6108_s11 = inlined_call_operand.vmem [shape: f32[72,2], index: 11, kind: input, shape index: {}]   ;;  %s6109_s10 = inlined_call_operand.vmem [shape: f32[16,1,72], index: 10, kind: input, shape index: {}]   ;;  %s6110_s13 = inlined_call_operand.vmem [shape: f32[10,2], index: 13, kind: output, shape index: {}]  }
   0x1   :  { %4510 = vset.pattern.permute.xlu0 %v4597_v0  ;;  %v3696_v1 = vld [vmem:[%s6097_s1 + $0x4] sm:$0xff]   ;;  %v3698_v2 = vld [vmem:[%s6097_s1 + $0xc] sm:$0xff]   ;;  %4521 = vset.pattern.permute.xlu1 %v4597_v0  ;;  %v3700_v8 = vld [vmem:[%s6097_s1 + $0x14] sm:$0xff]   ;;  %s4602_s23 = smov 108   ;;  %s4603_s24 = smov 92   ;;  %vm205_vm2 = vcmask 1031168  }
   0x2   :  { %v125_v4 = vunpack.c.l.bf16 %v3696_v1  ;;  %v175_v5 = vunpack.c.h.bf16 %v3696_v1  ;;  %v225_v6 = vunpack.c.l.bf16 %v3698_v2  ;;  %v275_v7 = vunpack.c.h.bf16 %v3698_v2  ;;  %v3702_v9 = vld [vmem:[%s6097_s1 + $0x1c] sm:$0xff]   ;;  %1150 = vmatprep.mubr.bf16.mxu1 %v4597_v0  ;;  %s4604_s25 = smov 91   ;;  %s4605_s26 = smov 90  }
   0x3   :  { %v325_v10 = vunpack.c.l.bf16 %v3700_v8  ;;  %v375_v11 = vunpack.c.h.bf16 %v3700_v8  ;;  %v425_v12 = vunpack.c.l.bf16 %v3702_v9  ;;  %v45_v13 = vld [vmem:[%s6098_s0] sm:$0x3f]  ;;  %v475_v15 = vunpack.c.h.bf16 %v3702_v9  ;;  %s4607_s0 = smov 11   ;;  %s4615_s20 = smov 121  }
   0x4   :  { %v4511_v14 = vpack.i.bf16 %v175_v5, %v125_v4  ;;  %v58_v17 = vshrl.u32 %v57_v3, 7  ;;  %v4516_v18 = vpack.i.bf16 %v275_v7, %v225_v6  ;;  %v49_v19 = vunpack.c.h.bf16 %v45_v13  ;;  %v46_v20 = vld [vmem:[%s6097_s1] sm:$0xf]  ;;  %s4598_s1 = smov 127   ;;  %s4619_s27 = smov 115  }
   0x5   :  { %v4522_v16 = vpack.i.bf16 %v375_v11, %v325_v10  ;;  %v4527_v21 = vpack.i.bf16 %v475_v15, %v425_v12  ;;  %v47_v23 = vunpack.c.l.bf16 %v46_v20  ;;  %v523_v27 = vld [vmem:[%s6099_s2] sm:$0xff]  ;;  %v48_v28 = vunpack.c.l.bf16 %v45_v13  ;;  %s4599_s2 = smov 126  }
   0x6   :  { %4512 = vperm.xlu0 %4510, %v4511_v14   ;;  %v63_v22 = vsub.s32 2, %v58_v17  ;;  %v59_v24 = vsub.s32 0, %v58_v17  ;;  %v67_v29 = vsub.s32 4, %v58_v17  ;;  %v71_v32 = vsub.s32 6, %v58_v17 }
   0x7   :  { %4523 = vperm.xlu1 %4521, %v4522_v16   ;;  %vm255_vm3 = vcmask 900096   ;;  %vm305_vm4 = vcmask 891904   ;;  %vm355_vm5 = vcmask 883712   ;;  %vm405_vm6 = vcmask 752640  }
   0x8   :  { %v80_v25 = vrot.slane %v49_v19, %v63_v22  ;;  %v68_v30 = vrot.slane %v48_v28, %v67_v29  ;;  %v64_v31 = vrot.slane %v48_v28, %v63_v22  ;;  %v76_v35 = vrot.slane %v49_v19, %v59_v24 }
   0x9   :  { %v72_v36 = vrot.slane %v48_v28, %v71_v32  ;;  %v60_v39 = vrot.slane %v48_v28, %v59_v24  ;;  %vm455_vm7 = vcmask 744448   ;;  %vm505_vm8 = vcmask 736256  }
   0xa   :  { %4517 = vperm.xlu0 %4510, %v4516_v18   ;;  %v4712_v26 = vrot.slane %v80_v25, %v59_v24  ;;  %v4717_v33 = vrot.slane %v68_v30, %v59_v24  ;;  %v4719_v34 = vrot.slane %v64_v31, %v59_v24  ;;  %v4723_v42 = vrot.slane %v76_v35, %v59_v24 }
   0xb   :  { %4528 = vperm.xlu1 %4521, %v4527_v21   ;;  %v4725_v43 = vrot.slane %v72_v36, %v59_v24  ;;  %v4731_v47 = vrot.slane %v60_v39, %v59_v24  ;;  %vm553_vm9 = vcmask 64512   ;;  %vm1009_vm10 = vcmask 1043456  }
   0xc   :  { %vm1010_vm11 = vcmask 769028   ;;  %vm1026_vm13 = vcmask 1043544   ;;  %vm1027_vm14 = vcmask 678916   ;;  %vm1023_vm15 = vcmask 89088  }
   0xd   :  { %vm1011_vm12 = vmor %vm1010_vm11, %vm1009_vm10  ;;  %vm4620_vm11 = vmmov 0  }
   0xe   :  { %52 = vperm.xlu0 %4510, %v47_v23   ;;  %1012 = vst.msk [vmem:[#allocation3] sm:$0xff] %vm1011_vm12, %v4597_v0  ;;  %vm2570_vm12 = vcmask 261120  }
  0x12   :  { %526 = vperm.xlu0 %4510, %v523_v27  }
  0x85   :  { %v4513_v37 = vpop.permute.xlu0 %4512 }
  0x86   :  { %v4514_v38 = vunpack.i.l.bf16 %v4513_v37  ;;  %v4515_v44 = vunpack.i.h.bf16 %v4513_v37  ;;  %v4524_v4 = vpop.permute.xlu1 %4523  ;;  %v4606_v37 = vmov 0.0  }
  0x87   :  { %v4525_v5 = vunpack.i.l.bf16 %v4524_v4  ;;  %v4526_v10 = vunpack.i.h.bf16 %v4524_v4  ;;  %547 = vst.msk [vmem:[#allocation2 + $0x28] sm:$0xff] %vm546_vm0, %v4606_v37  ;;  %vm1028_vm0 = vmor %vm1027_vm14, %vm1026_vm13  ;;  %vm3690_vm13 = vcmask 9216   ;;  %vm3688_vm14 = vcmask 15360  }
  0x88   :  { %v133_v40 = vmul.f32 %v4514_v38, %v4717_v33  ;;  %v132_v41 = vmul.f32 %v4514_v38, %v4719_v34  ;;  %v135_v45 = vmul.f32 %v4514_v38, %v4723_v42  ;;  %v134_v46 = vmul.f32 %v4514_v38, %v4725_v43 }
  0x89   :  { %v182_v48 = vmul.f32 %v4515_v44, %v4719_v34  ;;  %v131_v49 = vmul.f32 %v4514_v38, %v4731_v47  ;;  %v4740_v50 = vmul.f32 %v4514_v38, %v4712_v26  ;;  %v184_v51 = vmul.f32 %v4515_v44, %v4725_v43  ;;  %v4518_v54 = vpop.permute.xlu0 %4517 }
  0x8a   :  { %147 = vrot.lane.b32.xlu0 %v133_v40, %s4598_s1  ;;  %145 = vrot.lane.b32.xlu1 %v132_v41, %s4598_s1  ;;  %v183_v52 = vmul.f32 %v4515_v44, %v4717_v33  ;;  %v4745_v53 = vmul.f32 %v4515_v44, %v4712_v26  ;;  %v4749_v55 = vunpack.i.l.bf16 %v4518_v54  ;;  %v181_v56 = vmul.f32 %v4515_v44, %v4731_v47  ;;  %v4529_v15 = vpop.permute.xlu1 %4528 }
  0x8b   :  { %v185_v57 = vmul.f32 %v4515_v44, %v4723_v42  ;;  %v4761_v60 = vunpack.i.h.bf16 %v4518_v54  ;;  %v333_v8 = vmul.f32 %v4525_v5, %v4717_v33  ;;  %v332_v9 = vmul.f32 %v4525_v5, %v4719_v34 }
  0x8c   :  { %v233_v58 = vmul.f32 %v4749_v55, %v4717_v33  ;;  %v232_v59 = vmul.f32 %v4749_v55, %v4719_v34  ;;  %v235_v61 = vmul.f32 %v4749_v55, %v4723_v42  ;;  %v234_v62 = vmul.f32 %v4749_v55, %v4725_v43 }
  0x8d   :  { %v282_v63 = vmul.f32 %v4761_v60, %v4719_v34  ;;  %v231_v1 = vmul.f32 %v4749_v55, %v4731_v47  ;;  %v284_v2 = vmul.f32 %v4761_v60, %v4725_v43  ;;  %v283_v3 = vmul.f32 %v4761_v60, %v4717_v33  ;;  %v4840_v44 = vpop.permute.xlu0 %52 }
  0x8e   :  { %151 = vrot.lane.b32.xlu0 %v135_v45, %s4598_s1  ;;  %149 = vrot.lane.b32.xlu1 %v134_v46, %s4598_s1  ;;  %v281_v6 = vmul.f32 %v4761_v60, %v4731_v47  ;;  %v285_v7 = vmul.f32 %v4761_v60, %v4723_v42  ;;  %v335_v11 = vmul.f32 %v4525_v5, %v4723_v42  ;;  %v4530_v16 = vunpack.i.l.bf16 %v4529_v15 }
  0x8f   :  { %v334_v12 = vmul.f32 %v4525_v5, %v4725_v43  ;;  %v382_v13 = vmul.f32 %v4526_v10, %v4719_v34  ;;  %v331_v14 = vmul.f32 %v4525_v5, %v4731_v47  ;;  %v384_v17 = vmul.f32 %v4526_v10, %v4725_v43 }
  0x90   :  { %v383_v18 = vmul.f32 %v4526_v10, %v4717_v33  ;;  %v432_v19 = vmul.f32 %v4530_v16, %v4719_v34  ;;  %v385_v20 = vmul.f32 %v4526_v10, %v4723_v42  ;;  %v434_v21 = vmul.f32 %v4530_v16, %v4725_v43 }
  0x91   :  { %v381_v22 = vmul.f32 %v4526_v10, %v4731_v47  ;;  %v4531_v23 = vunpack.i.h.bf16 %v4529_v15  ;;  %v431_v24 = vmul.f32 %v4530_v16, %v4731_v47  ;;  %v433_v25 = vmul.f32 %v4530_v16, %v4717_v33  ;;  %v4842_v45 = vpop.permute.xlu0 %526 }
  0x92   :  { %195 = vrot.lane.b32.xlu0 %v182_v48, %s4599_s2  ;;  %143 = vrot.lane.b32.xlu1 %v131_v49, %s4598_s1  ;;  %v435_v28 = vmul.f32 %v4530_v16, %v4723_v42  ;;  %v236_v32 = vmul.f32 %v4749_v55, %v4712_v26  ;;  %v336_v36 = vmul.f32 %v4525_v5, %v4712_v26 }
  0x93   :  { %v483_v27 = vmul.f32 %v4531_v23, %v4717_v33  ;;  %v485_v29 = vmul.f32 %v4531_v23, %v4723_v42  ;;  %v482_v30 = vmul.f32 %v4531_v23, %v4719_v34  ;;  %v484_v31 = vmul.f32 %v4531_v23, %v4725_v43 }
  0x94   :  { %v481_v35 = vmul.f32 %v4531_v23, %v4731_v47  ;;  %v436_v38 = vmul.f32 %v4530_v16, %v4712_v26  ;;  %v286_v39 = vmul.f32 %v4761_v60, %v4712_v26  ;;  %v386_v40 = vmul.f32 %v4526_v10, %v4712_v26 }
  0x95   :  { %v486_v41 = vmul.f32 %v4531_v23, %v4712_v26  ;;  %v112_v15 = vmul.f32 %v4719_v34, %v4840_v44  ;;  %v114_v23 = vmul.f32 %v4725_v43, %v4840_v44 }
  0x96   :  { %199 = vrot.lane.b32.xlu0 %v184_v51, %s4599_s2  ;;  %197 = vrot.lane.b32.xlu1 %v183_v52, %s4599_s2 }
  0x9a   :  { %193 = vrot.lane.b32.xlu0 %v181_v56, %s4599_s2  ;;  %201 = vrot.lane.b32.xlu1 %v185_v57, %s4599_s2 }
  0x9e   :  { %247 = vrot.lane.b32.xlu0 %v233_v58, %s4600_s21  ;;  %245 = vrot.lane.b32.xlu1 %v232_v59, %s4600_s21 }
  0xa2   :  { %251 = vrot.lane.b32.xlu0 %v235_v61, %s4600_s21  ;;  %249 = vrot.lane.b32.xlu1 %v234_v62, %s4600_s21 }
  0xa6   :  { %295 = vrot.lane.b32.xlu0 %v282_v63, %s4601_s22  ;;  %243 = vrot.lane.b32.xlu1 %v231_v1, %s4600_s21 }
  0xaa   :  { %299 = vrot.lane.b32.xlu0 %v284_v2, %s4601_s22  ;;  %297 = vrot.lane.b32.xlu1 %v283_v3, %s4601_s22 }
  0xae   :  { %293 = vrot.lane.b32.xlu0 %v281_v6, %s4601_s22  ;;  %301 = vrot.lane.b32.xlu1 %v285_v7, %s4601_s22 }
  0xb2   :  { %347 = vrot.lane.b32.xlu0 %v333_v8, %s4602_s23  ;;  %345 = vrot.lane.b32.xlu1 %v332_v9, %s4602_s23 }
  0xb6   :  { %351 = vrot.lane.b32.xlu0 %v335_v11, %s4602_s23  ;;  %349 = vrot.lane.b32.xlu1 %v334_v12, %s4602_s23 }
  0xba   :  { %395 = vrot.lane.b32.xlu0 %v382_v13, %s4603_s24  ;;  %343 = vrot.lane.b32.xlu1 %v331_v14, %s4602_s23 }
  0xbe   :  { %399 = vrot.lane.b32.xlu0 %v384_v17, %s4603_s24  ;;  %397 = vrot.lane.b32.xlu1 %v383_v18, %s4603_s24 }
  0xc2   :  { %445 = vrot.lane.b32.xlu0 %v432_v19, %s4604_s25  ;;  %401 = vrot.lane.b32.xlu1 %v385_v20, %s4603_s24  ;;  %v113_v20 = vmul.f32 %v4717_v33, %v4840_v44 }
  0xc6   :  { %449 = vrot.lane.b32.xlu0 %v434_v21, %s4604_s25  ;;  %393 = vrot.lane.b32.xlu1 %v381_v22, %s4603_s24 }
  0xca   :  { %443 = vrot.lane.b32.xlu0 %v431_v24, %s4604_s25  ;;  %447 = vrot.lane.b32.xlu1 %v433_v25, %s4604_s25  ;;  %v111_v24 = vmul.f32 %v4731_v47, %v4840_v44 }
  0xce   :  { %497 = vrot.lane.b32.xlu0 %v483_v27, %s4605_s26  ;;  %451 = vrot.lane.b32.xlu1 %v435_v28, %s4604_s25 }
  0xd2   :  { %501 = vrot.lane.b32.xlu0 %v485_v29, %s4605_s26  ;;  %495 = vrot.lane.b32.xlu1 %v482_v30, %s4605_s26 }
  0xd6   :  { %153 = vrot.lane.b32.xlu0 %v4740_v50, %s4598_s1  ;;  %499 = vrot.lane.b32.xlu1 %v484_v31, %s4605_s26 }
  0xda   :  { %253 = vrot.lane.b32.xlu0 %v236_v32, %s4600_s21  ;;  %493 = vrot.lane.b32.xlu1 %v481_v35, %s4605_s26 }
  0xde   :  { %353 = vrot.lane.b32.xlu0 %v336_v36, %s4602_s23  ;;  %203 = vrot.lane.b32.xlu1 %v4745_v53, %s4599_s2 }
  0xe2   :  { %453 = vrot.lane.b32.xlu0 %v436_v38, %s4604_s25  ;;  %303 = vrot.lane.b32.xlu1 %v286_v39, %s4601_s22  ;;  %s4608_s22 = smov 118   ;;  %s4610_s25 = smov 116  }
  0xe6   :  { %403 = vrot.lane.b32.xlu1 %v386_v40, %s4603_s24  ;;  %s4609_s24 = smov 117  }
  0xea   :  { %503 = vrot.lane.b32.xlu1 %v486_v41, %s4605_s26  ;;  %s4611_s26 = smov 107  }
  0xfc   :  { %v148_v46 = vpop.permute.xlu0 %147  ;;  %v146_v48 = vpop.permute.xlu1 %145 }
  0xfd   :  { %v157_v14 = vsel %vm155_vm1, %v146_v48, %v148_v46 }
  0xfe   :  { %v168_v17 = vadd.f32 %v157_v14, %v112_v15 }
 0x100   :  { %v4844_v49 = vpop.permute.xlu0 %151  ;;  %v150_v50 = vpop.permute.xlu1 %149 }
 0x101   :  { %v158_v21 = vsel %vm155_vm1, %v148_v46, %v150_v50  ;;  %v159_v22 = vsel %vm155_vm1, %v150_v50, %v4844_v49 }
 0x102   :  { %v169_v29 = vadd.f32 %v158_v21, %v113_v20  ;;  %v170_v30 = vadd.f32 %v159_v22, %v114_v23 }
 0x104   :  { %v4846_v51 = vpop.permute.xlu0 %195  ;;  %v144_v52 = vpop.permute.xlu1 %143 }
 0x105   :  { %v156_v35 = vsel %vm155_vm1, %v144_v52, %v146_v48 }
 0x108   :  { %v200_v53 = vpop.permute.xlu0 %199  ;;  %v198_v54 = vpop.permute.xlu1 %197 }
 0x109   :  { %v207_v16 = vsel %vm205_vm2, %v4846_v51, %v198_v54  ;;  %v208_v27 = vsel %vm205_vm2, %v198_v54, %v200_v53 }
 0x10a   :  { %v218_v25 = vadd.f32 %v207_v16, %v168_v17  ;;  %v219_v39 = vadd.f32 %v208_v27, %v169_v29 }
 0x10c   :  { %v194_v55 = vpop.permute.xlu0 %193  ;;  %v4848_v56 = vpop.permute.xlu1 %201 }
 0x10d   :  { %v209_v33 = vsel %vm205_vm2, %v200_v53, %v4848_v56  ;;  %v206_v46 = vsel %vm205_vm2, %v194_v55, %v4846_v51  ;;  %v167_v53 = vadd.f32 %v156_v35, %v111_v24 }
 0x10e   :  { %v220_v40 = vadd.f32 %v209_v33, %v170_v30 }
 0x110   :  { %v248_v57 = vpop.permute.xlu0 %247  ;;  %v4850_v58 = vpop.permute.xlu1 %245 }
 0x111   :  { %v257_v34 = vsel %vm255_vm3, %v4850_v58, %v248_v57 }
 0x112   :  { %v268_v31 = vadd.f32 %v257_v34, %v218_v25 }
 0x114   :  { %v4852_v59 = vpop.permute.xlu0 %251  ;;  %v250_v60 = vpop.permute.xlu1 %249 }
 0x115   :  { %v258_v47 = vsel %vm255_vm3, %v248_v57, %v250_v60  ;;  %v259_v36 = vsel %vm255_vm3, %v250_v60, %v4852_v59 }
 0x116   :  { %v269_v54 = vadd.f32 %v258_v47, %v219_v39  ;;  %v270_v57 = vadd.f32 %v259_v36, %v220_v40 }
 0x118   :  { %v4854_v61 = vpop.permute.xlu0 %295  ;;  %v244_v62 = vpop.permute.xlu1 %243 }
 0x119   :  { %v256_v16 = vsel %vm255_vm3, %v244_v62, %v4850_v58 }
 0x11c   :  { %v300_v63 = vpop.permute.xlu0 %299  ;;  %v298_v1 = vpop.permute.xlu1 %297 }
 0x11d   :  { %v307_v28 = vsel %vm305_vm4, %v4854_v61, %v298_v1  ;;  %v308_v50 = vsel %vm305_vm4, %v298_v1, %v300_v63  ;;  %v217_v1 = vadd.f32 %v206_v46, %v167_v53 }
 0x11e   :  { %v318_v41 = vadd.f32 %v307_v28, %v268_v31  ;;  %v319_v17 = vadd.f32 %v308_v50, %v269_v54  ;;  %v115_v54 = vmul.f32 %v4723_v42, %v4840_v44 }
 0x11f   :  { %v267_v62 = vadd.f32 %v256_v16, %v217_v1 }
 0x120   :  { %v4856_v2 = vpop.permute.xlu0 %293  ;;  %v4858_v3 = vpop.permute.xlu1 %301 }
 0x121   :  { %v309_v48 = vsel %vm305_vm4, %v300_v63, %v4858_v3  ;;  %v306_v22 = vsel %vm305_vm4, %v4856_v2, %v4854_v61 }
 0x122   :  { %v320_v20 = vadd.f32 %v309_v48, %v270_v57 }
 0x124   :  { %v348_v4 = vpop.permute.xlu0 %347  ;;  %v4860_v5 = vpop.permute.xlu1 %345 }
 0x125   :  { %v357_v38 = vsel %vm355_vm5, %v4860_v5, %v348_v4 }
 0x126   :  { %v368_v60 = vadd.f32 %v357_v38, %v318_v41 }
 0x128   :  { %v4862_v6 = vpop.permute.xlu0 %351  ;;  %v350_v7 = vpop.permute.xlu1 %349 }
 0x129   :  { %v358_v51 = vsel %vm355_vm5, %v348_v4, %v350_v7  ;;  %v359_v55 = vsel %vm355_vm5, %v350_v7, %v4862_v6 }
 0x12a   :  { %v369_v4 = vadd.f32 %v358_v51, %v319_v17  ;;  %v370_v23 = vadd.f32 %v359_v55, %v320_v20 }
 0x12c   :  { %v4864_v8 = vpop.permute.xlu0 %395  ;;  %v4866_v9 = vpop.permute.xlu1 %343 }
 0x12d   :  { %v356_v27 = vsel %vm355_vm5, %v4866_v9, %v4860_v5 }
 0x130   :  { %v400_v10 = vpop.permute.xlu0 %399  ;;  %v398_v11 = vpop.permute.xlu1 %397 }
 0x131   :  { %v407_v52 = vsel %vm405_vm6, %v4864_v8, %v398_v11  ;;  %v408_v34 = vsel %vm405_vm6, %v398_v11, %v400_v10  ;;  %v317_v11 = vadd.f32 %v306_v22, %v267_v62 }
 0x132   :  { %v418_v21 = vadd.f32 %v407_v52, %v368_v60 }
 0x133   :  { %v367_v31 = vadd.f32 %v356_v27, %v317_v11  ;;  %v636_v27 = vld [vmem:[%s6100_s3 + $0x28] sm:$0xff] }
 0x134   :  { %v4868_v12 = vpop.permute.xlu0 %445  ;;  %v4870_v13 = vpop.permute.xlu1 %401 }
 0x135   :  { %v409_v58 = vsel %vm405_vm6, %v400_v10, %v4870_v13  ;;  %v419_v10 = vadd.f32 %v408_v34, %v369_v4  ;;  %v632_v4 = vld [vmem:[%s6100_s3 + $0x8] sm:$0xff] }
 0x136   :  { %v420_v28 = vadd.f32 %v409_v58, %v370_v23  ;;  %v631_v23 = vld [vmem:[%s6100_s3] sm:$0xff] }
 0x138   :  { %v450_v18 = vpop.permute.xlu0 %449  ;;  %v4877_v19 = vpop.permute.xlu1 %393 }
 0x139   :  { %v406_v30 = vsel %vm405_vm6, %v4877_v19, %v4864_v8 }
 0x13a   :  { %v417_v39 = vadd.f32 %v406_v30, %v367_v31  ;;  %v640_v30 = vld [vmem:[%s6100_s3 + $0x48] sm:$0xff] }
 0x13c   :  { %v444_v32 = vpop.permute.xlu0 %443  ;;  %v448_v43 = vpop.permute.xlu1 %447 }
 0x13d   :  { %v457_v63 = vsel %vm455_vm7, %v4868_v12, %v448_v43  ;;  %v458_v33 = vsel %vm455_vm7, %v448_v43, %v450_v18 }
 0x13e   :  { %v468_v7 = vadd.f32 %v457_v63, %v418_v21  ;;  %v469_v35 = vadd.f32 %v458_v33, %v419_v10  ;;  %v638_v33 = vld [vmem:[%s6100_s3 + $0x38] sm:$0xff] }
 0x13f   :  { %v4210_v10 = vpack.c.bf16 %v638_v33, %v636_v27  ;;  %v657_v27 = vld [vmem:[%s6100_s3 + $0xd0] sm:$0xff]  ;;  %v660_v33 = vld [vmem:[%s6100_s3 + $0xe8] sm:$0xff] }
 0x140   :  { %v498_v14 = vpop.permute.xlu0 %497  ;;  %v4908_v15 = vpop.permute.xlu1 %451 }
 0x141   :  { %v459_v61 = vsel %vm455_vm7, %v450_v18, %v4908_v15  ;;  %v456_v18 = vsel %vm455_vm7, %v444_v32, %v4868_v12  ;;  %v116_v12 = vmul.f32 %v4712_v26, %v4840_v44 }
 0x142   :  { %v470_v47 = vadd.f32 %v459_v61, %v420_v28  ;;  %v467_v41 = vadd.f32 %v456_v18, %v417_v39  ;;  %v635_v28 = vld [vmem:[%s6100_s3 + $0x20] sm:$0xff] }
 0x143   :  { %v639_v39 = vld [vmem:[%s6100_s3 + $0x40] sm:$0xff] }
 0x144   :  { %v4923_v24 = vpop.permute.xlu0 %501  ;;  %v496_v25 = vpop.permute.xlu1 %495 }
 0x145   :  { %v507_v2 = vsel %vm505_vm8, %v496_v25, %v498_v14 }
 0x146   :  { %v518_v29 = vadd.f32 %v507_v2, %v468_v7 }
 0x148   :  { %v4936_v5 = vadd.f32 %v4842_v45, %v518_v29  ;;  %v154_v9 = vpop.permute.xlu0 %153  ;;  %v500_v43 = vpop.permute.xlu1 %499  ;;  %v637_v29 = vld [vmem:[%s6100_s3 + $0x30] sm:$0xff] }
 0x149   :  { %v508_v36 = vsel %vm505_vm8, %v498_v14, %v500_v43  ;;  %v509_v38 = vsel %vm505_vm8, %v500_v43, %v4923_v24  ;;  %v160_v32 = vsel %vm155_vm1, %v4844_v49, %v154_v9  ;;  %v172_v16 = vadd.f32 %v154_v9, %v116_v12 }
 0x14a   :  { %v536_v40 = vmax.f32 %v4936_v5, 0.0  ;;  %v519_v8 = vadd.f32 %v508_v36, %v469_v35  ;;  %v520_v19 = vadd.f32 %v509_v38, %v470_v47  ;;  %v171_v51 = vadd.f32 %v160_v32, %v115_v54 }
 0x14b   :  { %v4212_v18 = vpack.c.bf16 %v637_v29, %v635_v28  ;;  %v661_v28 = vld [vmem:[%s6100_s3 + $0xf0] sm:$0xff]  ;;  %v664_v29 = vld [vmem:[%s6100_s3 + $0x108] sm:$0xff] }
 0x14c   :  { %v4945_v46 = vadd.f32 %v4842_v45, %v519_v8  ;;  %v4948_v50 = vadd.f32 %v4842_v45, %v520_v19  ;;  %v254_v48 = vpop.permute.xlu0 %253  ;;  %v494_v52 = vpop.permute.xlu1 %493  ;;  %v641_v8 = vld [vmem:[%s6100_s3 + $0x50] sm:$0xff] }
 0x14d   :  { %v506_v53 = vsel %vm505_vm8, %v494_v52, %v496_v25  ;;  %v260_v20 = vsel %vm255_vm3, %v4852_v59, %v254_v48  ;;  %v634_v59 = vld [vmem:[%s6100_s3 + $0x18] sm:$0xff]  ;;  %v4216_v54 = vpack.c.bf16 %v641_v8, %v639_v39  ;;  %v669_v39 = vld [vmem:[%s6100_s3 + $0x130] sm:$0xff]  ;;  %v672_v8 = vld [vmem:[%s6100_s3 + $0x148] sm:$0xff] }
 0x14e   :  { %v537_v57 = vmax.f32 %v4945_v46, 0.0  ;;  %v538_v60 = vmax.f32 %v4948_v50, 0.0  ;;  %v517_v14 = vadd.f32 %v506_v53, %v467_v41  ;;  %v4206_v25 = vpack.c.bf16 %v634_v59, %v632_v4  ;;  %v653_v4 = vld [vmem:[%s6100_s3 + $0xb0] sm:$0xff]  ;;  %v656_v59 = vld [vmem:[%s6100_s3 + $0xc8] sm:$0xff] }
 0x150   :  { %v4960_v55 = vadd.f32 %v4842_v45, %v517_v14  ;;  %v204_v63 = vpop.permute.xlu1 %203  ;;  %v4532_v26 = vpack.i.bf16 %v537_v57, %v536_v40  ;;  %v354_v1 = vpop.permute.xlu0 %353  ;;  %4207 = vmatprep.subr.bf16.mxu0 %v4206_v25 }
 0x151   :  { %v210_v49 = vsel %vm205_vm2, %v4848_v56, %v204_v63  ;;  %v222_v42 = vadd.f32 %v204_v63, %v172_v16  ;;  %v360_v61 = vsel %vm355_vm5, %v4862_v6, %v354_v1  ;;  %v642_v6 = vld [vmem:[%s6100_s3 + $0x58] sm:$0xff]  ;;  %v643_v16 = vld [vmem:[%s6100_s3 + $0x60] sm:$0xff] }
 0x152   :  { %v535_v44 = vmax.f32 %v4960_v55, 0.0  ;;  %v221_v17 = vadd.f32 %v210_v49, %v171_v51  ;;  %4533 = vrot.lane.b32.xlu0 %v4532_v26, %s4598_s1  ;;  %v4214_v38 = vpack.c.bf16 %v642_v6, %v640_v30  ;;  %v645_v51 = vld [vmem:[%s6100_s3 + $0x70] sm:$0xff]  ;;  %v650_v26 = vld [vmem:[%s6100_s3 + $0x98] sm:$0xff] }
 0x153   :  { %v272_v21 = vadd.f32 %v254_v48, %v222_v42  ;;  %v646_v48 = vld [vmem:[%s6100_s3 + $0x78] sm:$0xff]  ;;  %v665_v6 = vld [vmem:[%s6100_s3 + $0x110] sm:$0xff] }
 0x154   :  { %v271_v22 = vadd.f32 %v260_v20, %v221_v17  ;;  %v304_v34 = vpop.permute.xlu1 %303  ;;  %v4537_v58 = vpack.i.bf16 %v535_v44, %v538_v60  ;;  %v454_v31 = vpop.permute.xlu0 %453  ;;  %v666_v30 = vld [vmem:[%s6100_s3 + $0x118] sm:$0xff] }
 0x155   :  { %v310_v56 = vsel %vm305_vm4, %v4858_v3, %v304_v34  ;;  %v322_v62 = vadd.f32 %v304_v34, %v272_v21  ;;  %v633_v3 = vld [vmem:[%s6100_s3 + $0x10] sm:$0xff]  ;;  %v460_v19 = vsel %vm455_vm7, %v4908_v15, %v454_v31  ;;  %v647_v21 = vld [vmem:[%s6100_s3 + $0x80] sm:$0xff]  ;;  %v654_v34 = vld [vmem:[%s6100_s3 + $0xb8] sm:$0xff]  ;;  %vm1383_vm4 = vcmask 949248  }
 0x156   :  { %v321_v7 = vadd.f32 %v310_v56, %v271_v22  ;;  %4538 = vrot.lane.b32.xlu1 %v4537_v58, %s4598_s1  ;;  %v4208_v11 = vpack.c.bf16 %v633_v3, %v631_v23  ;;  %v649_v22 = vld [vmem:[%s6100_s3 + $0x90] sm:$0xff]  ;;  %v658_v23 = vld [vmem:[%s6100_s3 + $0xd8] sm:$0xff]  ;;  %v655_v3 = vld [vmem:[%s6100_s3 + $0xc0] sm:$0xff]  ;;  %vm1672_vm7 = vcmask 678912  }
 0x157   :  { %v372_v2 = vadd.f32 %v354_v1, %v322_v62  ;;  %v4220_v1 = vpack.c.bf16 %v645_v51, %v643_v16  ;;  %v4224_v58 = vpack.c.bf16 %v649_v22, %v647_v21  ;;  %v651_v62 = vld [vmem:[%s6100_s3 + $0xa0] sm:$0xff]  ;;  %v4230_v25 = vpack.c.bf16 %v658_v23, %v656_v59  ;;  %v680_v16 = vld [vmem:[%s6100_s3 + $0x188] sm:$0xff]  ;;  %v682_v51 = vld [vmem:[%s6100_s3 + $0x198] sm:$0xff]  ;;  %1673 = vst.msk [vmem:[#allocation4 + $0x8] sm:$0xff] %vm1672_vm7, %v4606_v37 }
 0x158   :  { %v371_v35 = vadd.f32 %v360_v61, %v321_v7  ;;  %v404_v47 = vpop.permute.xlu1 %403  ;;  %4209 = vmatpush1.bf16.msra.mxu0 %v4208_v11  ;;  %v4228_v7 = vpack.c.bf16 %v653_v4, %v651_v62  ;;  %v662_v61 = vld [vmem:[%s6100_s3 + $0xf8] sm:$0xff]  ;;  %v687_v4 = vld [vmem:[%s6100_s3 + $0x1c0] sm:$0xff]  ;;  %v689_v23 = vld [vmem:[%s6100_s3 + $0x1d0] sm:$0xff]  ;;  %1675 = vst.msk [vmem:[#allocation4 + $0x18] sm:$0xff] %vm1672_vm7, %v4606_v37 }
 0x159   :  { %v410_v9 = vsel %vm405_vm6, %v4870_v13, %v404_v47  ;;  %v422_v43 = vadd.f32 %v404_v47, %v372_v2  ;;  %4211 = vmatprep.subr.bf16.mxu0 %v4210_v10  ;;  %v644_v13 = vld [vmem:[%s6100_s3 + $0x68] sm:$0xff]  ;;  %v4232_v2 = vpack.c.bf16 %v657_v27, %v655_v3  ;;  %v4234_v11 = vpack.c.bf16 %v662_v61, %v660_v33  ;;  %v659_v10 = vld [vmem:[%s6100_s3 + $0xe0] sm:$0xff]  ;;  %v690_v62 = vld [vmem:[%s6100_s3 + $0x1d8] sm:$0xff] }
 0x15a   :  { %v421_v36 = vadd.f32 %v410_v9, %v371_v35  ;;  %v4218_v15 = vpack.c.bf16 %v646_v48, %v644_v13  ;;  %v4238_v35 = vpack.c.bf16 %v666_v30, %v664_v29  ;;  %v663_v47 = vld [vmem:[%s6100_s3 + $0x100] sm:$0xff]  ;;  %v668_v9 = vld [vmem:[%s6100_s3 + $0x128] sm:$0xff]  ;;  %v694_v61 = vld [vmem:[%s6100_s3 + $0x1f8] sm:$0xff]  ;;  %vm1523_vm6 = vcmask 875520  }
 0x15b   :  { %v472_v41 = vadd.f32 %v454_v31, %v422_v43  ;;  %v4236_v31 = vpack.c.bf16 %v661_v28, %v659_v10  ;;  %v670_v43 = vld [vmem:[%s6100_s3 + $0x138] sm:$0xff]  ;;  %v671_v48 = vld [vmem:[%s6100_s3 + $0x140] sm:$0xff]  ;;  %v692_v33 = vld [vmem:[%s6100_s3 + $0x1e8] sm:$0xff] }
 0x15c   :  { %v471_v52 = vadd.f32 %v460_v19, %v421_v36  ;;  %v504_v12 = vpop.permute.xlu1 %503  ;;  %4213 = vmatpush1.bf16.msra.mxu0 %v4212_v18  ;;  %v4240_v18 = vpack.c.bf16 %v665_v6, %v663_v47  ;;  %v4242_v36 = vpack.c.bf16 %v670_v43, %v668_v9  ;;  %v674_v19 = vld [vmem:[%s6100_s3 + $0x158] sm:$0xff]  ;;  %v693_v10 = vld [vmem:[%s6100_s3 + $0x1f0] sm:$0xff] }
 0x15d   :  { %v510_v32 = vsel %vm505_vm8, %v4923_v24, %v504_v12  ;;  %v522_v53 = vadd.f32 %v504_v12, %v472_v41  ;;  %4215 = vmatprep.subr.bf16.mxu0 %v4214_v38  ;;  %v648_v24 = vld [vmem:[%s6100_s3 + $0x88] sm:$0xff]  ;;  %v667_v38 = vld [vmem:[%s6100_s3 + $0x120] sm:$0xff]  ;;  %v4246_v13 = vpack.c.bf16 %v674_v19, %v672_v8  ;;  %v697_v19 = vld [vmem:[%s6100_s3 + $0x210] sm:$0xff]  ;;  %vm1677_vm8 = vcmask 588800  }
 0x15e   :  { %v521_v14 = vadd.f32 %v510_v32, %v471_v52  ;;  %v4222_v20 = vpack.c.bf16 %v650_v26, %v648_v24  ;;  %v4244_v41 = vpack.c.bf16 %v669_v39, %v667_v38  ;;  %v673_v52 = vld [vmem:[%s6100_s3 + $0x150] sm:$0xff]  ;;  %v676_v12 = vld [vmem:[%s6100_s3 + $0x168] sm:$0xff]  ;;  %v678_v32 = vld [vmem:[%s6100_s3 + $0x178] sm:$0xff]  ;;  %v4254_v24 = vpack.c.bf16 %v682_v51, %v680_v16 }
 0x15f   :  { %v534_v63 = vadd.f32 %v4842_v45, %v522_v53  ;;  %v4248_v53 = vpack.c.bf16 %v673_v52, %v671_v48  ;;  %v679_v26 = vld [vmem:[%s6100_s3 + $0x180] sm:$0xff]  ;;  %v698_v38 = vld [vmem:[%s6100_s3 + $0x218] sm:$0xff] }
 0x160   :  { %v5043_v49 = vadd.f32 %v4842_v45, %v521_v14  ;;  %4217 = vmatpush1.bf16.msra.mxu0 %v4216_v54  ;;  %v652_v45 = vld [vmem:[%s6100_s3 + $0xa8] sm:$0xff]  ;;  %v4250_v54 = vpack.c.bf16 %v678_v32, %v676_v12  ;;  %v675_v14 = vld [vmem:[%s6100_s3 + $0x160] sm:$0xff]  ;;  %v702_v48 = vld [vmem:[%s6100_s3 + $0x238] sm:$0xff] }
 0x161   :  { %v540_v42 = vmax.f32 %v534_v63, 0.0  ;;  %4219 = vmatprep.subr.bf16.mxu0 %v4218_v15  ;;  %v4226_v56 = vpack.c.bf16 %v654_v34, %v652_v45  ;;  %v677_v15 = vld [vmem:[%s6100_s3 + $0x170] sm:$0xff]  ;;  %v683_v45 = vld [vmem:[%s6100_s3 + $0x1a0] sm:$0xff] }
 0x162   :  { %v539_v17 = vmax.f32 %v5043_v49, 0.0  ;;  %v4252_v63 = vpack.c.bf16 %v677_v15, %v675_v14  ;;  %v685_v34 = vld [vmem:[%s6100_s3 + $0x1b0] sm:$0xff]  ;;  %v695_v8 = vld [vmem:[%s6100_s3 + $0x200] sm:$0xff] }
 0x163   :  { %554 = vst.msk [vmem:[#allocation2 + $0x28] sm:$0xff] %vm553_vm9, %v540_v42  ;;  %v681_v42 = vld [vmem:[%s6100_s3 + $0x190] sm:$0xff]  ;;  %v4272_v15 = vpack.c.bf16 %v697_v19, %v695_v8  ;;  %v703_v49 = vld [vmem:[%s6100_s3 + $0x240] sm:$0xff] }
 0x164   :  { %4221 = vmatpush1.bf16.msra.mxu0 %v4220_v1  ;;  %v684_v1 = vld [vmem:[%s6100_s3 + $0x1a8] sm:$0xff]  ;;  %v4256_v21 = vpack.c.bf16 %v681_v42, %v679_v26  ;;  %v701_v26 = vld [vmem:[%s6100_s3 + $0x230] sm:$0xff]  ;;  %v727_v19 = vld [vmem:[%s6100_s3 + $0x300] sm:$0xff] }
 0x165   :  { %4223 = vmatprep.subr.bf16.mxu0 %v4222_v20  ;;  %v686_v20 = vld [vmem:[%s6100_s3 + $0x1b8] sm:$0xff] }
 0x166   :  { %v4258_v22 = vpack.c.bf16 %v686_v20, %v684_v1  ;;  %v704_v20 = vld [vmem:[%s6100_s3 + $0x248] sm:$0xff] }
 0x168   :  { %4225 = vmatpush1.bf16.msra.mxu0 %v4224_v58  ;;  %v4260_v58 = vpack.c.bf16 %v685_v34, %v683_v45  ;;  %v708_v45 = vld [vmem:[%s6100_s3 + $0x268] sm:$0xff]  ;;  %v710_v34 = vld [vmem:[%s6100_s3 + $0x278] sm:$0xff] }
 0x169   :  { %4227 = vmatprep.subr.bf16.mxu0 %v4226_v56  ;;  %v688_v56 = vld [vmem:[%s6100_s3 + $0x1c8] sm:$0xff] }
 0x16a   :  { %v4262_v59 = vpack.c.bf16 %v690_v62, %v688_v56  ;;  %v560_v5 = vld [vmem:[#allocation2 + $0x28] sm:$0xff]  ;;  %v4282_v56 = vpack.c.bf16 %v710_v34, %v708_v45  ;;  %v707_v62 = vld [vmem:[%s6100_s3 + $0x260] sm:$0xff] }
 0x16c   :  { %4229 = vmatpush1.bf16.msra.mxu0 %v4228_v7  ;;  %v4264_v7 = vpack.c.bf16 %v689_v23, %v687_v4  ;;  %v709_v4 = vld [vmem:[%s6100_s3 + $0x270] sm:$0xff]  ;;  %v714_v23 = vld [vmem:[%s6100_s3 + $0x298] sm:$0xff] }
 0x16d   :  { %4231 = vmatprep.subr.bf16.mxu0 %v4230_v25 }
 0x170   :  { %4233 = vmatpush1.bf16.msra.mxu0 %v4232_v2  ;;  %v691_v2 = vld [vmem:[%s6100_s3 + $0x1e0] sm:$0xff] }
 0x171   :  { %4235 = vmatprep.subr.bf16.mxu0 %v4234_v11  ;;  %v4266_v11 = vpack.c.bf16 %v694_v61, %v692_v33  ;;  %v4268_v28 = vpack.c.bf16 %v693_v10, %v691_v2  ;;  %v716_v33 = vld [vmem:[%s6100_s3 + $0x2a8] sm:$0xff]  ;;  %v718_v61 = vld [vmem:[%s6100_s3 + $0x2b8] sm:$0xff]  ;;  %v715_v10 = vld [vmem:[%s6100_s3 + $0x2a0] sm:$0xff] }
 0x174   :  { %4237 = vmatpush1.bf16.msra.mxu0 %v4236_v31 }
 0x175   :  { %4239 = vmatprep.subr.bf16.mxu0 %v4238_v35 }
 0x178   :  { %4241 = vmatpush1.bf16.msra.mxu0 %v4240_v18 }
 0x179   :  { %4243 = vmatprep.subr.bf16.mxu0 %v4242_v36  ;;  %v696_v36 = vld [vmem:[%s6100_s3 + $0x208] sm:$0xff] }
 0x17a   :  { %v4270_v39 = vpack.c.bf16 %v698_v38, %v696_v36 }
 0x17c   :  { %4245 = vmatpush1.bf16.msra.mxu0 %v4244_v41 }
 0x17d   :  { %4247 = vmatprep.subr.bf16.mxu0 %v4246_v13  ;;  %v700_v13 = vld [vmem:[%s6100_s3 + $0x228] sm:$0xff] }
 0x180   :  { %4249 = vmatpush1.bf16.msra.mxu0 %v4248_v53 }
 0x181   :  { %4251 = vmatprep.subr.bf16.mxu0 %v4250_v54 }
 0x184   :  { %4253 = vmatpush1.bf16.msra.mxu0 %v4252_v63  ;;  %v4274_v63 = vpack.c.bf16 %v702_v48, %v700_v13  ;;  %v732_v13 = vld [vmem:[%s6100_s3 + $0x328] sm:$0xff]  ;;  %v734_v48 = vld [vmem:[%s6100_s3 + $0x338] sm:$0xff] }
 0x185   :  { %4255 = vmatprep.subr.bf16.mxu0 %v4254_v24  ;;  %v699_v24 = vld [vmem:[%s6100_s3 + $0x220] sm:$0xff] }
 0x186   :  { %v4276_v50 = vpack.c.bf16 %v701_v26, %v699_v24  ;;  %v737_v24 = vld [vmem:[%s6100_s3 + $0x350] sm:$0xff]  ;;  %v740_v26 = vld [vmem:[%s6100_s3 + $0x368] sm:$0xff] }
 0x188   :  { %4257 = vmatpush1.bf16.msra.mxu0 %v4256_v21  ;;  %v706_v21 = vld [vmem:[%s6100_s3 + $0x258] sm:$0xff] }
 0x189   :  { %4259 = vmatprep.subr.bf16.mxu0 %v4258_v22 }
 0x18c   :  { %4261 = vmatpush1.bf16.msra.mxu0 %v4260_v58 }
 0x18d   :  { %4263 = vmatprep.subr.bf16.mxu0 %v4262_v59  ;;  %v712_v59 = vld [vmem:[%s6100_s3 + $0x288] sm:$0xff] }
 0x190   :  { %4265 = vmatpush1.bf16.msra.mxu0 %v4264_v7  ;;  %v4284_v7 = vpack.c.bf16 %v709_v4, %v707_v62  ;;  %v748_v62 = vld [vmem:[%s6100_s3 + $0x3a8] sm:$0xff]  ;;  %v750_v4 = vld [vmem:[%s6100_s3 + $0x3b8] sm:$0xff] }
 0x191   :  { %4267 = vmatprep.subr.bf16.mxu0 %v4266_v11  ;;  %v4290_v11 = vpack.c.bf16 %v718_v61, %v716_v33 }
 0x194   :  { %4269 = vmatpush1.bf16.msra.mxu0 %v4268_v28  ;;  %v717_v28 = vld [vmem:[%s6100_s3 + $0x2b0] sm:$0xff] }
 0x195   :  { %4271 = vmatprep.subr.bf16.mxu0 %v4270_v39  ;;  %v723_v39 = vld [vmem:[%s6100_s3 + $0x2e0] sm:$0xff] }
 0x1c4   :  { %v4534_v25 = vpop.permute.xlu0 %4533 }
 0x1c5   :  { %v4536_v3 = vunpack.i.h.bf16 %v4534_v25  ;;  %v4535_v27 = vunpack.i.l.bf16 %v4534_v25  ;;  %v4286_v25 = vpack.c.bf16 %v714_v23, %v712_v59  ;;  %v4322_v23 = vpack.c.bf16 %v750_v4, %v748_v62  ;;  %v779_v62 = vld [vmem:[%s6100_s3 + $0x4a0] sm:$0xff]  ;;  %v781_v4 = vld [vmem:[%s6100_s3 + $0x4b0] sm:$0xff] }
 0x1c7   :  { %v580_v30 = vsel %vm155_vm1, %v4535_v27, %v4536_v3 }
 0x1c8   :  { %v4539_v29 = vpop.permute.xlu1 %4538  ;;  %v591_v43 = vmax.f32 %v536_v40, %v580_v30  ;;  %v722_v30 = vld [vmem:[%s6100_s3 + $0x2d8] sm:$0xff] }
 0x1c9   :  { %v4541_v31 = vunpack.i.h.bf16 %v4539_v29  ;;  %v4540_v35 = vunpack.i.l.bf16 %v4539_v29  ;;  %v720_v29 = vld [vmem:[%s6100_s3 + $0x2c8] sm:$0xff] }
 0x1cb   :  { %v581_v47 = vsel %vm155_vm1, %v4536_v3, %v4540_v35  ;;  %v579_v6 = vsel %vm155_vm1, %v4541_v31, %v4535_v27  ;;  %v711_v3 = vld [vmem:[%s6100_s3 + $0x280] sm:$0xff]  ;;  %v713_v27 = vld [vmem:[%s6100_s3 + $0x290] sm:$0xff]  ;;  %v4292_v31 = vpack.c.bf16 %v717_v28, %v715_v10  ;;  %v756_v10 = vld [vmem:[%s6100_s3 + $0x3e8] sm:$0xff] }
 0x1cc   :  { %v590_v9 = vmax.f32 %v535_v44, %v579_v6  ;;  %v5194_v18 = vmax.f32 %v537_v57, %v581_v47  ;;  %v4288_v2 = vpack.c.bf16 %v713_v27, %v711_v3  ;;  %v719_v47 = vld [vmem:[%s6100_s3 + $0x2c0] sm:$0xff]  ;;  %v721_v6 = vld [vmem:[%s6100_s3 + $0x2d0] sm:$0xff]  ;;  %v752_v3 = vld [vmem:[%s6100_s3 + $0x3c8] sm:$0xff] }
 0x1cd   :  { %v4296_v36 = vpack.c.bf16 %v721_v6, %v719_v47  ;;  %v754_v27 = vld [vmem:[%s6100_s3 + $0x3d8] sm:$0xff]  ;;  %v760_v47 = vld [vmem:[%s6100_s3 + $0x408] sm:$0xff] }
 0x1ce   :  { %602 = vrot.lane.b32.xlu1 %v590_v9, %s4600_s21  ;;  %v4542_v55 = vpack.i.bf16 %v5194_v18, %v591_v43  ;;  %v4326_v61 = vpack.c.bf16 %v754_v27, %v752_v3  ;;  %v758_v28 = vld [vmem:[%s6100_s3 + $0x3f8] sm:$0xff]  ;;  %v783_v3 = vld [vmem:[%s6100_s3 + $0x4c0] sm:$0xff]  ;;  %v785_v27 = vld [vmem:[%s6100_s3 + $0x4d0] sm:$0xff] }
 0x1cf   :  { %v762_v6 = vld [vmem:[%s6100_s3 + $0x418] sm:$0xff] }
 0x1d0   :  { %4543 = vrot.lane.b32.xlu0 %v4542_v55, %s4600_s21  ;;  %v725_v55 = vld [vmem:[%s6100_s3 + $0x2f0] sm:$0xff] }
 0x1d2   :  { %577 = vrot.lane.b32.xlu1 %v560_v5, %s4598_s1 }
 0x1d4   :  { %575 = vrot.lane.b32.xlu0 %v539_v17, %s4598_s1 }
 0x240   :  { %v603_v40 = vpop.permute.xlu1 %602 }
 0x242   :  { %v5209_v46 = vpop.permute.xlu0 %4543 }
 0x243   :  { %v4546_v57 = vunpack.i.h.bf16 %v5209_v46  ;;  %v4545_v44 = vunpack.i.l.bf16 %v5209_v46  ;;  %v765_v46 = vld [vmem:[%s6100_s3 + $0x430] sm:$0xff] }
 0x244   :  { %v578_v41 = vpop.permute.xlu1 %577 }
 0x245   :  { %v5225_v52 = vmax.f32 %v560_v5, %v578_v41  ;;  %v615_v12 = vsel %vm255_vm3, %v4545_v44, %v4546_v57  ;;  %v614_v32 = vsel %vm255_vm3, %v603_v40, %v4545_v44  ;;  %v728_v5 = vld [vmem:[%s6100_s3 + $0x308] sm:$0xff]  ;;  %v730_v40 = vld [vmem:[%s6100_s3 + $0x318] sm:$0xff]  ;;  %v4300_v44 = vpack.c.bf16 %v725_v55, %v723_v39  ;;  %v759_v55 = vld [vmem:[%s6100_s3 + $0x400] sm:$0xff] }
 0x246   :  { %v576_v53 = vpop.permute.xlu0 %575  ;;  %v626_v54 = vmax.f32 %v591_v43, %v615_v12  ;;  %v625_v14 = vmax.f32 %v590_v9, %v614_v32  ;;  %v724_v9 = vld [vmem:[%s6100_s3 + $0x2e8] sm:$0xff]  ;;  %v726_v43 = vld [vmem:[%s6100_s3 + $0x2f8] sm:$0xff]  ;;  %v4302_v8 = vpack.c.bf16 %v730_v40, %v728_v5  ;;  %v4306_v32 = vpack.c.bf16 %v734_v48, %v732_v13  ;;  %v761_v5 = vld [vmem:[%s6100_s3 + $0x410] sm:$0xff] }
 0x247   :  { %v582_v16 = vsel %vm155_vm1, %v4540_v35, %v576_v53  ;;  %v583_v51 = vsel %vm155_vm1, %v576_v53, %v578_v41  ;;  %612 = vrot.lane.b32.xlu1 %v5225_v52, %s4600_s21  ;;  %v4294_v35 = vpack.c.bf16 %v722_v30, %v720_v29  ;;  %v4298_v38 = vpack.c.bf16 %v726_v43, %v724_v9  ;;  %v729_v41 = vld [vmem:[%s6100_s3 + $0x310] sm:$0xff]  ;;  %v731_v53 = vld [vmem:[%s6100_s3 + $0x320] sm:$0xff]  ;;  %v764_v40 = vld [vmem:[%s6100_s3 + $0x428] sm:$0xff] }
 0x248   :  { %v5243_v42 = vmax.f32 %v538_v60, %v582_v16  ;;  %v5247_v1 = vmax.f32 %v539_v17, %v583_v51  ;;  %860 = vmatprep.mubr.f32.mxu0 %v626_v54  ;;  %v4278_v60 = vpack.c.bf16 %v706_v21, %v704_v20  ;;  %v705_v17 = vld [vmem:[%s6100_s3 + $0x250] sm:$0xff]  ;;  %v4304_v12 = vpack.c.bf16 %v729_v41, %v727_v19  ;;  %v742_v20 = vld [vmem:[%s6100_s3 + $0x378] sm:$0xff] }
 0x249   :  { %861 = vmatmul.mubr.f32.vlgmr.msra.gmra.mrb[0].mxu0 %v625_v14  ;;  %v4280_v58 = vpack.c.bf16 %v705_v17, %v703_v49  ;;  %v733_v54 = vld [vmem:[%s6100_s3 + $0x330] sm:$0xff]  ;;  %v736_v14 = vld [vmem:[%s6100_s3 + $0x348] sm:$0xff]  ;;  %v746_v17 = vld [vmem:[%s6100_s3 + $0x398] sm:$0xff]  ;;  %v4330_v30 = vpack.c.bf16 %v758_v28, %v756_v10  ;;  %v4334_v43 = vpack.c.bf16 %v762_v6, %v760_v47 }
 0x24a   :  { %v4547_v22 = vpack.i.bf16 %v5247_v1, %v5243_v42  ;;  %4273 = vmatpush1.bf16.msra.mxu0 %v4272_v15  ;;  %v738_v15 = vld [vmem:[%s6100_s3 + $0x358] sm:$0xff]  ;;  %v4308_v16 = vpack.c.bf16 %v733_v54, %v731_v53  ;;  %v744_v49 = vld [vmem:[%s6100_s3 + $0x388] sm:$0xff]  ;;  %v763_v53 = vld [vmem:[%s6100_s3 + $0x420] sm:$0xff] }
 0x24b   :  { %4275 = vmatprep.subr.bf16.mxu0 %v4274_v63  ;;  %v4310_v51 = vpack.c.bf16 %v738_v15, %v736_v14  ;;  %v735_v63 = vld [vmem:[%s6100_s3 + $0x340] sm:$0xff]  ;;  %v4318_v34 = vpack.c.bf16 %v746_v17, %v744_v49  ;;  %v4340_v54 = vpack.c.bf16 %v765_v46, %v763_v53  ;;  %v769_v15 = vld [vmem:[%s6100_s3 + $0x450] sm:$0xff] }
 0x24c   :  { %4548 = vrot.lane.b32.xlu0 %v4547_v22, %s4600_s21  ;;  %v4312_v21 = vpack.c.bf16 %v737_v24, %v735_v63  ;;  %v4314_v22 = vpack.c.bf16 %v742_v20, %v740_v26  ;;  %v771_v26 = vld [vmem:[%s6100_s3 + $0x460] sm:$0xff]  ;;  %v773_v20 = vld [vmem:[%s6100_s3 + $0x470] sm:$0xff]  ;;  %s4612_s21 = smov 106  }
 0x24d   :  { %v775_v49 = vld [vmem:[%s6100_s3 + $0x480] sm:$0xff]  ;;  %v777_v17 = vld [vmem:[%s6100_s3 + $0x490] sm:$0xff] }
 0x24e   :  { %4277 = vmatpush1.bf16.msra.mxu0 %v4276_v50  ;;  %v739_v50 = vld [vmem:[%s6100_s3 + $0x360] sm:$0xff]  ;;  %v789_v28 = vld [vmem:[%s6100_s3 + $0x4f0] sm:$0xff] }
 0x24f   :  { %4279 = vmatprep.subr.bf16.mxu0 %v4278_v60  ;;  %v741_v60 = vld [vmem:[%s6100_s3 + $0x370] sm:$0xff]  ;;  %v787_v10 = vld [vmem:[%s6100_s3 + $0x4e0] sm:$0xff] }
 0x250   :  { %v4316_v45 = vpack.c.bf16 %v741_v60, %v739_v50  ;;  %v4348_v50 = vpack.c.bf16 %v773_v20, %v771_v26 }
 0x252   :  { %4281 = vmatpush1.bf16.msra.mxu0 %v4280_v58  ;;  %v743_v58 = vld [vmem:[%s6100_s3 + $0x380] sm:$0xff] }
 0x253   :  { %4283 = vmatprep.subr.bf16.mxu0 %v4282_v56  ;;  %v745_v56 = vld [vmem:[%s6100_s3 + $0x390] sm:$0xff] }
 0x254   :  { %v4320_v59 = vpack.c.bf16 %v745_v56, %v743_v58  ;;  %v4352_v58 = vpack.c.bf16 %v777_v17, %v775_v49  ;;  %v4557_v49 = vld [vmem:[%s6101_s4 + $0x20] sm:$0xff]   ;;  %v4561_v17 = vld [vmem:[%s6101_s4 + $0x8] sm:$0xff]  }
 0x256   :  { %4285 = vmatpush1.bf16.msra.mxu0 %v4284_v7  ;;  %v747_v7 = vld [vmem:[%s6100_s3 + $0x3a0] sm:$0xff] }
 0x257   :  { %4287 = vmatprep.subr.bf16.mxu0 %v4286_v25  ;;  %v749_v25 = vld [vmem:[%s6100_s3 + $0x3b0] sm:$0xff] }
 0x258   :  { %v4324_v33 = vpack.c.bf16 %v749_v25, %v747_v7  ;;  %v4356_v7 = vpack.c.bf16 %v781_v4, %v779_v62  ;;  %v4559_v4 = vld [vmem:[%s6101_s4 + $0x30] sm:$0xff]  }
 0x25a   :  { %4289 = vmatpush1.bf16.msra.mxu0 %v4288_v2  ;;  %v751_v2 = vld [vmem:[%s6100_s3 + $0x3c0] sm:$0xff] }
 0x25b   :  { %4291 = vmatprep.subr.bf16.mxu0 %v4290_v11  ;;  %v753_v11 = vld [vmem:[%s6100_s3 + $0x3d0] sm:$0xff] }
 0x25c   :  { %v4328_v29 = vpack.c.bf16 %v753_v11, %v751_v2  ;;  %v4360_v2 = vpack.c.bf16 %v785_v27, %v783_v3  ;;  %v4560_v3 = vld [vmem:[%s6101_s4 + $0x38] sm:$0xff]  }
 0x25e   :  { %4293 = vmatpush1.bf16.msra.mxu0 %v4292_v31  ;;  %v755_v31 = vld [vmem:[%s6100_s3 + $0x3e0] sm:$0xff] }
 0x25f   :  { %4295 = vmatprep.subr.bf16.mxu0 %v4294_v35  ;;  %v757_v35 = vld [vmem:[%s6100_s3 + $0x3f0] sm:$0xff] }
 0x260   :  { %v4332_v9 = vpack.c.bf16 %v757_v35, %v755_v31  ;;  %v791_v35 = vld [vmem:[%s6100_s3 + $0x500] sm:$0xff] }
 0x262   :  { %4297 = vmatpush1.bf16.msra.mxu0 %v4296_v36 }
 0x263   :  { %4299 = vmatprep.subr.bf16.mxu0 %v4298_v38 }
 0x266   :  { %4301 = vmatpush1.bf16.msra.mxu0 %v4300_v44  ;;  %v766_v44 = vld [vmem:[%s6100_s3 + $0x438] sm:$0xff] }
 0x267   :  { %4303 = vmatprep.subr.bf16.mxu0 %v4302_v8 }
 0x26a   :  { %4305 = vmatpush1.bf16.msra.mxu0 %v4304_v12  ;;  %v4336_v12 = vpack.c.bf16 %v761_v5, %v759_v55 }
 0x26b   :  { %4307 = vmatprep.subr.bf16.mxu0 %v4306_v32  ;;  %v4338_v32 = vpack.c.bf16 %v766_v44, %v764_v40  ;;  %v4554_v44 = vld [vmem:[%s6101_s4] sm:$0xff]  }
 0x26e   :  { %4309 = vmatpush1.bf16.msra.mxu0 %v4308_v16  ;;  %v772_v16 = vld [vmem:[%s6100_s3 + $0x468] sm:$0xff] }
 0x26f   :  { %4311 = vmatprep.subr.bf16.mxu0 %v4310_v51  ;;  %v774_v51 = vld [vmem:[%s6100_s3 + $0x478] sm:$0xff] }
 0x270   :  { %v4346_v24 = vpack.c.bf16 %v774_v51, %v772_v16 }
 0x272   :  { %4313 = vmatpush1.bf16.msra.mxu0 %v4312_v21  ;;  %v776_v21 = vld [vmem:[%s6100_s3 + $0x488] sm:$0xff] }
 0x273   :  { %4315 = vmatprep.subr.bf16.mxu0 %v4314_v22  ;;  %v778_v22 = vld [vmem:[%s6100_s3 + $0x498] sm:$0xff] }
 0x274   :  { %v4350_v60 = vpack.c.bf16 %v778_v22, %v776_v21 }
 0x276   :  { %4317 = vmatpush1.bf16.msra.mxu0 %v4316_v45  ;;  %v780_v45 = vld [vmem:[%s6100_s3 + $0x4a8] sm:$0xff] }
 0x277   :  { %4319 = vmatprep.subr.bf16.mxu0 %v4318_v34  ;;  %v782_v34 = vld [vmem:[%s6100_s3 + $0x4b8] sm:$0xff] }
 0x278   :  { %v4354_v56 = vpack.c.bf16 %v782_v34, %v780_v45 }
 0x27a   :  { %4321 = vmatpush1.bf16.msra.mxu0 %v4320_v59  ;;  %v784_v59 = vld [vmem:[%s6100_s3 + $0x4c8] sm:$0xff] }
 0x27b   :  { %4323 = vmatprep.subr.bf16.mxu0 %v4322_v23  ;;  %v786_v23 = vld [vmem:[%s6100_s3 + $0x4d8] sm:$0xff] }
 0x27c   :  { %v4358_v25 = vpack.c.bf16 %v786_v23, %v784_v59 }
 0x27e   :  { %4325 = vmatpush1.bf16.msra.mxu0 %v4324_v33  ;;  %v788_v33 = vld [vmem:[%s6100_s3 + $0x4e8] sm:$0xff] }
 0x27f   :  { %4327 = vmatprep.subr.bf16.mxu0 %v4326_v61  ;;  %v790_v61 = vld [vmem:[%s6100_s3 + $0x4f8] sm:$0xff] }
 0x280   :  { %v4362_v11 = vpack.c.bf16 %v790_v61, %v788_v33  ;;  %v4562_v61 = vld [vmem:[%s6101_s4 + $0x40] sm:$0xff]  }
 0x282   :  { %4329 = vmatpush1.bf16.msra.mxu0 %v4328_v29  ;;  %v4364_v29 = vpack.c.bf16 %v789_v28, %v787_v10 }
 0x283   :  { %4331 = vmatprep.subr.bf16.mxu0 %v4330_v30  ;;  %v792_v30 = vld [vmem:[%s6100_s3 + $0x508] sm:$0xff] }
 0x286   :  { %4333 = vmatpush1.bf16.msra.mxu0 %v4332_v9 }
 0x287   :  { %4335 = vmatprep.subr.bf16.mxu0 %v4334_v43 }
 0x2b9   :  { %v5442_v8 = vpop.permute.xlu1 %612 }
 0x2be   :  { %v5426_v36 = vpop.permute.xlu0 %4548 }
 0x2bf   :  { %v4551_v38 = vunpack.i.h.bf16 %v5426_v36  ;;  %v4550_v39 = vunpack.i.l.bf16 %v5426_v36 }
 0x2c1   :  { %v616_v19 = vsel %vm255_vm3, %v4546_v57, %v4550_v39  ;;  %v617_v41 = vsel %vm255_vm3, %v4550_v39, %v4551_v38  ;;  %v630_v57 = vmax.f32 %v5225_v52, %v5442_v8  ;;  %v767_v52 = vld [vmem:[%s6100_s3 + $0x440] sm:$0xff]  ;;  %v618_v31 = vsel %vm255_vm3, %v4551_v38, %v5442_v8  ;;  %v1652_v8 = vld [vmem:[%s6102_s5 + $0x8] sm:$0xff] }
 0x2c2   :  { %v627_v13 = vmax.f32 %v5194_v18, %v616_v19  ;;  %v628_v48 = vmax.f32 %v5243_v42, %v617_v41  ;;  %v768_v18 = vld [vmem:[%s6100_s3 + $0x448] sm:$0xff]  ;;  %v770_v42 = vld [vmem:[%s6100_s3 + $0x458] sm:$0xff]  ;;  %v4344_v63 = vpack.c.bf16 %v769_v15, %v767_v52  ;;  %v629_v47 = vmax.f32 %v5247_v1, %v618_v31  ;;  %v1651_v19 = vld [vmem:[%s6102_s5] sm:$0xff] }
 0x2c3   :  { %v4342_v14 = vpack.c.bf16 %v770_v42, %v768_v18  ;;  %vm1243_vm3 = vcmask 965632   ;;  %v4556_v15 = vld [vmem:[%s6101_s4 + $0x18] sm:$0xff]  }
 0x2c4   :  { %931 = vmatprep.mubr.f32.mxu0 %v628_v48 }
 0x2c5   :  { %932 = vmatmul.mubr.f32.vlgmr.msra.gmra.mrb[0].mxu0 %v627_v13 }
 0x2c6   :  { %4337 = vmatpush1.bf16.msra.mxu0 %v4336_v12  ;;  %3704 = vmatprep.mubr.msk.f32.mxu0 %vm553_vm9, %v630_v57 }
 0x2c7   :  { %4339 = vmatprep.subr.bf16.mxu0 %v4338_v32  ;;  %v4555_v32 = vld [vmem:[%s6101_s4 + $0x10] sm:$0xff]  }
 0x2ca   :  { %4341 = vmatpush1.bf16.msra.mxu0 %v4340_v54 }
 0x2cb   :  { %4343 = vmatprep.subr.bf16.mxu0 %v4342_v14 }
 0x2ce   :  { %4345 = vmatpush1.bf16.msra.mxu0 %v4344_v63 }
 0x2cf   :  { %4347 = vmatprep.subr.bf16.mxu0 %v4346_v24 }
 0x2d2   :  { %4349 = vmatpush1.bf16.msra.mxu0 %v4348_v50 }
 0x2d3   :  { %4351 = vmatprep.subr.bf16.mxu0 %v4350_v60 }
 0x2d6   :  { %4353 = vmatpush1.bf16.msra.mxu0 %v4352_v58  ;;  %v4558_v58 = vld [vmem:[%s6101_s4 + $0x28] sm:$0xff]  }
 0x2d7   :  { %4355 = vmatprep.subr.bf16.mxu0 %v4354_v56 }
 0x2da   :  { %4357 = vmatpush1.bf16.msra.mxu0 %v4356_v7 }
 0x2db   :  { %4359 = vmatprep.subr.bf16.mxu0 %v4358_v25 }
 0x2de   :  { %4361 = vmatpush1.bf16.msra.mxu0 %v4360_v2 }
 0x2df   :  { %4363 = vmatprep.subr.bf16.mxu0 %v4362_v11 }
 0x2e2   :  { %4365 = vmatpush1.bf16.msra.mxu0 %v4364_v29 }
 0x2e3   :  { %970 = vmatprep.subr.mxu0 %v792_v30 }
 0x2e6   :  { %971 = vmatpush1.msra.mxu0 %v791_v35 }
 0x2e7   :  { %1003 = vmatmul.mubr.f32.vlgmr.msra.gmra.mrb[0].mxu0 %v629_v47 }
 0x2e8   :  { %1093 = vmatprep.mubr.bf16.mxu0 %v4597_v0 }
 0x3ba   :  { %v1004_v6 = vpop.f32.mrb[0].mxu0 }
 0x3bb   :  { %v1006_v9 = vpop.f32.mrb[1].mxu0 }
 0x3bc   :  { %v3916_v43 = vpack.c.bf16 %v1006_v9, %v1004_v6 }
 0x3be   :  { %1020 = vrot.lane.b32.xlu0 %v3916_v43, %s4607_s0 }
 0x430   :  { %v1021_v36 = vpop.permute.xlu0 %1020 }
 0x431   :  { %v1022_v1 = vrot.slane %v1021_v36, 4 }
 0x433   :  { %v1024_v38 = vsel %vm1023_vm15, %v1022_v1, %v1021_v36 }
 0x434   :  { %1029 = vst.msk [vmem:[#allocation3] sm:$0xff] %vm1028_vm0, %v1024_v38 }
 0x43b   :  { %v1030_v39 = vld [vmem:[#allocation3] sm:$0xff] }
 0x43c   :  { %v3709_v55 = vcombine.low %v1030_v39, %v1030_v39  ;;  %v3710_v5 = vcombine.high %v1030_v39, %v1030_v39 }
 0x43e   :  { %1171 = vrot.lane.b32.xlu0 %v3710_v5, %s4599_s2  ;;  %3714 = vmatprep.subr.msk.bf16.mxu1 %vm1009_vm10, %v3710_v5  ;;  %v1113_v40 = vsel %vm1009_vm10, %v3709_v55, 0 }
 0x43f   :  { %1169 = vrot.lane.b32.xlu1 %v3709_v55, %s4599_s2  ;;  %1119 = vmatpush1.bf16.msra.mxu1 %v1113_v40 }
 0x442   :  { %1241 = vrot.lane.b32.xlu0 %v3710_v5, %s4608_s22  ;;  %3715 = vmatmul.mubr.msk.bf16.vlgmr.msra.gmra.mrb[0].mxu1 %vm553_vm9, %v4554_v44 }
 0x443   :  { %1239 = vrot.lane.b32.xlu1 %v3709_v55, %s4608_s22  ;;  %1216 = vmatprep.mubr.bf16.mxu1 %v4597_v0 }
 0x446   :  { %1311 = vrot.lane.b32.xlu0 %v3710_v5, %s4609_s24 }
 0x447   :  { %1309 = vrot.lane.b32.xlu1 %v3709_v55, %s4609_s24  ;;  %s4616_s24 = smov 122  }
 0x44a   :  { %1381 = vrot.lane.b32.xlu0 %v3710_v5, %s4610_s25 }
 0x44b   :  { %1379 = vrot.lane.b32.xlu1 %v3709_v55, %s4610_s25 }
 0x44e   :  { %1451 = vrot.lane.b32.xlu0 %v3710_v5, %s4602_s23 }
 0x44f   :  { %1449 = vrot.lane.b32.xlu1 %v3709_v55, %s4602_s23 }
 0x452   :  { %1521 = vrot.lane.b32.xlu0 %v3710_v5, %s4611_s26 }
 0x453   :  { %1519 = vrot.lane.b32.xlu1 %v3709_v55, %s4611_s26  ;;  %s4617_s26 = smov 120  }
 0x456   :  { %1048 = vrot.lane.b32.xlu0 %v3710_v5, %s4598_s1 }
 0x457   :  { %1046 = vrot.lane.b32.xlu1 %v3709_v55, %s4598_s1 }
 0x45a   :  { %1591 = vrot.lane.b32.xlu0 %v3710_v5, %s4612_s21 }
 0x45b   :  { %1589 = vrot.lane.b32.xlu1 %v3709_v55, %s4612_s21  ;;  %s4618_s21 = smov 114  }
 0x45e   :  { %1660 = vperm.xlu0 %4510, %v1652_v8  }
 0x45f   :  { %1655 = vperm.xlu1 %4521, %v1651_v19  }
 0x4b0   :  { %v1172_v41 = vpop.permute.xlu0 %1171 }
 0x4b1   :  { %v1170_v13 = vpop.permute.xlu1 %1169  ;;  %3719 = vmatprep.subr.msk.bf16.mxu1 %vm1009_vm10, %v1172_v41 }
 0x4b2   :  { %v1174_v48 = vsel %vm205_vm2, %v1170_v13, %v1172_v41  ;;  %vm1313_vm2 = vcmask 957440   ;;  %v4613_v41 = vmov 0.0|0.0   ;;  %v1730_v13 = vld [vmem:[%s6103_s6] sm:$0xff] }
 0x4b3   :  { %v1179_v12 = vsel %vm1009_vm10, %v1174_v48, 0  ;;  %v1731_v48 = vld [vmem:[%s6103_s6 + $0x8] sm:$0xff] }
 0x4b4   :  { %1185 = vmatpush1.bf16.msra.mxu1 %v1179_v12  ;;  %v1242_v53 = vpop.permute.xlu0 %1241  ;;  %v1732_v12 = vld [vmem:[%s6103_s6 + $0x10] sm:$0xff] }
 0x4b5   :  { %v1240_v46 = vpop.permute.xlu1 %1239  ;;  %3724 = vmatprep.subr.msk.bf16.mxu1 %vm1009_vm10, %v1242_v53 }
 0x4b6   :  { %v1244_v57 = vsel %vm1243_vm3, %v1240_v46, %v1242_v53  ;;  %v1733_v53 = vld [vmem:[%s6103_s6 + $0x18] sm:$0xff] }
 0x4b7   :  { %v1249_v18 = vsel %vm1009_vm10, %v1244_v57, 0  ;;  %3720 = vmatmul.mubr.msk.bf16.vlgmr.msra.gmra.mrb[0].mxu1 %vm553_vm9, %v4555_v32  ;;  %v4367_v32 = vpack.c.bf16 %v1731_v48, %v1730_v13  ;;  %v4370_v46 = vpack.c.bf16 %v1733_v53, %v1732_v12  ;;  %v4563_v12 = vld [vmem:[%s6104_s7 + $0x10] sm:$0xff]  }
 0x4b8   :  { %1255 = vmatpush1.bf16.msra.mxu1 %v1249_v18  ;;  %v1312_v42 = vpop.permute.xlu0 %1311  ;;  %1286 = vmatprep.mubr.bf16.mxu1 %v4597_v0  ;;  %v1734_v18 = vld [vmem:[%s6103_s6 + $0x20] sm:$0xff] }
 0x4b9   :  { %v1310_v54 = vpop.permute.xlu1 %1309  ;;  %3729 = vmatprep.subr.msk.bf16.mxu1 %vm1009_vm10, %v1312_v42 }
 0x4ba   :  { %v1314_v16 = vsel %vm1313_vm2, %v1310_v54, %v1312_v42  ;;  %v1735_v42 = vld [vmem:[%s6103_s6 + $0x28] sm:$0xff] }
 0x4bb   :  { %v1319_v24 = vsel %vm1009_vm10, %v1314_v16, 0  ;;  %v4373_v54 = vpack.c.bf16 %v1735_v42, %v1734_v18  ;;  %v2531_v18 = vld [vmem:[%s6105_s8 + $0x10] sm:$0xff]  ;;  %v3596_v42 = vld [vmem:[%s6106_s12 + $0x8] sm:$0x3] }
 0x4bc   :  { %v1382_v14 = vpop.permute.xlu0 %1381 }
 0x4bd   :  { %v1380_v52 = vpop.permute.xlu1 %1379 }
 0x4be   :  { %v1384_v45 = vsel %vm1383_vm4, %v1380_v52, %v1382_v14  ;;  %v1736_v52 = vld [vmem:[%s6103_s6 + $0x30] sm:$0xff] }
 0x4bf   :  { %v1389_v34 = vsel %vm1009_vm10, %v1384_v45, 0 }
 0x4c0   :  { %v1452_v51 = vpop.permute.xlu0 %1451 }
 0x4c1   :  { %v1450_v63 = vpop.permute.xlu1 %1449 }
 0x4c2   :  { %v1454_v56 = vsel %vm355_vm5, %v1450_v63, %v1452_v51  ;;  %vm1593_vm5 = vcmask 867328   ;;  %v1739_v63 = vld [vmem:[%s6103_s6 + $0x48] sm:$0xff] }
 0x4c3   :  { %3725 = vmatmul.mubr.msk.bf16.vlgmr.msra.gmra.mrb[0].mxu1 %vm553_vm9, %v4556_v15  ;;  %v1459_v62 = vsel %vm1009_vm10, %v1454_v56, 0  ;;  %v1737_v15 = vld [vmem:[%s6103_s6 + $0x38] sm:$0xff] }
 0x4c4   :  { %1325 = vmatpush1.bf16.msra.mxu1 %v1319_v24  ;;  %v1522_v26 = vpop.permute.xlu0 %1521  ;;  %1356 = vmatprep.mubr.bf16.mxu1 %v4597_v0  ;;  %v4376_v16 = vpack.c.bf16 %v1737_v15, %v1736_v52  ;;  %v4564_v52 = vld [vmem:[%s6104_s7 + $0x18] sm:$0xff]   ;;  %v4565_v15 = vld [vmem:[%s6104_s7] sm:$0xff]  }
 0x4c5   :  { %3734 = vmatprep.subr.msk.bf16.mxu1 %vm1009_vm10, %v1382_v14  ;;  %v1520_v20 = vpop.permute.xlu1 %1519 }
 0x4c6   :  { %v1524_v59 = vsel %vm1523_vm6, %v1520_v20, %v1522_v26  ;;  %v1741_v20 = vld [vmem:[%s6103_s6 + $0x58] sm:$0xff] }
 0x4c7   :  { %v1529_v23 = vsel %vm1009_vm10, %v1524_v59, 0 }
 0x4c8   :  { %v1049_v21 = vpop.permute.xlu0 %1048 }
 0x4c9   :  { %v1047_v22 = vpop.permute.xlu1 %1046  ;;  %3711 = vmatprep.subr.msk.bf16.mxu0 %vm1009_vm10, %v1049_v21 }
 0x4ca   :  { %v1051_v50 = vsel %vm155_vm1, %v1047_v22, %v1049_v21  ;;  %v1742_v22 = vld [vmem:[%s6103_s6 + $0x60] sm:$0xff] }
 0x4cb   :  { %v1056_v60 = vsel %vm1009_vm10, %v1051_v50, 0  ;;  %v1743_v50 = vld [vmem:[%s6103_s6 + $0x68] sm:$0xff] }
 0x4cc   :  { %1062 = vmatpush1.bf16.msra.mxu0 %v1056_v60  ;;  %v1592_v7 = vpop.permute.xlu0 %1591  ;;  %v4385_v60 = vpack.c.bf16 %v1743_v50, %v1742_v22  ;;  %v4570_v22 = vld [vmem:[%s6104_s7 + $0x38] sm:$0xff]   ;;  %v4571_v50 = vld [vmem:[%s6104_s7 + $0x40] sm:$0xff]  }
 0x4cd   :  { %4057 = vmatprep.subr.bf16.mxu0 %v4606_v37  ;;  %v1590_v25 = vpop.permute.xlu1 %1589 }
 0x4ce   :  { %v1594_v27 = vsel %vm1593_vm5, %v1590_v25, %v1592_v7 }
 0x4cf   :  { %3730 = vmatmul.mubr.msk.bf16.vlgmr.msra.gmra.mrb[0].mxu1 %vm553_vm9, %v4557_v49  ;;  %3712 = vmatmul.mubr.msk.bf16.vlgmr.msra.gmra.mrb[4].mxu0 %vm553_vm9, %v4561_v17  ;;  %v1599_v33 = vsel %vm1009_vm10, %v1594_v27, 0  ;;  %v1744_v49 = vld [vmem:[%s6103_s6 + $0x70] sm:$0xff]  ;;  %v1745_v17 = vld [vmem:[%s6103_s6 + $0x78] sm:$0xff] }
 0x4d0   :  { %1395 = vmatpush1.bf16.msra.mxu1 %v1389_v34  ;;  %1426 = vmatprep.mubr.bf16.mxu1 %v4597_v0  ;;  %v4388_v45 = vpack.c.bf16 %v1745_v17, %v1744_v49  ;;  %v1746_v34 = vld [vmem:[%s6103_s6 + $0x80] sm:$0xff]  ;;  %v1753_v27 = vld [vmem:[%s6103_s6 + $0xb8] sm:$0xff]  ;;  %v4572_v49 = vld [vmem:[%s6104_s7 + $0x48] sm:$0xff]  }
 0x4d1   :  { %3739 = vmatprep.subr.msk.bf16.mxu1 %vm1009_vm10, %v1452_v51  ;;  %v1738_v51 = vld [vmem:[%s6103_s6 + $0x40] sm:$0xff]  ;;  %v4573_v17 = vld [vmem:[%s6104_s7 + $0x50] sm:$0xff]   ;;  %4061 = vmatprep.mubr.msk.bf16.mxu0 %vm4620_vm11, %v4606_v37 }
 0x4d2   :  { %v4379_v24 = vpack.c.bf16 %v1739_v63, %v1738_v51  ;;  %v4566_v51 = vld [vmem:[%s6104_s7 + $0x8] sm:$0xff]   ;;  %v4567_v63 = vld [vmem:[%s6104_s7 + $0x20] sm:$0xff]  }
 0x4db   :  { %3735 = vmatmul.mubr.msk.bf16.vlgmr.msra.gmra.mrb[0].mxu1 %vm553_vm9, %v4558_v58  ;;  %v1747_v58 = vld [vmem:[%s6103_s6 + $0x88] sm:$0xff] }
 0x4dc   :  { %1465 = vmatpush1.bf16.msra.mxu1 %v1459_v62  ;;  %1496 = vmatprep.mubr.bf16.mxu1 %v4597_v0  ;;  %v4391_v56 = vpack.c.bf16 %v1747_v58, %v1746_v34  ;;  %v1748_v62 = vld [vmem:[%s6103_s6 + $0x90] sm:$0xff]  ;;  %v4574_v34 = vld [vmem:[%s6104_s7 + $0x58] sm:$0xff]   ;;  %v4575_v58 = vld [vmem:[%s6104_s7 + $0x60] sm:$0xff]  }
 0x4dd   :  { %3744 = vmatprep.subr.msk.bf16.mxu1 %vm1009_vm10, %v1522_v26  ;;  %v1661_v1 = vpop.permute.xlu0 %1660  ;;  %v1740_v26 = vld [vmem:[%s6103_s6 + $0x50] sm:$0xff] }
 0x4de   :  { %v1656_v35 = vpop.permute.xlu1 %1655  ;;  %v4382_v21 = vpack.c.bf16 %v1741_v20, %v1740_v26  ;;  %v4568_v26 = vld [vmem:[%s6104_s7 + $0x28] sm:$0xff]   ;;  %v4569_v20 = vld [vmem:[%s6104_s7 + $0x30] sm:$0xff]  }
 0x4e7   :  { %3740 = vmatmul.mubr.msk.bf16.vlgmr.msra.gmra.mrb[0].mxu1 %vm553_vm9, %v4559_v4  ;;  %v1749_v4 = vld [vmem:[%s6103_s6 + $0x98] sm:$0xff] }
 0x4e8   :  { %1535 = vmatpush1.bf16.msra.mxu1 %v1529_v23  ;;  %1566 = vmatprep.mubr.bf16.mxu1 %v4597_v0  ;;  %v4394_v59 = vpack.c.bf16 %v1749_v4, %v1748_v62  ;;  %v1750_v23 = vld [vmem:[%s6103_s6 + $0xa0] sm:$0xff]  ;;  %v4576_v62 = vld [vmem:[%s6104_s7 + $0x68] sm:$0xff]   ;;  %v4577_v4 = vld [vmem:[%s6104_s7 + $0x70] sm:$0xff]  }
 0x4e9   :  { %3749 = vmatprep.subr.msk.bf16.mxu1 %vm1009_vm10, %v1592_v7  ;;  %v1751_v7 = vld [vmem:[%s6103_s6 + $0xa8] sm:$0xff]  ;;  %vm1869_vm10 = vcmask 130048  }
 0x4ea   :  { %v4397_v25 = vpack.c.bf16 %v1751_v7, %v1750_v23  ;;  %v4578_v23 = vld [vmem:[%s6104_s7 + $0x78] sm:$0xff]   ;;  %v4579_v7 = vld [vmem:[%s6104_s7 + $0x80] sm:$0xff]  }
 0x4f3   :  { %3745 = vmatmul.mubr.msk.bf16.vlgmr.msra.gmra.mrb[0].mxu1 %vm553_vm9, %v4560_v3  ;;  %v1752_v3 = vld [vmem:[%s6103_s6 + $0xb0] sm:$0xff] }
 0x4f4   :  { %1605 = vmatpush1.bf16.msra.mxu1 %v1599_v33  ;;  %1636 = vmatprep.mubr.bf16.mxu1 %v4597_v0  ;;  %v4400_v33 = vpack.c.bf16 %v1753_v27, %v1752_v3 }
 0x4f5   :  { %4366 = vmatprep.subr.bf16.mxu1 %v4613_v41 }
 0x4ff   :  { %3750 = vmatmul.mubr.msk.bf16.vlgmr.msra.gmra.mrb[0].mxu1 %vm553_vm9, %v4562_v61  ;;  %v1754_v61 = vld [vmem:[%s6103_s6 + $0xc0] sm:$0xff]  ;;  %s4614_s6 = smov 7   ;;  %vm1843_vm9 = vcmask 646200  }
 0x500   :  { %4368 = vmatpush1.bf16.msra.mxu1 %v4367_v32 }
 0x501   :  { %4369 = vmatprep.subr.bf16.mxu1 %v4613_v41 }
 0x504   :  { %4371 = vmatpush1.bf16.msra.mxu1 %v4370_v46  ;;  %v2529_v46 = vld [vmem:[%s6105_s8] sm:$0xff] }
 0x505   :  { %4372 = vmatprep.subr.bf16.mxu1 %v4613_v41 }
 0x508   :  { %4374 = vmatpush1.bf16.msra.mxu1 %v4373_v54  ;;  %v3595_v54 = vld [vmem:[%s6106_s12] sm:$0xff] }
 0x509   :  { %4375 = vmatprep.subr.bf16.mxu1 %v4613_v41 }
 0x50c   :  { %4377 = vmatpush1.bf16.msra.mxu1 %v4376_v16 }
 0x50d   :  { %4378 = vmatprep.subr.bf16.mxu1 %v4613_v41 }
 0x510   :  { %4380 = vmatpush1.bf16.msra.mxu1 %v4379_v24 }
 0x511   :  { %4381 = vmatprep.subr.bf16.mxu1 %v4613_v41 }
 0x514   :  { %4383 = vmatpush1.bf16.msra.mxu1 %v4382_v21 }
 0x515   :  { %4384 = vmatprep.subr.bf16.mxu1 %v4613_v41 }
 0x518   :  { %4386 = vmatpush1.bf16.msra.mxu1 %v4385_v60 }
 0x519   :  { %4387 = vmatprep.subr.bf16.mxu1 %v4613_v41 }
 0x51c   :  { %4389 = vmatpush1.bf16.msra.mxu1 %v4388_v45 }
 0x51d   :  { %4390 = vmatprep.subr.bf16.mxu1 %v4613_v41 }
 0x520   :  { %4392 = vmatpush1.bf16.msra.mxu1 %v4391_v56 }
 0x521   :  { %4393 = vmatprep.subr.bf16.mxu1 %v4613_v41 }
 0x524   :  { %4395 = vmatpush1.bf16.msra.mxu1 %v4394_v59 }
 0x525   :  { %4396 = vmatprep.subr.bf16.mxu1 %v4613_v41 }
 0x528   :  { %4398 = vmatpush1.bf16.msra.mxu1 %v4397_v25  ;;  %v4580_v25 = vld [vmem:[%s6104_s7 + $0x88] sm:$0xff]  }
 0x529   :  { %4399 = vmatprep.subr.bf16.mxu1 %v4613_v41 }
 0x52c   :  { %4401 = vmatpush1.bf16.msra.mxu1 %v4400_v33 }
 0x52d   :  { %1809 = vmatprep.subr.mxu1 %v4606_v37 }
 0x530   :  { %1810 = vmatpush1.msra.mxu1 %v1754_v61 }
 0x5a2   :  { %v1095_v2 = vpop.f32.mrb[4].mxu0 }
 0x5a3   :  { %v1097_v11 = vpop.f32.mrb[5].mxu0 }
 0x5a4   :  { %v1099_v10 = vpop.f32.mrb[6].mxu0 }
 0x5a5   :  { %v1101_v28 = vpop.f32.mrb[7].mxu0 }
 0x5d2   :  { %v1638_v29 = vpop.f32.mrb[0].mxu1 }
 0x5d3   :  { %v4418_v30 = vadd.f32 %v1638_v29, %v1095_v2  ;;  %v1640_v31 = vpop.f32.mrb[1].mxu1 }
 0x5d4   :  { %v4419_v47 = vadd.f32 %v1640_v31, %v1097_v11  ;;  %v1642_v6 = vpop.f32.mrb[2].mxu1 }
 0x5d5   :  { %v5631_v9 = vadd.f32 %v4418_v30, %v1656_v35  ;;  %v4420_v43 = vadd.f32 %v1642_v6, %v1099_v10  ;;  %v1644_v36 = vpop.f32.mrb[3].mxu1 }
 0x5d6   :  { %v1664_v38 = vadd.f32 %v4419_v47, %v1656_v35  ;;  %v4421_v39 = vadd.f32 %v1644_v36, %v1101_v28 }
 0x5d7   :  { %v1667_v55 = vmax.f32 %v5631_v9, 0.0  ;;  %v5634_v5 = vadd.f32 %v4420_v43, %v1661_v1 }
 0x5d8   :  { %v1668_v40 = vmax.f32 %v1664_v38, 0.0  ;;  %v1666_v44 = vadd.f32 %v4421_v39, %v1661_v1 }
 0x5d9   :  { %v1669_v8 = vmax.f32 %v5634_v5, 0.0  ;;  %1689 = vrot.lane.b32.xlu1 %v1667_v55, %s4598_s1 }
 0x5da   :  { %1678 = vst.msk [vmem:[#allocation4 + $0x8] sm:$0xff] %vm1677_vm8, %v1668_v40  ;;  %v1670_v19 = vmax.f32 %v1666_v44, 0.0 }
 0x5dc   :  { %1680 = vst.msk [vmem:[#allocation4 + $0x18] sm:$0xff] %vm1677_vm8, %v1670_v19 }
 0x5dd   :  { %1693 = vrot.lane.b32.xlu1 %v1669_v8, %s4598_s1 }
 0x5e1   :  { %v5658_v57 = vld [vmem:[#allocation4 + $0x8] sm:$0xff] }
 0x5e2   :  { %1691 = vrot.lane.b32.xlu0 %v5658_v57, %s4598_s1 }
 0x5e3   :  { %v5669_v14 = vld [vmem:[#allocation4 + $0x18] sm:$0xff] }
 0x5e6   :  { %1695 = vrot.lane.b32.xlu0 %v5669_v14, %s4598_s1 }
 0x64b   :  { %v1690_v2 = vpop.permute.xlu1 %1689 }
 0x64f   :  { %v1694_v30 = vpop.permute.xlu1 %1693 }
 0x654   :  { %v1692_v11 = vpop.permute.xlu0 %1691 }
 0x655   :  { %v1697_v10 = vsel %vm155_vm1, %v1690_v2, %v1692_v11  ;;  %v1704_v28 = vmax.f32 %v5658_v57, %v1692_v11  ;;  %v2532_v57 = vld [vmem:[%s6105_s8 + $0x18] sm:$0xff] }
 0x656   :  { %v1703_v29 = vmax.f32 %v1667_v55, %v1697_v10 }
 0x657   :  { %1713 = vrot.lane.b32.xlu0 %v1704_v28, %s4608_s22 }
 0x658   :  { %1711 = vrot.lane.b32.xlu1 %v1703_v29, %s4608_s22  ;;  %v1696_v31 = vpop.permute.xlu0 %1695 }
 0x659   :  { %v1698_v35 = vsel %vm155_vm1, %v1694_v30, %v1696_v31  ;;  %v1706_v47 = vmax.f32 %v5669_v14, %v1696_v31  ;;  %vm1836_vm1 = vcmask 703488  }
 0x65a   :  { %v1705_v6 = vmax.f32 %v1669_v8, %v1698_v35  ;;  %1837 = vst.msk [vmem:[#allocation5] sm:$0xff] %vm1836_vm1, %v4597_v0  ;;  %v2530_v0 = vld [vmem:[%s6105_s8 + $0x8] sm:$0xff] }
 0x65b   :  { %1717 = vrot.lane.b32.xlu0 %v1706_v47, %s4608_s22 }
 0x65c   :  { %1715 = vrot.lane.b32.xlu1 %v1705_v6, %s4608_s22 }
 0x6c9   :  { %v1714_v43 = vpop.permute.xlu0 %1713 }
 0x6ca   :  { %v1727_v9 = vmax.f32 %v1704_v28, %v1714_v43  ;;  %v1712_v36 = vpop.permute.xlu1 %1711 }
 0x6cb   :  { %v1720_v1 = vsel %vm1243_vm3, %v1712_v36, %v1714_v43 }
 0x6cc   :  { %v1726_v38 = vmax.f32 %v1703_v29, %v1720_v1  ;;  %3751 = vmatprep.mubr.msk.f32.mxu1 %vm1677_vm8, %v1727_v9 }
 0x6cd   :  { %v1718_v39 = vpop.permute.xlu0 %1717 }
 0x6ce   :  { %v1729_v55 = vmax.f32 %v1706_v47, %v1718_v39  ;;  %v1716_v40 = vpop.permute.xlu1 %1715  ;;  %1826 = vmatmul.mubr.f32.vlgmr.msra.gmra.mrb[4].mxu1 %v1726_v38  ;;  %v4581_v38 = vld [vmem:[%s6107_s9] sm:$0x1f]  }
 0x6cf   :  { %v1721_v44 = vsel %vm1243_vm3, %v1716_v40, %v1718_v39  ;;  %v4582_v39 = vld [vmem:[%s6107_s9 + $0x20] sm:$0x1f]   ;;  %v4584_v40 = vld [vmem:[%s6107_s9 + $0x30] sm:$0x1f]  }
 0x6d0   :  { %v1728_v5 = vmax.f32 %v1705_v6, %v1721_v44  ;;  %3752 = vmatprep.mubr.msk.f32.mxu1 %vm1677_vm8, %v1729_v55  ;;  %v4583_v55 = vld [vmem:[%s6107_s9 + $0x8] sm:$0x1f]   ;;  %v4585_v44 = vld [vmem:[%s6107_s9 + $0x10] sm:$0x1f]  }
 0x6d2   :  { %1831 = vmatmul.mubr.f32.gmra.mrb[6].mxu1 %v1728_v5  ;;  %v4586_v5 = vld [vmem:[%s6107_s9 + $0x40] sm:$0x1f]  }
 0x6d3   :  { %4005 = vmatprep.mubr.msk.bf16.mxu1 %vm1869_vm10, %v4563_v12  ;;  %v4595_v12 = vld [vmem:[%s6107_s9 + $0x70] sm:$0x1f]  }
 0x7a1   :  { %v1827_v8 = vpop.f32.mrb[4].mxu1 }
 0x7a2   :  { %v1829_v19 = vpop.f32.mrb[5].mxu1 }
 0x7a3   :  { %v4588_v19 = vld [vmem:[%s6107_s9 + $0x50] sm:$0x1f]  }
 0x7a5   :  { %v1832_v41 = vpop.f32.mrb[6].mxu1 }
 0x7a6   :  { %v1838_v13 = vpack.c.bf16 %v1832_v41, %v1827_v8  ;;  %v1834_v48 = vpop.f32.mrb[7].mxu1  ;;  %v4587_v8 = vld [vmem:[%s6107_s9 + $0x18] sm:$0x1f]   ;;  %v4589_v41 = vld [vmem:[%s6107_s9 + $0x28] sm:$0x1f]  }
 0x7a7   :  { %v4591_v48 = vld [vmem:[%s6107_s9 + $0x38] sm:$0x1f]  }
 0x7a8   :  { %1840 = vrot.lane.b32.xlu1 %v1838_v13, %s4614_s6  ;;  %v4590_v13 = vld [vmem:[%s6107_s9 + $0x60] sm:$0x1f]  }
 0x81a   :  { %v1841_v32 = vpop.permute.xlu1 %1840 }
 0x81b   :  { %1844 = vst.msk [vmem:[#allocation5] sm:$0xff] %vm1843_vm9, %v1841_v32  ;;  %v4592_v32 = vld [vmem:[%s6107_s9 + $0x48] sm:$0x1f]  }
 0x822   :  { %v1845_v53 = vld [vmem:[#allocation5] sm:$0xff] }
 0x823   :  { %2005 = vrot.lane.b32.xlu1 %v1845_v53, %s4599_s2  ;;  %1866 = vrot.lane.b32.xlu0 %v1845_v53, %s4598_s1 }
 0x827   :  { %2159 = vrot.lane.b32.xlu1 %v1845_v53, %s4615_s20  ;;  %2082 = vrot.lane.b32.xlu0 %v1845_v53, %s4616_s24 }
 0x82b   :  { %2313 = vrot.lane.b32.xlu1 %v1845_v53, %s4610_s25  ;;  %2236 = vrot.lane.b32.xlu0 %v1845_v53, %s4617_s26 }
 0x82f   :  { %2467 = vrot.lane.b32.xlu1 %v1845_v53, %s4618_s21  ;;  %2390 = vrot.lane.b32.xlu0 %v1845_v53, %s4619_s27 }
 0x833   :  { %2540 = vperm.xlu1 %4521, %v2530_v0   ;;  %2535 = vperm.xlu0 %4510, %v2529_v46   ;;  %v4594_v0 = vld [vmem:[%s6107_s9 + $0x68] sm:$0x1f]   ;;  %v4596_v46 = vld [vmem:[%s6107_s9 + $0x78] sm:$0x1f]  }
 0x837   :  { %2550 = vperm.xlu1 %4521, %v2532_v57   ;;  %2545 = vperm.xlu0 %4510, %v2531_v18   ;;  %v3586_v57 = vld [vmem:[%s6108_s11] sm:$0xff]  ;;  %v3587_v18 = vld [vmem:[%s6108_s11 + $0x8] sm:$0xff] }
 0x83b   :  { %3604 = vperm.xlu1 %4521, %v3596_v42   ;;  %3599 = vperm.xlu0 %4510, %v3595_v54   ;;  %v4402_v42 = vpack.c.bf16 %v3587_v18, %v3586_v57  ;;  %v3589_v54 = vld [vmem:[%s6108_s11 + $0x18] sm:$0xff] }
 0x895   :  { %v1867_v14 = vpop.permute.xlu0 %1866  ;;  %v2006_v16 = vpop.permute.xlu1 %2005 }
 0x896   :  { %4003 = vmatprep.subr.bf16.mxu1 %v1867_v14 }
 0x897   :  { %4004 = vmatpush3.bf16.msra.mxu1 %v1867_v14 }
 0x898   :  { %4009 = vmatprep.subr.bf16.mxu1 %v1845_v53 }
 0x899   :  { %v2083_v24 = vpop.permute.xlu0 %2082  ;;  %v2160_v21 = vpop.permute.xlu1 %2159 }
 0x89a   :  { %4006 = vmatmul.mubr.msk.bf16.vlgmr.msra.gmra.mrb[8].mxu1 %vm1869_vm10, %v4564_v52  ;;  %v3590_v52 = vld [vmem:[%s6108_s11 + $0x20] sm:$0xff] }
 0x89b   :  { %4010 = vmatpush3.bf16.msra.mxu1 %v1845_v53  ;;  %4011 = vmatprep.mubr.msk.bf16.mxu1 %vm1869_vm10, %v4565_v15  ;;  %v4593_v53 = vld [vmem:[%s6107_s9 + $0x58] sm:$0x1f]   ;;  %v3591_v15 = vld [vmem:[%s6108_s11 + $0x28] sm:$0xff] }
 0x89c   :  { %4015 = vmatprep.subr.bf16.mxu1 %v2006_v16 }
 0x89d   :  { %v2237_v60 = vpop.permute.xlu0 %2236  ;;  %v2314_v45 = vpop.permute.xlu1 %2313 }
 0x8a1   :  { %v2391_v56 = vpop.permute.xlu0 %2390  ;;  %v2468_v59 = vpop.permute.xlu1 %2467 }
 0x8a6   :  { %4012 = vmatmul.mubr.msk.bf16.vlgmr.msra.gmra.mrb[8].mxu1 %vm1869_vm10, %v4566_v51  ;;  %v3592_v51 = vld [vmem:[%s6108_s11 + $0x30] sm:$0xff] }
 0x8a7   :  { %4016 = vmatpush3.bf16.msra.mxu1 %v2006_v16  ;;  %4017 = vmatprep.mubr.msk.bf16.mxu1 %vm1869_vm10, %v4567_v63  ;;  %v4410_v16 = vpack.c.bf16 %v3591_v15, %v3590_v52  ;;  %v3593_v63 = vld [vmem:[%s6108_s11 + $0x38] sm:$0xff] }
 0x8a8   :  { %4021 = vmatprep.subr.bf16.mxu1 %v2083_v24 }
 0x8b2   :  { %4018 = vmatmul.mubr.msk.bf16.vlgmr.msra.gmra.mrb[8].mxu1 %vm1869_vm10, %v4568_v26  ;;  %v2536_v3 = vpop.permute.xlu0 %2535  ;;  %v2541_v27 = vpop.permute.xlu1 %2540  ;;  %v3594_v26 = vld [vmem:[%s6108_s11 + $0x40] sm:$0xff] }
 0x8b3   :  { %4022 = vmatpush3.bf16.msra.mxu1 %v2083_v24  ;;  %4023 = vmatprep.mubr.msk.bf16.mxu1 %vm1869_vm10, %v4569_v20  ;;  %v4414_v24 = vpack.c.bf16 %v3593_v63, %v3592_v51 }
 0x8b4   :  { %4027 = vmatprep.subr.bf16.mxu1 %v2160_v21 }
 0x8b6   :  { %v2546_v33 = vpop.permute.xlu0 %2545  ;;  %v2551_v10 = vpop.permute.xlu1 %2550 }
 0x8be   :  { %4024 = vmatmul.mubr.msk.bf16.vlgmr.msra.gmra.mrb[8].mxu1 %vm1869_vm10, %v4570_v22 }
 0x8bf   :  { %4028 = vmatpush3.bf16.msra.mxu1 %v2160_v21  ;;  %4029 = vmatprep.mubr.msk.bf16.mxu1 %vm1869_vm10, %v4571_v50 }
 0x8c0   :  { %4033 = vmatprep.subr.bf16.mxu1 %v2237_v60 }
 0x8ca   :  { %4030 = vmatmul.mubr.msk.bf16.vlgmr.msra.gmra.mrb[8].mxu1 %vm1869_vm10, %v4572_v49 }
 0x8cb   :  { %4034 = vmatpush3.bf16.msra.mxu1 %v2237_v60  ;;  %4035 = vmatprep.mubr.msk.bf16.mxu1 %vm1869_vm10, %v4573_v17 }
 0x8cc   :  { %4039 = vmatprep.subr.bf16.mxu1 %v2314_v45 }
 0x8d6   :  { %4036 = vmatmul.mubr.msk.bf16.vlgmr.msra.gmra.mrb[8].mxu1 %vm1869_vm10, %v4574_v34  ;;  %v3823_v34 = vld [vmem:[%s6109_s10] ss:$0 sm:$0xff] }
 0x8d7   :  { %4040 = vmatpush3.bf16.msra.mxu1 %v2314_v45  ;;  %4041 = vmatprep.mubr.msk.bf16.mxu1 %vm1869_vm10, %v4575_v58  ;;  %v3829_v58 = vld [vmem:[%s6109_s10 + $0x1] ss:$0 sm:$0xff] }
 0x8d8   :  { %4045 = vmatprep.subr.bf16.mxu1 %v2391_v56 }
 0x8e2   :  { %4042 = vmatmul.mubr.msk.bf16.vlgmr.msra.gmra.mrb[8].mxu1 %vm1869_vm10, %v4576_v62 }
 0x8e3   :  { %4046 = vmatpush3.bf16.msra.mxu1 %v2391_v56  ;;  %4047 = vmatprep.mubr.msk.bf16.mxu1 %vm1869_vm10, %v4577_v4 }
 0x8e4   :  { %4051 = vmatprep.subr.bf16.mxu1 %v2468_v59 }
 0x8ee   :  { %4048 = vmatmul.mubr.msk.bf16.vlgmr.msra.gmra.mrb[8].mxu1 %vm1869_vm10, %v4578_v23 }
 0x8ef   :  { %4052 = vmatpush3.bf16.msra.mxu1 %v2468_v59  ;;  %4053 = vmatprep.mubr.msk.bf16.mxu1 %vm1869_vm10, %v4579_v7 }
 0x8f0   :  { %4089 = vmatprep.subr.bf16.mxu1 %v4606_v37 }
 0x8fa   :  { %4054 = vmatmul.mubr.msk.bf16.vlgmr.msra.gmra.mrb[8].mxu1 %vm1869_vm10, %v4580_v25 }
 0x8fb   :  { %4093 = vmatprep.mubr.msk.bf16.mxu1 %vm4620_vm11, %v4606_v37 }
 0x9cd   :  { %v4055_v61 = vpop.f32.mrb[8].mxu1 }
 0x9ce   :  { %v2555_v2 = vadd.f32 %v4055_v61, %v2546_v33  ;;  %v2510_v11 = vpop.f32.mrb[9].mxu1 }
 0x9cf   :  { %v2553_v28 = vadd.f32 %v2536_v3, %v2510_v11  ;;  %v4056_v29 = vpop.f32.mrb[10].mxu1 }
 0x9d0   :  { %v2556_v30 = vadd.f32 %v4056_v29, %v2551_v10  ;;  %v2513_v31 = vpop.f32.mrb[11].mxu1  ;;  %v2559_v47 = vmax.f32 %v2555_v2, 0.0 }
 0x9d1   :  { %v2554_v35 = vadd.f32 %v2541_v27, %v2513_v31  ;;  %v2557_v43 = vmax.f32 %v2553_v28, 0.0  ;;  %v3835_v28 = vld [vmem:[%s6109_s10 + $0x2] ss:$0 sm:$0xff] }
 0x9d2   :  { %v2560_v6 = vmax.f32 %v2556_v30, 0.0 }
 0x9d3   :  { %v2558_v9 = vmax.f32 %v2554_v35, 0.0 }
 0x9d4   :  { %v5856_v36 = vpack.c.bf16 %v2560_v6, %v2559_v47 }
 0x9d5   :  { %v5858_v1 = vpack.c.bf16 %v2558_v9, %v2557_v43 }
 0x9d7   :  { %4058 = vmatpush3.bf16.msra.mxu0 %v5858_v1  ;;  %4090 = vmatpush3.bf16.msra.mxu1 %v5858_v1 }
 0x9d8   :  { %4059 = vmatprep.subr.bf16.mxu0 %v4606_v37  ;;  %4091 = vmatprep.subr.bf16.mxu1 %v4606_v37 }
 0x9db   :  { %4060 = vmatpush3.bf16.msra.mxu0 %v5856_v36  ;;  %4092 = vmatpush3.bf16.msra.mxu1 %v5856_v36 }
 0x9dc   :  { %4065 = vmatprep.subr.bf16.mxu0 %v4606_v37  ;;  %4105 = vmatprep.subr.bf16.mxu1 %v4606_v37 }
 0x9de   :  { %4062 = vmatmul.mubr.msk.bf16.vlgmr.msra.gmra.mrb[8].mxu0 %vm2570_vm12, %v4581_v38  ;;  %4094 = vmatmul.mubr.msk.bf16.vlgmr.msra.gmra.mrb[12].mxu1 %vm2570_vm12, %v4582_v39 }
 0x9df   :  { %4066 = vmatpush3.bf16.msra.mxu0 %v5858_v1  ;;  %4106 = vmatpush3.bf16.msra.mxu1 %v5858_v1 }
 0x9e0   :  { %4067 = vmatprep.subr.bf16.mxu0 %v4606_v37  ;;  %4107 = vmatprep.subr.bf16.mxu1 %v4606_v37 }
 0x9e1   :  { %4069 = vmatprep.mubr.msk.bf16.mxu0 %vm4620_vm11, %v4606_v37  ;;  %4109 = vmatprep.mubr.msk.bf16.mxu1 %vm4620_vm11, %v4606_v37 }
 0x9e3   :  { %4068 = vmatpush3.bf16.msra.mxu0 %v5856_v36  ;;  %4108 = vmatpush3.bf16.msra.mxu1 %v5856_v36 }
 0x9e4   :  { %4073 = vmatprep.subr.bf16.mxu0 %v4606_v37  ;;  %4121 = vmatprep.subr.bf16.mxu1 %v4606_v37 }
 0x9e6   :  { %4070 = vmatmul.mubr.msk.bf16.vlgmr.msra.gmra.mrb[12].mxu0 %vm2570_vm12, %v4583_v55  ;;  %4110 = vmatmul.mubr.msk.bf16.vlgmr.msra.gmra.mrb[16].mxu1 %vm2570_vm12, %v4584_v40  ;;  %v3841_v55 = vld [vmem:[%s6109_s10 + $0x3] ss:$0 sm:$0xff]  ;;  %v3847_v40 = vld [vmem:[%s6109_s10 + $0x4] ss:$0 sm:$0xff] }
 0x9e7   :  { %4074 = vmatpush3.bf16.msra.mxu0 %v5858_v1  ;;  %4122 = vmatpush3.bf16.msra.mxu1 %v5858_v1 }
 0x9e8   :  { %4075 = vmatprep.subr.bf16.mxu0 %v4606_v37  ;;  %4123 = vmatprep.subr.bf16.mxu1 %v4606_v37 }
 0x9e9   :  { %4077 = vmatprep.mubr.msk.bf16.mxu0 %vm4620_vm11, %v4606_v37  ;;  %4125 = vmatprep.mubr.msk.bf16.mxu1 %vm4620_vm11, %v4606_v37 }
 0x9eb   :  { %4076 = vmatpush3.bf16.msra.mxu0 %v5856_v36  ;;  %4124 = vmatpush3.bf16.msra.mxu1 %v5856_v36 }
 0x9ec   :  { %4081 = vmatprep.subr.bf16.mxu0 %v4606_v37  ;;  %4137 = vmatprep.subr.bf16.mxu1 %v4606_v37 }
 0x9ee   :  { %4078 = vmatmul.mubr.msk.bf16.vlgmr.msra.gmra.mrb[16].mxu0 %vm2570_vm12, %v4585_v44  ;;  %4126 = vmatmul.mubr.msk.bf16.vlgmr.msra.gmra.mrb[20].mxu1 %vm2570_vm12, %v4586_v5 }
 0x9ef   :  { %4082 = vmatpush3.bf16.msra.mxu0 %v5858_v1  ;;  %4138 = vmatpush3.bf16.msra.mxu1 %v5858_v1 }
 0x9f0   :  { %4083 = vmatprep.subr.bf16.mxu0 %v4606_v37  ;;  %4139 = vmatprep.subr.bf16.mxu1 %v4606_v37 }
 0x9f1   :  { %4085 = vmatprep.mubr.msk.bf16.mxu0 %vm4620_vm11, %v4606_v37  ;;  %4141 = vmatprep.mubr.msk.bf16.mxu1 %vm4620_vm11, %v4606_v37 }
 0x9f3   :  { %4084 = vmatpush3.bf16.msra.mxu0 %v5856_v36  ;;  %4140 = vmatpush3.bf16.msra.mxu1 %v5856_v36 }
 0x9f4   :  { %4097 = vmatprep.subr.bf16.mxu0 %v4606_v37  ;;  %4153 = vmatprep.subr.bf16.mxu1 %v4606_v37 }
 0x9f6   :  { %4086 = vmatmul.mubr.msk.bf16.vlgmr.msra.gmra.mrb[20].mxu0 %vm2570_vm12, %v4587_v8  ;;  %4142 = vmatmul.mubr.msk.bf16.vlgmr.msra.gmra.mrb[24].mxu1 %vm2570_vm12, %v4588_v19 }
 0x9f7   :  { %4098 = vmatpush3.bf16.msra.mxu0 %v5858_v1  ;;  %4154 = vmatpush3.bf16.msra.mxu1 %v5858_v1 }
 0x9f8   :  { %4099 = vmatprep.subr.bf16.mxu0 %v4606_v37  ;;  %4155 = vmatprep.subr.bf16.mxu1 %v4606_v37 }
 0x9f9   :  { %4101 = vmatprep.mubr.msk.bf16.mxu0 %vm4620_vm11, %v4606_v37  ;;  %4157 = vmatprep.mubr.msk.bf16.mxu1 %vm4620_vm11, %v4606_v37 }
 0x9fb   :  { %4100 = vmatpush3.bf16.msra.mxu0 %v5856_v36  ;;  %4156 = vmatpush3.bf16.msra.mxu1 %v5856_v36 }
 0x9fc   :  { %4113 = vmatprep.subr.bf16.mxu0 %v4606_v37  ;;  %4169 = vmatprep.subr.bf16.mxu1 %v4606_v37 }
 0x9fe   :  { %4102 = vmatmul.mubr.msk.bf16.vlgmr.msra.gmra.mrb[24].mxu0 %vm2570_vm12, %v4589_v41  ;;  %4158 = vmatmul.mubr.msk.bf16.vlgmr.msra.gmra.mrb[28].mxu1 %vm2570_vm12, %v4590_v13 }
 0x9ff   :  { %4114 = vmatpush3.bf16.msra.mxu0 %v5858_v1  ;;  %4170 = vmatpush3.bf16.msra.mxu1 %v5858_v1 }
 0xa00   :  { %4115 = vmatprep.subr.bf16.mxu0 %v4606_v37  ;;  %4171 = vmatprep.subr.bf16.mxu1 %v4606_v37 }
 0xa01   :  { %4117 = vmatprep.mubr.msk.bf16.mxu0 %vm4620_vm11, %v4606_v37  ;;  %4173 = vmatprep.mubr.msk.bf16.mxu1 %vm4620_vm11, %v4606_v37 }
 0xa03   :  { %4116 = vmatpush3.bf16.msra.mxu0 %v5856_v36  ;;  %4172 = vmatpush3.bf16.msra.mxu1 %v5856_v36 }
 0xa04   :  { %4129 = vmatprep.subr.bf16.mxu0 %v4606_v37  ;;  %4403 = vmatprep.subr.bf16.mxu1 %v4402_v42 }
 0xa06   :  { %4118 = vmatmul.mubr.msk.bf16.vlgmr.msra.gmra.mrb[28].mxu0 %vm2570_vm12, %v4591_v48  ;;  %4174 = vmatmul.mubr.msk.bf16.vlgmr.msra.gmra.mrb[32].mxu1 %vm2570_vm12, %v4595_v12 }
 0xa07   :  { %4130 = vmatpush3.bf16.msra.mxu0 %v5858_v1  ;;  %4133 = vmatprep.mubr.msk.bf16.mxu0 %vm4620_vm11, %v4606_v37 }
 0xa08   :  { %4131 = vmatprep.subr.bf16.mxu0 %v4606_v37  ;;  %4405 = vmatpush3.bf16.msra.mxu1 %v4402_v42 }
 0xa0b   :  { %4132 = vmatpush3.bf16.msra.mxu0 %v5856_v36 }
 0xa0c   :  { %4145 = vmatprep.subr.bf16.mxu0 %v4606_v37 }
 0xa0e   :  { %4134 = vmatmul.mubr.msk.bf16.vlgmr.msra.gmra.mrb[32].mxu0 %vm2570_vm12, %v4592_v32 }
 0xa0f   :  { %4146 = vmatpush3.bf16.msra.mxu0 %v5858_v1  ;;  %4149 = vmatprep.mubr.msk.bf16.mxu0 %vm4620_vm11, %v4606_v37 }
 0xa10   :  { %4147 = vmatprep.subr.bf16.mxu0 %v4606_v37 }
 0xa13   :  { %4148 = vmatpush3.bf16.msra.mxu0 %v5856_v36 }
 0xa14   :  { %4161 = vmatprep.subr.bf16.mxu0 %v4606_v37 }
 0xa16   :  { %4150 = vmatmul.mubr.msk.bf16.vlgmr.msra.gmra.mrb[36].mxu0 %vm2570_vm12, %v4593_v53 }
 0xa17   :  { %4162 = vmatpush3.bf16.msra.mxu0 %v5858_v1  ;;  %4165 = vmatprep.mubr.msk.bf16.mxu0 %vm4620_vm11, %v4606_v37 }
 0xa18   :  { %4163 = vmatprep.subr.bf16.mxu0 %v4606_v37 }
 0xa1b   :  { %4164 = vmatpush3.bf16.msra.mxu0 %v5856_v36 }
 0xa1c   :  { %4177 = vmatprep.subr.bf16.mxu0 %v4606_v37 }
 0xa1e   :  { %4166 = vmatmul.mubr.msk.bf16.vlgmr.msra.gmra.mrb[40].mxu0 %vm2570_vm12, %v4594_v0 }
 0xa1f   :  { %4178 = vmatpush3.bf16.msra.mxu0 %v5858_v1  ;;  %4181 = vmatprep.mubr.msk.bf16.mxu0 %vm4620_vm11, %v4606_v37 }
 0xa20   :  { %4179 = vmatprep.subr.bf16.mxu0 %v4606_v37  ;;  %v3588_v37 = vld [vmem:[%s6108_s11 + $0x10] sm:$0xff] }
 0xa21   :  { %v4406_v14 = vpack.c.bf16 %v3589_v54, %v3588_v37  ;;  %v3853_v37 = vld [vmem:[%s6109_s10 + $0x5] ss:$0 sm:$0xff]  ;;  %v3859_v54 = vld [vmem:[%s6109_s10 + $0x6] ss:$0 sm:$0xff] }
 0xa23   :  { %4180 = vmatpush3.bf16.msra.mxu0 %v5856_v36  ;;  %4407 = vmatprep.subr.bf16.mxu1 %v4406_v14 }
 0xa24   :  { %4409 = vmatpush3.bf16.msra.mxu1 %v4406_v14 }
 0xa25   :  { %4411 = vmatprep.subr.bf16.mxu1 %v4410_v16 }
 0xa26   :  { %4182 = vmatmul.mubr.msk.bf16.vlgmr.msra.gmra.mrb[44].mxu0 %vm2570_vm12, %v4596_v46 }
 0xa28   :  { %4413 = vmatpush3.bf16.msra.mxu1 %v4410_v16 }
 0xa29   :  { %4415 = vmatprep.subr.bf16.mxu1 %v4414_v24 }
 0xa2c   :  { %4417 = vmatpush3.bf16.msra.mxu1 %v4414_v24 }
 0xa2d   :  { %4201 = vmatprep.subr.mxu1 %v3594_v26 }
 0xa30   :  { %4202 = vmatpush3.msra.mxu1 %v3594_v26 }
 0xab1   :  { %v2608_v20 = vpop.f32.mrb[8].mxu0  ;;  %v2863_v21 = vpop.f32.mrb[12].mxu1 }
 0xab2   :  { %v4063_v22 = vpop.f32.mrb[9].mxu0  ;;  %v4095_v50 = vpop.f32.mrb[13].mxu1  ;;  %v2622_v4 = vmul.f32 %v3823_v34, %v2608_v20  ;;  %v2878_v41 = vmul.f32 %v3847_v40, %v2863_v21 }
 0xab3   :  { %v2611_v60 = vpop.f32.mrb[10].mxu0  ;;  %v2866_v49 = vpop.f32.mrb[14].mxu1 }
 0xab4   :  { %v4064_v17 = vpop.f32.mrb[11].mxu0  ;;  %v4096_v45 = vpop.f32.mrb[15].mxu1  ;;  %v2623_v27 = vmul.f32 %v3823_v34, %v2611_v60  ;;  %v2879_v0 = vmul.f32 %v3847_v40, %v2866_v49  ;;  %v3865_v34 = vld [vmem:[%s6109_s10 + $0x7] ss:$0 sm:$0xff] }
 0xab9   :  { %v2671_v56 = vpop.f32.mrb[12].mxu0  ;;  %v2991_v62 = vpop.f32.mrb[16].mxu1 }
 0xaba   :  { %v2686_v59 = vmul.f32 %v3829_v58, %v2671_v56  ;;  %v4071_v23 = vpop.f32.mrb[13].mxu0  ;;  %v4111_v7 = vpop.f32.mrb[17].mxu1  ;;  %v3006_v63 = vmul.f32 %v3859_v54, %v2991_v62 }
 0xabb   :  { %v2674_v25 = vpop.f32.mrb[14].mxu0  ;;  %v2994_v3 = vpop.f32.mrb[18].mxu1 }
 0xabc   :  { %v2688_v33 = vadd.f32 %v2686_v59, %v2622_v4  ;;  %v2687_v61 = vmul.f32 %v3829_v58, %v2674_v25  ;;  %v4072_v2 = vpop.f32.mrb[15].mxu0  ;;  %v4112_v11 = vpop.f32.mrb[19].mxu1  ;;  %v3007_v50 = vmul.f32 %v3859_v54, %v2994_v3  ;;  %v3871_v58 = vld [vmem:[%s6109_s10 + $0x8] ss:$0 sm:$0xff]  ;;  %v3907_v54 = vld [vmem:[%s6109_s10 + $0xe] ss:$0 sm:$0xff] }
 0xabe   :  { %v2689_v10 = vadd.f32 %v2687_v61, %v2623_v27 }
 0xac1   :  { %v2735_v29 = vpop.f32.mrb[16].mxu0  ;;  %v3119_v30 = vpop.f32.mrb[20].mxu1 }
 0xac2   :  { %v2750_v31 = vmul.f32 %v3835_v28, %v2735_v29  ;;  %v4079_v35 = vpop.f32.mrb[17].mxu0  ;;  %v4127_v47 = vpop.f32.mrb[21].mxu1  ;;  %v3134_v7 = vmul.f32 %v3871_v58, %v3119_v30 }
 0xac3   :  { %v2738_v6 = vpop.f32.mrb[18].mxu0  ;;  %v3122_v43 = vpop.f32.mrb[22].mxu1  ;;  %v3883_v35 = vld [vmem:[%s6109_s10 + $0xa] ss:$0 sm:$0xff] }
 0xac4   :  { %v2752_v9 = vadd.f32 %v2750_v31, %v2688_v33  ;;  %v2751_v36 = vmul.f32 %v3835_v28, %v2738_v6  ;;  %v4080_v1 = vpop.f32.mrb[19].mxu0  ;;  %v4128_v38 = vpop.f32.mrb[23].mxu1  ;;  %v3135_v2 = vmul.f32 %v3871_v58, %v3122_v43  ;;  %v3877_v31 = vld [vmem:[%s6109_s10 + $0x9] ss:$0 sm:$0xff] }
 0xac6   :  { %v2753_v39 = vadd.f32 %v2751_v36, %v2689_v10 }
 0xac9   :  { %v2799_v44 = vpop.f32.mrb[20].mxu0  ;;  %v3247_v5 = vpop.f32.mrb[24].mxu1 }
 0xaca   :  { %v2814_v8 = vmul.f32 %v3841_v55, %v2799_v44  ;;  %v4087_v19 = vpop.f32.mrb[21].mxu0  ;;  %v4143_v13 = vpop.f32.mrb[25].mxu1  ;;  %v3262_v36 = vmul.f32 %v3883_v35, %v3247_v5 }
 0xacb   :  { %v2802_v48 = vpop.f32.mrb[22].mxu0  ;;  %v3250_v12 = vpop.f32.mrb[26].mxu1  ;;  %v3895_v19 = vld [vmem:[%s6109_s10 + $0xc] ss:$0 sm:$0xff] }
 0xacc   :  { %v2816_v32 = vadd.f32 %v2814_v8, %v2752_v9  ;;  %v2815_v53 = vmul.f32 %v3841_v55, %v2802_v48  ;;  %v4088_v46 = vpop.f32.mrb[23].mxu0  ;;  %v4144_v57 = vpop.f32.mrb[27].mxu1  ;;  %v3889_v8 = vld [vmem:[%s6109_s10 + $0xb] ss:$0 sm:$0xff] }
 0xace   :  { %v2817_v18 = vadd.f32 %v2815_v53, %v2753_v39  ;;  %v2880_v42 = vadd.f32 %v2878_v41, %v2816_v32  ;;  %v3263_v39 = vmul.f32 %v3883_v35, %v3250_v12 }
 0xad0   :  { %v2881_v14 = vadd.f32 %v2879_v0, %v2817_v18 }
 0xad1   :  { %v2927_v52 = vpop.f32.mrb[24].mxu0  ;;  %v3375_v15 = vpop.f32.mrb[28].mxu1 }
 0xad2   :  { %v2942_v16 = vmul.f32 %v3853_v37, %v2927_v52  ;;  %v4103_v51 = vpop.f32.mrb[25].mxu0  ;;  %v4159_v24 = vpop.f32.mrb[29].mxu1  ;;  %v3390_v5 = vmul.f32 %v3895_v19, %v3375_v15 }
 0xad3   :  { %v2930_v26 = vpop.f32.mrb[26].mxu0  ;;  %v3378_v20 = vpop.f32.mrb[30].mxu1 }
 0xad4   :  { %v2944_v21 = vadd.f32 %v2942_v16, %v2880_v42  ;;  %v2943_v22 = vmul.f32 %v3853_v37, %v2930_v26  ;;  %v4104_v60 = vpop.f32.mrb[27].mxu0  ;;  %v4160_v49 = vpop.f32.mrb[31].mxu1  ;;  %v3391_v12 = vmul.f32 %v3895_v19, %v3378_v20  ;;  %v3901_v37 = vld [vmem:[%s6109_s10 + $0xd] ss:$0 sm:$0xff] }
 0xad5   :  { %v3913_v60 = vld [vmem:[%s6109_s10 + $0xf] ss:$0 sm:$0xff] }
 0xad6   :  { %v2945_v17 = vadd.f32 %v2943_v22, %v2881_v14  ;;  %v3008_v45 = vadd.f32 %v3006_v63, %v2944_v21 }
 0xad8   :  { %v3009_v56 = vadd.f32 %v3007_v50, %v2945_v17 }
 0xad9   :  { %v3055_v62 = vpop.f32.mrb[28].mxu0  ;;  %v3503_v4 = vpop.f32.mrb[32].mxu1 }
 0xada   :  { %v3070_v59 = vmul.f32 %v3865_v34, %v3055_v62  ;;  %v4119_v23 = vpop.f32.mrb[29].mxu0  ;;  %v4175_v25 = vpop.f32.mrb[33].mxu1  ;;  %v3518_v15 = vmul.f32 %v3907_v54, %v3503_v4 }
 0xadb   :  { %v3058_v3 = vpop.f32.mrb[30].mxu0  ;;  %v3506_v27 = vpop.f32.mrb[34].mxu1 }
 0xadc   :  { %v3072_v33 = vadd.f32 %v3070_v59, %v3008_v45  ;;  %v3071_v61 = vmul.f32 %v3865_v34, %v3058_v3  ;;  %v4120_v11 = vpop.f32.mrb[31].mxu0  ;;  %v4176_v10 = vpop.f32.mrb[35].mxu1  ;;  %v3519_v20 = vmul.f32 %v3907_v54, %v3506_v27 }
 0xadd   :  { %v3605_v23 = vpop.permute.xlu1 %3604  ;;  %v3600_v25 = vpop.permute.xlu0 %3599 }
 0xade   :  { %v3073_v28 = vadd.f32 %v3071_v61, %v3009_v56  ;;  %v3136_v29 = vadd.f32 %v3134_v7, %v3072_v33 }
 0xae0   :  { %v3137_v47 = vadd.f32 %v3135_v2, %v3073_v28 }
 0xae1   :  { %v3183_v30 = vpop.f32.mrb[32].mxu0 }
 0xae2   :  { %v3198_v6 = vmul.f32 %v3877_v31, %v3183_v30  ;;  %v4135_v9 = vpop.f32.mrb[33].mxu0 }
 0xae3   :  { %v3186_v1 = vpop.f32.mrb[34].mxu0 }
 0xae4   :  { %v3200_v38 = vadd.f32 %v3198_v6, %v3136_v29  ;;  %v3199_v43 = vmul.f32 %v3877_v31, %v3186_v1  ;;  %v4136_v55 = vpop.f32.mrb[35].mxu0 }
 0xae6   :  { %v3201_v40 = vadd.f32 %v3199_v43, %v3137_v47  ;;  %v3264_v44 = vadd.f32 %v3262_v36, %v3200_v38 }
 0xae8   :  { %v3265_v41 = vadd.f32 %v3263_v39, %v3201_v40 }
 0xae9   :  { %v3311_v13 = vpop.f32.mrb[36].mxu0 }
 0xaea   :  { %v3326_v48 = vmul.f32 %v3889_v8, %v3311_v13  ;;  %v4151_v32 = vpop.f32.mrb[37].mxu0 }
 0xaeb   :  { %v3314_v53 = vpop.f32.mrb[38].mxu0 }
 0xaec   :  { %v3328_v0 = vadd.f32 %v3326_v48, %v3264_v44  ;;  %v3327_v46 = vmul.f32 %v3889_v8, %v3314_v53  ;;  %v4152_v57 = vpop.f32.mrb[39].mxu0 }
 0xaee   :  { %v3329_v18 = vadd.f32 %v3327_v46, %v3265_v41  ;;  %v3392_v42 = vadd.f32 %v3390_v5, %v3328_v0 }
 0xaf0   :  { %v3393_v14 = vadd.f32 %v3391_v12, %v3329_v18 }
 0xaf1   :  { %v3439_v52 = vpop.f32.mrb[40].mxu0 }
 0xaf2   :  { %v3454_v16 = vmul.f32 %v3901_v37, %v3439_v52  ;;  %v4167_v51 = vpop.f32.mrb[41].mxu0 }
 0xaf3   :  { %v3442_v63 = vpop.f32.mrb[42].mxu0 }
 0xaf4   :  { %v3456_v24 = vadd.f32 %v3454_v16, %v3392_v42  ;;  %v3455_v26 = vmul.f32 %v3901_v37, %v3442_v63  ;;  %v4168_v21 = vpop.f32.mrb[43].mxu0 }
 0xaf6   :  { %v3457_v22 = vadd.f32 %v3455_v26, %v3393_v14  ;;  %v3520_v50 = vadd.f32 %v3518_v15, %v3456_v24 }
 0xaf8   :  { %v3521_v49 = vadd.f32 %v3519_v20, %v3457_v22 }
 0xaf9   :  { %v3567_v17 = vpop.f32.mrb[44].mxu0 }
 0xafa   :  { %v3582_v45 = vmul.f32 %v3913_v60, %v3567_v17  ;;  %v4183_v34 = vpop.f32.mrb[45].mxu0 }
 0xafb   :  { %v3570_v58 = vpop.f32.mrb[46].mxu0 }
 0xafc   :  { %v3584_v56 = vadd.f32 %v3582_v45, %v3520_v50  ;;  %v3583_v62 = vmul.f32 %v3913_v60, %v3570_v58  ;;  %v4184_v59 = vpop.f32.mrb[47].mxu0 }
 0xafe   :  { %v3585_v4 = vadd.f32 %v3583_v62, %v3521_v49  ;;  %4203 = vmatprep.mubr.msk.f32.mxu1 %vm1677_vm8, %v3584_v56 }
 0xb00   :  { %4204 = vmatmul.mubr.msk.f32.vlgmr.msra.gmra.mrb[36].mxu1 %vm1677_vm8, %v3585_v4 }
 0xbd3   :  { %v4205_v7 = vpop.f32.mrb[36].mxu1 }
 0xbd4   :  { %v3685_v3 = vadd.f32 %v4205_v7, %v3605_v23  ;;  %v3679_v27 = vpop.f32.mrb[37].mxu1 }
 0xbd5   :  { %v3680_v33 = vadd.f32 %v3679_v27, %v3600_v25 }
 0xbd6   :  { %3691 = vst.msk [vmem:[%s6110_s13 + $0x8] sm:$0x3] %vm3690_vm13, %v3685_v3 }
 0xbd7   :  { %3689 = vst.msk [vmem:[%s6110_s13] sm:$0xff] %vm3688_vm14, %v3680_v33 }

</bundles_post_ra>
